<compile_context>
chip_gen: v5e
topology: v5e:2x2
jax: 0.10.0
libtpu: 0.0.40
codegen_flags: <defaults>
</compile_context>

<pallas_src>
import functools

import jax
import jax.numpy as jnp
from jax import lax
from jax.experimental import pallas as pl
from jax.experimental.pallas import tpu as pltpu


def _ghu_kernel(xcols_ref, zcols_ref, z_ref,
                wx_ref, wz_ref, bx_ref, bz_ref,
                gx_ref, betx_ref, gz_ref, betz_ref,
                out_ref, *, num_hidden: int, layer_norm: bool,
                eps: float = 1e-5):
    """One grid step == one batch sample.

    Shapes inside the kernel:
      xcols_ref, zcols_ref : (1, K*K*C, H*W)  bf16   im2col slabs
      z_ref                : (1, C,     H*W)  f32    previous highway state
      wx_ref, wz_ref       : (2C, K*K*C)      bf16   conv weights (OIHW flat)
      bx_ref, bz_ref       : (2C, 1)          f32    conv biases
      g*_ref / bet*_ref    : (2C, H*W)        f32    LayerNorm affine
      out_ref              : (1, C, H*W)      f32
    """
    C = num_hidden

    # Convolution == one deep MXU matmul per stream: (2C, KKC) @ (KKC, HW).
    xc = jnp.dot(wx_ref[...], xcols_ref[0], preferred_element_type=jnp.float32)
    zc = jnp.dot(wz_ref[...], zcols_ref[0], preferred_element_type=jnp.float32)
    xc = xc + bx_ref[...]                      # (2C, 1) broadcasts along lanes
    zc = zc + bz_ref[...]

    if layer_norm:
        # Per-sample LayerNorm over all (2C, H, W) elements, elementwise affine.
        def _ln(a, g_ref, b_ref):
            mu = jnp.mean(a)
            var = jnp.mean(jnp.square(a - mu))
            return (a - mu) * lax.rsqrt(var + eps) * g_ref[...] + b_ref[...]
        xc = _ln(xc, gx_ref, betx_ref)
        zc = _ln(zc, gz_ref, betz_ref)

    gates = xc + zc                            # (2C, HW), f32
    # p/u split is a sublane-aligned slice (offset C) -- no lane relayout.
    p = jnp.tanh(gates[:C, :])
    u = jax.nn.sigmoid(gates[C:, :])
    z_prev = z_ref[0]                          # (C, HW), f32
    out_ref[0] = (u * p + (1.0 - u) * z_prev).astype(out_ref.dtype)


def ghu_forward(x_nchw, z_nchw, params, *, filter_size, stride, layer_norm):
    """GHU forward.  Inputs/outputs are NCHW (PyTorch convention)."""
    assert stride == 1, "GHU requires stride=1 so z and the gates share spatial shape"
    N, C, H, W = x_nchw.shape
    K = filter_size
    pad = K // 2
    HW = H * W
    KKC = K * K * C
    C2 = 2 * C

    # Wrapper-side im2col (plain XLA): [N,C,H,W] -> [N, C*K*K, H*W],
    # contraction ordering (c, kh, kw) to match wt.reshape(2C, C*K*K).
    def im2col(a):
        ap = jnp.pad(a, ((0, 0), (0, 0), (pad, pad), (pad, pad)))
        pats = [ap[:, :, kh:kh + H, kw:kw + W]
                for kh in range(K) for kw in range(K)]      # each [N,C,H,W]
        cols = jnp.stack(pats, axis=2)                       # [N,C,K*K,H,W]
        return cols.reshape(N, KKC, HW)

    x_f32 = x_nchw.astype(jnp.float32)
    z_f32 = z_nchw.astype(jnp.float32)
    x_cols = im2col(x_f32).astype(jnp.bfloat16)              # MXU operands bf16
    z_cols = im2col(z_f32).astype(jnp.bfloat16)
    z_res = z_f32.reshape(N, C, HW)                          # highway residual

    wx = params["wx"].reshape(C2, KKC).astype(jnp.bfloat16)  # OIHW flat
    wz = params["wz"].reshape(C2, KKC).astype(jnp.bfloat16)
    bx = params["bx"].reshape(C2, 1).astype(jnp.float32)
    bz = params["bz"].reshape(C2, 1).astype(jnp.float32)
    gx = params["gamma_x"].reshape(C2, HW).astype(jnp.float32)
    betx = params["beta_x"].reshape(C2, HW).astype(jnp.float32)
    gz = params["gamma_z"].reshape(C2, HW).astype(jnp.float32)
    betz = params["beta_z"].reshape(C2, HW).astype(jnp.float32)

    per_sample = lambda s: pl.BlockSpec((1,) + s, lambda n: (n, 0, 0))
    resident = lambda s: pl.BlockSpec(s, lambda n: (0, 0))

    out = pl.pallas_call(
        functools.partial(_ghu_kernel, num_hidden=C, layer_norm=layer_norm),
        out_shape=jax.ShapeDtypeStruct((N, C, HW), jnp.float32),
        grid=(N,),
        in_specs=[
            per_sample((KKC, HW)),     # x_cols
            per_sample((KKC, HW)),     # z_cols
            per_sample((C, HW)),       # z residual
            resident((C2, KKC)),       # wx
            resident((C2, KKC)),       # wz
            resident((C2, 1)),         # bx
            resident((C2, 1)),         # bz
            resident((C2, HW)),        # gamma_x
            resident((C2, HW)),        # beta_x
            resident((C2, HW)),        # gamma_z
            resident((C2, HW)),        # beta_z
        ],
        out_specs=per_sample((C, HW)),
        compiler_params=pltpu.CompilerParams(
            dimension_semantics=("parallel",),
            vmem_limit_bytes=48 * 1024 * 1024),
    )(x_cols, z_cols, z_res, wx, wz, bx, bz, gx, betx, gz, betz)

    return out.reshape(N, C, H, W)             # already NCHW, just unfold HW


def ghu_reference(x, z, params, *, filter_size, layer_norm,
                  conv_dtype=jnp.float32):
    """Pure-JAX reference mirroring the PyTorch module (NCHW).

    conv_dtype lets us build a matched-precision (bf16 operands, f32 accum)
    reference as well as the full-f32 one.
    """
    pad = filter_size // 2
    C = x.shape[1]
    dn = lax.conv_dimension_numbers(x.shape, params["wx"].shape,
                                    ("NCHW", "OIHW", "NCHW"))

    def conv(inp, w, b):
        y = lax.conv_general_dilated(
            inp.astype(conv_dtype), w.astype(conv_dtype), (1, 1),
            [(pad, pad), (pad, pad)], dimension_numbers=dn,
            preferred_element_type=jnp.float32)
        return y + b[None, :, None, None].astype(jnp.float32)

    zc = conv(z, params["wz"], params["bz"])
    xc = conv(x, params["wx"], params["bx"])
    if layer_norm:
        def ln(a, g, bta):
            mu = a.mean(axis=(1, 2, 3), keepdims=True)
            var = ((a - mu) ** 2).mean(axis=(1, 2, 3), keepdims=True)
            return (a - mu) * lax.rsqrt(var + 1e-5) * g[None] + bta[None]
        zc = ln(zc, params["gamma_z"], params["beta_z"])
        xc = ln(xc, params["gamma_x"], params["beta_x"])
    gates = xc + zc
    p = jnp.tanh(gates[:, :C])
    u = jax.nn.sigmoid(gates[:, C:])
    return u * p + (1.0 - u) * z.astype(jnp.float32)


if __name__ == "__main__":
    # Small shapes consistent with the module.
    N, C, H, W = 2, 32, 16, 16
    filter_size, stride, layer_norm = 5, 1, True

    key = jax.random.PRNGKey(0)
    k = jax.random.split(key, 6)
    x = jax.random.normal(k[0], (N, C, H, W), jnp.float32)
    z = jax.random.normal(k[1], (N, C, H, W), jnp.float32)

    # Deterministic parameter init (synthetic — not a checkpoint load).
    fan_in = C * filter_size * filter_size
    scale = 1.0 / jnp.sqrt(fan_in)
    params = {
        "wz": jax.random.uniform(k[2], (2 * C, C, filter_size, filter_size),
                                 jnp.float32, -scale, scale),
        "bz": jax.random.uniform(k[3], (2 * C,), jnp.float32, -scale, scale),
        "wx": jax.random.uniform(k[4], (2 * C, C, filter_size, filter_size),
                                 jnp.float32, -scale, scale),
        "bx": jax.random.uniform(k[5], (2 * C,), jnp.float32, -scale, scale),
        "gamma_z": jnp.ones((2 * C, H, W), jnp.float32),
        "beta_z": jnp.zeros((2 * C, H, W), jnp.float32),
        "gamma_x": jnp.ones((2 * C, H, W), jnp.float32),
        "beta_x": jnp.zeros((2 * C, H, W), jnp.float32),
    }

    out = ghu_forward(x, z, params, filter_size=filter_size, stride=stride,
                      layer_norm=layer_norm)
    out = jax.block_until_ready(out)
    assert out.shape == (N, C, H, W)

    # Matched-precision reference (bf16 conv operands, f32 accumulation):
    ref_bf16 = ghu_reference(x, z, params, filter_size=filter_size,
                             layer_norm=layer_norm, conv_dtype=jnp.bfloat16)
    assert jnp.allclose(out, ref_bf16, atol=1e-2, rtol=1e-2), \
        "mismatch vs matched-precision reference"

    # Full-f32 reference (loose tolerance accounts for deliberate bf16 matmul):
    ref_f32 = ghu_reference(x, z, params, filter_size=filter_size,
                            layer_norm=layer_norm, conv_dtype=jnp.float32)
    assert jnp.allclose(out, ref_f32, atol=5e-2, rtol=5e-2), \
        "mismatch vs f32 reference"

    print("KERNEL_OK")
</pallas_src>

<mosaic_0001>
module attributes {stable_mosaic.version = 11 : i64} {
  func.func @_ghu_kernel(%arg0: i32, %arg1: memref<1x800x256xbf16, #tpu.memory_space<vmem>>, %arg2: memref<1x800x256xbf16, #tpu.memory_space<vmem>>, %arg3: memref<1x32x256xf32, #tpu.memory_space<vmem>>, %arg4: memref<64x800xbf16, #tpu.memory_space<vmem>>, %arg5: memref<64x800xbf16, #tpu.memory_space<vmem>>, %arg6: memref<64x1xf32, #tpu.memory_space<vmem>>, %arg7: memref<64x1xf32, #tpu.memory_space<vmem>>, %arg8: memref<64x256xf32, #tpu.memory_space<vmem>>, %arg9: memref<64x256xf32, #tpu.memory_space<vmem>>, %arg10: memref<64x256xf32, #tpu.memory_space<vmem>>, %arg11: memref<64x256xf32, #tpu.memory_space<vmem>>, %arg12: memref<1x32x256xf32, #tpu.memory_space<vmem>>) attributes {dimension_semantics = [#tpu.dimension_semantics<parallel>], iteration_bounds = array<i64: 2>, scalar_prefetch = 0 : i64, scratch_operands = 0 : i64, tpu.core_type = #tpu.core_type<tc>, window_params = [{transform_indices = @transform_0, window_bounds = array<i64: 1, 800, 256>}, {transform_indices = @transform_1, window_bounds = array<i64: 1, 800, 256>}, {transform_indices = @transform_2, window_bounds = array<i64: 1, 32, 256>}, {pipeline_mode = #tpu.pipeline_mode<synchronous>, transform_indices = @transform_3, window_bounds = array<i64: 64, 800>}, {pipeline_mode = #tpu.pipeline_mode<synchronous>, transform_indices = @transform_4, window_bounds = array<i64: 64, 800>}, {pipeline_mode = #tpu.pipeline_mode<synchronous>, transform_indices = @transform_5, window_bounds = array<i64: 64, 1>}, {pipeline_mode = #tpu.pipeline_mode<synchronous>, transform_indices = @transform_6, window_bounds = array<i64: 64, 1>}, {pipeline_mode = #tpu.pipeline_mode<synchronous>, transform_indices = @transform_7, window_bounds = array<i64: 64, 256>}, {pipeline_mode = #tpu.pipeline_mode<synchronous>, transform_indices = @transform_8, window_bounds = array<i64: 64, 256>}, {pipeline_mode = #tpu.pipeline_mode<synchronous>, transform_indices = @transform_9, window_bounds = array<i64: 64, 256>}, {pipeline_mode = #tpu.pipeline_mode<synchronous>, transform_indices = @transform_10, window_bounds = array<i64: 64, 256>}, {transform_indices = @transform_11, window_bounds = array<i64: 1, 32, 256>}]} {
    %c0 = arith.constant 0 : index
    %c0_0 = arith.constant 0 : index
    %0 = vector.load %arg4[%c0, %c0_0] : memref<64x800xbf16, #tpu.memory_space<vmem>>, vector<64x800xbf16>
    %c0_1 = arith.constant 0 : index
    %c0_2 = arith.constant 0 : index
    %c0_3 = arith.constant 0 : index
    %1 = vector.load %arg1[%c0_1, %c0_2, %c0_3] : memref<1x800x256xbf16, #tpu.memory_space<vmem>>, vector<1x800x256xbf16>
    %2 = vector.shape_cast %1 : vector<1x800x256xbf16> to vector<800x256xbf16>
    %cst = arith.constant dense<0.000000e+00> : vector<64x256xf32>
    %3 = tpu.matmul %0, %2, %cst {dimension_numbers = #tpu.dot_dimension_numbers<[1], [0], [0], [1], [0, 0, 1, 1], [], []>} : vector<64x800xbf16>, vector<800x256xbf16>, vector<64x256xf32> -> vector<64x256xf32>
    %c0_4 = arith.constant 0 : index
    %c0_5 = arith.constant 0 : index
    %4 = vector.load %arg5[%c0_4, %c0_5] : memref<64x800xbf16, #tpu.memory_space<vmem>>, vector<64x800xbf16>
    %c0_6 = arith.constant 0 : index
    %c0_7 = arith.constant 0 : index
    %c0_8 = arith.constant 0 : index
    %5 = vector.load %arg2[%c0_6, %c0_7, %c0_8] : memref<1x800x256xbf16, #tpu.memory_space<vmem>>, vector<1x800x256xbf16>
    %6 = vector.shape_cast %5 : vector<1x800x256xbf16> to vector<800x256xbf16>
    %cst_9 = arith.constant dense<0.000000e+00> : vector<64x256xf32>
    %7 = tpu.matmul %4, %6, %cst_9 {dimension_numbers = #tpu.dot_dimension_numbers<[1], [0], [0], [1], [0, 0, 1, 1], [], []>} : vector<64x800xbf16>, vector<800x256xbf16>, vector<64x256xf32> -> vector<64x256xf32>
    %c0_10 = arith.constant 0 : index
    %c0_11 = arith.constant 0 : index
    %8 = vector.load %arg6[%c0_10, %c0_11] : memref<64x1xf32, #tpu.memory_space<vmem>>, vector<64x1xf32>
    %9 = vector.broadcast %8 : vector<64x1xf32> to vector<64x256xf32>
    %10 = arith.addf %3, %9 : vector<64x256xf32>
    %c0_12 = arith.constant 0 : index
    %c0_13 = arith.constant 0 : index
    %11 = vector.load %arg7[%c0_12, %c0_13] : memref<64x1xf32, #tpu.memory_space<vmem>>, vector<64x1xf32>
    %12 = vector.broadcast %11 : vector<64x1xf32> to vector<64x256xf32>
    %13 = arith.addf %7, %12 : vector<64x256xf32>
    %14 = vector.shape_cast %10 : vector<64x256xf32> to vector<1x64x256xf32>
    %cst_14 = arith.constant dense<0.000000e+00> : vector<1xf32>
    %15 = vector.multi_reduction <add>, %14, %cst_14 [1, 2] : vector<1x64x256xf32> to vector<1xf32>
    %16 = vector.shape_cast %15 : vector<1xf32> to vector<1x1x1xf32>
    %17 = vector.extract %16[0, 0, 0] : f32 from vector<1x1x1xf32>
    %cst_15 = arith.constant 1.638400e+04 : f32
    %18 = arith.divf %17, %cst_15 : f32
    %19 = vector.broadcast %18 : f32 to vector<64x256xf32>
    %20 = arith.subf %10, %19 : vector<64x256xf32>
    %21 = arith.mulf %20, %20 : vector<64x256xf32>
    %22 = vector.shape_cast %21 : vector<64x256xf32> to vector<1x64x256xf32>
    %cst_16 = arith.constant dense<0.000000e+00> : vector<1xf32>
    %23 = vector.multi_reduction <add>, %22, %cst_16 [1, 2] : vector<1x64x256xf32> to vector<1xf32>
    %24 = vector.shape_cast %23 : vector<1xf32> to vector<1x1x1xf32>
    %25 = vector.extract %24[0, 0, 0] : f32 from vector<1x1x1xf32>
    %cst_17 = arith.constant 1.638400e+04 : f32
    %26 = arith.divf %25, %cst_17 : f32
    %27 = vector.broadcast %18 : f32 to vector<64x256xf32>
    %28 = arith.subf %10, %27 : vector<64x256xf32>
    %cst_18 = arith.constant 9.99999974E-6 : f32
    %29 = arith.addf %26, %cst_18 : f32
    %30 = math.rsqrt %29 : f32
    %31 = vector.broadcast %30 : f32 to vector<64x256xf32>
    %32 = arith.mulf %28, %31 : vector<64x256xf32>
    %c0_19 = arith.constant 0 : index
    %c0_20 = arith.constant 0 : index
    %33 = vector.load %arg8[%c0_19, %c0_20] : memref<64x256xf32, #tpu.memory_space<vmem>>, vector<64x256xf32>
    %34 = arith.mulf %32, %33 : vector<64x256xf32>
    %c0_21 = arith.constant 0 : index
    %c0_22 = arith.constant 0 : index
    %35 = vector.load %arg9[%c0_21, %c0_22] : memref<64x256xf32, #tpu.memory_space<vmem>>, vector<64x256xf32>
    %36 = arith.addf %34, %35 : vector<64x256xf32>
    %37 = vector.shape_cast %13 : vector<64x256xf32> to vector<1x64x256xf32>
    %cst_23 = arith.constant dense<0.000000e+00> : vector<1xf32>
    %38 = vector.multi_reduction <add>, %37, %cst_23 [1, 2] : vector<1x64x256xf32> to vector<1xf32>
    %39 = vector.shape_cast %38 : vector<1xf32> to vector<1x1x1xf32>
    %40 = vector.extract %39[0, 0, 0] : f32 from vector<1x1x1xf32>
    %cst_24 = arith.constant 1.638400e+04 : f32
    %41 = arith.divf %40, %cst_24 : f32
    %42 = vector.broadcast %41 : f32 to vector<64x256xf32>
    %43 = arith.subf %13, %42 : vector<64x256xf32>
    %44 = arith.mulf %43, %43 : vector<64x256xf32>
    %45 = vector.shape_cast %44 : vector<64x256xf32> to vector<1x64x256xf32>
    %cst_25 = arith.constant dense<0.000000e+00> : vector<1xf32>
    %46 = vector.multi_reduction <add>, %45, %cst_25 [1, 2] : vector<1x64x256xf32> to vector<1xf32>
    %47 = vector.shape_cast %46 : vector<1xf32> to vector<1x1x1xf32>
    %48 = vector.extract %47[0, 0, 0] : f32 from vector<1x1x1xf32>
    %cst_26 = arith.constant 1.638400e+04 : f32
    %49 = arith.divf %48, %cst_26 : f32
    %50 = vector.broadcast %41 : f32 to vector<64x256xf32>
    %51 = arith.subf %13, %50 : vector<64x256xf32>
    %cst_27 = arith.constant 9.99999974E-6 : f32
    %52 = arith.addf %49, %cst_27 : f32
    %53 = math.rsqrt %52 : f32
    %54 = vector.broadcast %53 : f32 to vector<64x256xf32>
    %55 = arith.mulf %51, %54 : vector<64x256xf32>
    %c0_28 = arith.constant 0 : index
    %c0_29 = arith.constant 0 : index
    %56 = vector.load %arg10[%c0_28, %c0_29] : memref<64x256xf32, #tpu.memory_space<vmem>>, vector<64x256xf32>
    %57 = arith.mulf %55, %56 : vector<64x256xf32>
    %c0_30 = arith.constant 0 : index
    %c0_31 = arith.constant 0 : index
    %58 = vector.load %arg11[%c0_30, %c0_31] : memref<64x256xf32, #tpu.memory_space<vmem>>, vector<64x256xf32>
    %59 = arith.addf %57, %58 : vector<64x256xf32>
    %60 = arith.addf %36, %59 : vector<64x256xf32>
    %61 = vector.extract_strided_slice %60 {offsets = [0, 0], sizes = [32, 256], strides = [1, 1]} : vector<64x256xf32> to vector<32x256xf32>
    %62 = math.tanh %61 : vector<32x256xf32>
    %63 = vector.extract_strided_slice %60 {offsets = [32, 0], sizes = [32, 256], strides = [1, 1]} : vector<64x256xf32> to vector<32x256xf32>
    %64 = arith.negf %63 : vector<32x256xf32>
    %65 = math.exp %64 : vector<32x256xf32>
    %cst_32 = arith.constant 1.000000e+00 : f32
    %66 = vector.broadcast %cst_32 : f32 to vector<32x256xf32>
    %67 = arith.addf %66, %65 : vector<32x256xf32>
    %68 = arith.divf %66, %67 : vector<32x256xf32>
    %c0_33 = arith.constant 0 : index
    %c0_34 = arith.constant 0 : index
    %c0_35 = arith.constant 0 : index
    %69 = vector.load %arg3[%c0_33, %c0_34, %c0_35] : memref<1x32x256xf32, #tpu.memory_space<vmem>>, vector<1x32x256xf32>
    %70 = vector.shape_cast %69 : vector<1x32x256xf32> to vector<32x256xf32>
    %71 = arith.mulf %68, %62 : vector<32x256xf32>
    %cst_36 = arith.constant 1.000000e+00 : f32
    %72 = vector.broadcast %cst_36 : f32 to vector<32x256xf32>
    %73 = arith.subf %72, %68 : vector<32x256xf32>
    %74 = arith.mulf %73, %70 : vector<32x256xf32>
    %75 = arith.addf %71, %74 : vector<32x256xf32>
    %c0_37 = arith.constant 0 : index
    %c0_38 = arith.constant 0 : index
    %c0_39 = arith.constant 0 : index
    %76 = vector.load %arg12[%c0_37, %c0_38, %c0_39] : memref<1x32x256xf32, #tpu.memory_space<vmem>>, vector<1x32x256xf32>
    %77 = vector.shape_cast %76 : vector<1x32x256xf32> to vector<32x256xf32>
    %78 = vector.shape_cast %75 : vector<32x256xf32> to vector<1x32x256xf32>
    tpu.vector_store %arg12[%c0_37, %c0_38, %c0_39], %78 {strides = array<i32>} : memref<1x32x256xf32, #tpu.memory_space<vmem>>, vector<1x32x256xf32>,
    return
  }
  func.func @transform_0(%arg0: i32) -> (i32, i32, i32) {
    %c0_i32 = arith.constant 0 : i32
    %c0_i32_0 = arith.constant 0 : i32
    %c0_i32_1 = arith.constant 0 : i32
    return %arg0, %c0_i32, %c0_i32_0 : i32, i32, i32
  }
  func.func @transform_1(%arg0: i32) -> (i32, i32, i32) {
    %c0_i32 = arith.constant 0 : i32
    %c0_i32_0 = arith.constant 0 : i32
    %c0_i32_1 = arith.constant 0 : i32
    return %arg0, %c0_i32, %c0_i32_0 : i32, i32, i32
  }
  func.func @transform_2(%arg0: i32) -> (i32, i32, i32) {
    %c0_i32 = arith.constant 0 : i32
    %c0_i32_0 = arith.constant 0 : i32
    %c0_i32_1 = arith.constant 0 : i32
    return %arg0, %c0_i32, %c0_i32_0 : i32, i32, i32
  }
  func.func @transform_3(%arg0: i32) -> (i32, i32) {
    %c0_i32 = arith.constant 0 : i32
    %c0_i32_0 = arith.constant 0 : i32
    %c0_i32_1 = arith.constant 0 : i32
    return %c0_i32, %c0_i32_0 : i32, i32
  }
  func.func @transform_4(%arg0: i32) -> (i32, i32) {
    %c0_i32 = arith.constant 0 : i32
    %c0_i32_0 = arith.constant 0 : i32
    %c0_i32_1 = arith.constant 0 : i32
    return %c0_i32, %c0_i32_0 : i32, i32
  }
  func.func @transform_5(%arg0: i32) -> (i32, i32) {
    %c0_i32 = arith.constant 0 : i32
    %c0_i32_0 = arith.constant 0 : i32
    %c0_i32_1 = arith.constant 0 : i32
    return %c0_i32, %c0_i32_0 : i32, i32
  }
  func.func @transform_6(%arg0: i32) -> (i32, i32) {
    %c0_i32 = arith.constant 0 : i32
    %c0_i32_0 = arith.constant 0 : i32
    %c0_i32_1 = arith.constant 0 : i32
    return %c0_i32, %c0_i32_0 : i32, i32
  }
  func.func @transform_7(%arg0: i32) -> (i32, i32) {
    %c0_i32 = arith.constant 0 : i32
    %c0_i32_0 = arith.constant 0 : i32
    %c0_i32_1 = arith.constant 0 : i32
    return %c0_i32, %c0_i32_0 : i32, i32
  }
  func.func @transform_8(%arg0: i32) -> (i32, i32) {
    %c0_i32 = arith.constant 0 : i32
    %c0_i32_0 = arith.constant 0 : i32
    %c0_i32_1 = arith.constant 0 : i32
    return %c0_i32, %c0_i32_0 : i32, i32
  }
  func.func @transform_9(%arg0: i32) -> (i32, i32) {
    %c0_i32 = arith.constant 0 : i32
    %c0_i32_0 = arith.constant 0 : i32
    %c0_i32_1 = arith.constant 0 : i32
    return %c0_i32, %c0_i32_0 : i32, i32
  }
  func.func @transform_10(%arg0: i32) -> (i32, i32) {
    %c0_i32 = arith.constant 0 : i32
    %c0_i32_0 = arith.constant 0 : i32
    %c0_i32_1 = arith.constant 0 : i32
    return %c0_i32, %c0_i32_0 : i32, i32
  }
  func.func @transform_11(%arg0: i32) -> (i32, i32, i32) {
    %c0_i32 = arith.constant 0 : i32
    %c0_i32_0 = arith.constant 0 : i32
    %c0_i32_1 = arith.constant 0 : i32
    return %arg0, %c0_i32, %c0_i32_0 : i32, i32, i32
  }
}

</mosaic_0001>

<bundles_post_ra>
// kernel: tpu_custom_call.1
= control target key start
LH: loop header
LB: loop body
LE: loop exit
PB: predicated region body
PF: predicated region fallthrough
CT: control target
= control target key end

     0   :  { %s7550_s0 = inlined_call_operand.hbm [shape: bf16[2,800,256], index: 0, kind: input, shape index: {}]   ;;  %s7551_s1 = inlined_call_operand.hbm [shape: bf16[2,800,256], index: 1, kind: input, shape index: {}]   ;;  %s7552_s2 = inlined_call_operand.vmem [shape: f32[2,32,256], index: 2, kind: input, shape index: {}]   ;;  %s7553_s3 = inlined_call_operand.hbm [shape: bf16[64,800], index: 3, kind: input, shape index: {}]   ;;  %s7554_s4 = inlined_call_operand.hbm [shape: bf16[64,800], index: 4, kind: input, shape index: {}]   ;;  %s7555_s5 = inlined_call_operand.vmem [shape: f32[64,1], index: 5, kind: input, shape index: {}]   ;;  %s7556_s6 = inlined_call_operand.vmem [shape: f32[64,1], index: 6, kind: input, shape index: {}]   ;;  %s7557_s7 = inlined_call_operand.hbm [shape: f32[64,256], index: 7, kind: input, shape index: {}]   ;;  %s7558_s8 = inlined_call_operand.hbm [shape: f32[64,256], index: 8, kind: input, shape index: {}]   ;;  %s7559_s9 = inlined_call_operand.hbm [shape: f32[64,256], index: 9, kind: input, shape index: {}]   ;;  %s7560_s10 = inlined_call_operand.hbm [shape: f32[64,256], index: 10, kind: input, shape index: {}]   ;;  %s7561_s11 = inlined_call_operand.hbm [shape: f32[2,32,256], index: 11, kind: output, shape index: {}]  }
   0x1   :  { %7578 = sst [smem:[#allocation39_spill]] %s7552_s2 }
   0x2   :  { %7579 = sst [smem:[#allocation40_spill]] %s7553_s3 }
   0x3   :  { %7580 = sst [smem:[#allocation41_spill]] %s7554_s4 }
   0x4   :  { %7581 = sst [smem:[#allocation42_spill]] %s7557_s7 }
   0x5   :  { %7582 = sst [smem:[#allocation43_spill]] %s7558_s8 }
   0x6   :  { %7583 = sst [smem:[#allocation44_spill]] %s7559_s9 }
   0x7   :  { %7584 = sst [smem:[#allocation45_spill]] %s7560_s10 }
   0x8   :  { %7585 = sst [smem:[#allocation46_spill]] %s7561_s11 }
   0x9   :  { %16 = vsyncpa [#allocation3], 0 }
   0xa   :  { %18 = vsyncpa [#allocation3 + $0x1], 0 }
   0xb   :  { %19 = vsyncpa [#allocation6], 0 }
   0xc   :  { %21 = vsyncpa [#allocation6 + $0x1], 0 }
   0xd   :  { %22 = vsyncpa [#allocation9], 0 }
   0xe   :  { %23 = vsyncpa [#allocation12], 0 }
   0xf   :  { %24 = vsyncpa [#allocation15], 0 }
  0x10   :  { %25 = vsyncpa [#allocation4], 0 }
  0x11   :  { %27 = vsyncpa [#allocation4 + $0x1], 0  ;;  %s5771_s17 = smov 0   ;;  %s5773_s18 = smov 0  }
  0x12   :  { %s5775_s19 = smov 0   ;;  %s5777_s20 = smov 0  }
  0x13 LB: > { %7586 = sst [smem:[#allocation24_spill]] %s5689_s19  ;;  %s5795_s24 = sadd.s32 4294967295, %s5693_s20   ;;  %s5693_s20 = sphi %s5777_s20, %s7666_s20   ;;  %s5689_s19 = sphi %s5775_s19, %s7663_s19   ;;  %s5685_s18 = sphi %s5773_s18, %s7665_s18   ;;  %s5681_s17 = sphi %s5771_s17, %s7664_s17  }
  0x14   : > { %s7587_s3 = sld [smem:[#allocation40_spill]]  ;;  %p3838_p0 = scmp.ge.s32.totalorder %s5693_s20, 1 }
  0x15   : > { %p54_p1 = scmp.eq.s32.totalorder %s5795_s24, 0  ;;  %p310_p2 = scmp.lt.s32.totalorder %s5693_s20, 3 }
  0x16   : > { %s5695_s26 = smov [#allocation7]   ;;  %s7589_s4 = sld [smem:[#allocation41_spill]] }
  0x17   : > { %p5800_p3 = pnand %p3838_p0, %p310_p2  ;;  %s323_s27 = sshll.u32 %s5695_s26, 4  ;;  %s324_s27 = int_to_ptr.vmem [resolvable:$true] %s323_s27 }
  0x18   : > { %s5696_s13 = smov [#allocation8]   ;;  %s5697_s15 = smov 448  }
  0x19   : > { %p5218_p4 = pneg %p5800_p3  ;;  %s337_s14 = sshll.u32 %s5696_s13, 4  ;;  %s338_s14 = int_to_ptr.vmem [resolvable:$true] %s337_s14 }
  0x1a   : > { %s321_s23 = sshll.u32 %s7587_s3, 4  ;;  %s5698_s16 = smov 28   ;;  %s322_s23 = int_to_ptr.hbm [resolvable:$true] %s321_s23 }
  0x1b   : > { %p5812_p6 = pnand %p5218_p4, %p54_p1  ;;  %s7591_s8 = sld [smem:[#allocation43_spill]] }
  0x1c   : > { %s335_s30 = sshll.u32 %s7589_s4, 4  ;;  %s5699_s28 = smov [#allocation11]   ;;  %s336_s30 = int_to_ptr.hbm [resolvable:$true] %s335_s30 }
  0x1d   : > { %5221 = dma.hbm_to_vmem [thread:$0]  (!%p5812_p6), %s322_s23, 3584, %s324_s27, [#allocation6], %s5697_s15, %s5697_s15, %s5698_s16  }
  0x1e   : > { %5224 = dma.hbm_to_vmem [thread:$0]  (!%p5812_p6), %s336_s30, 3584, %s338_s14, [#allocation9], %s5697_s15, %s5697_s15, %s5698_s16  }
  0x1f   : > { %s371_s29 = sshll.u32 %s5699_s28, 4  ;;  %s7592_s7 = sld [smem:[#allocation42_spill]]  ;;  %s372_s29 = int_to_ptr.vmem [resolvable:$true] %s371_s29 }
  0x20   : > { %s5700_s11 = smov 256   ;;  %s5701_s2 = smov 16  }
  0x21   : > { %s369_s26 = sshll.u32 %s7591_s8, 4  ;;  %s5702_s23 = smov [#allocation10]   ;;  %s370_s26 = int_to_ptr.hbm [resolvable:$true] %s369_s26 }
  0x22   : > { %5230 = dma.hbm_to_vmem [thread:$0]  (!%p5812_p6), %s370_s26, 2048, %s372_s29, [#allocation12], %s5700_s11, %s5700_s11, %s5701_s2  }
  0x23   : > { %s357_s27 = sshll.u32 %s5702_s23, 4  ;;  %s7593_s9 = sld [smem:[#allocation44_spill]]  ;;  %s358_s27 = int_to_ptr.vmem [resolvable:$true] %s357_s27 }
  0x24   : > { %s7594_s10 = sld [smem:[#allocation45_spill]]  ;;  %s5703_s21 = smov [#allocation13]  }
  0x25   : > { %s355_s13 = sshll.u32 %s7592_s7, 4  ;;  %s385_s22 = sshll.u32 %s5703_s21, 4  ;;  %s356_s13 = int_to_ptr.hbm [resolvable:$true] %s355_s13  ;;  %s386_s22 = int_to_ptr.vmem [resolvable:$true] %s385_s22 }
  0x26   : > { %5227 = dma.hbm_to_vmem [thread:$0]  (!%p5812_p6), %s356_s13, 2048, %s358_s27, [#allocation9], %s5700_s11, %s5700_s11, %s5701_s2  }
  0x27   : > { %s5704_s26 = smov [#allocation14]   ;;  %s3837_s29 = sadd.s32 4294967294, %s5693_s20  }
  0x28   : > { %s399_s28 = sshll.u32 %s5704_s26, 4  ;;  %s5842_s13 = sadd.s32 1, %s5693_s20   ;;  %s400_s28 = int_to_ptr.vmem [resolvable:$true] %s399_s28 }
  0x29   : > { %s383_s15 = sshll.u32 %s7593_s9, 4  ;;  %s37_s23 = ssub.s32 %s5693_s20, %s5842_s13  ;;  %s384_s15 = int_to_ptr.hbm [resolvable:$true] %s383_s15 }
  0x2a   : > { %s397_s16 = sshll.u32 %s7594_s10, 4  ;;  %s40_s27 = sadd.s32 1, %s5689_s19  ;;  %s398_s16 = int_to_ptr.hbm [resolvable:$true] %s397_s16 }
  0x2b   : > { %5233 = dma.hbm_to_vmem [thread:$0]  (!%p5812_p6), %s384_s15, 2048, %s386_s22, [#allocation12], %s5700_s11, %s5700_s11, %s5701_s2  }
  0x2c   : > { %5236 = dma.hbm_to_vmem [thread:$0]  (!%p5812_p6), %s398_s16, 2048, %s400_s28, [#allocation15], %s5700_s11, %s5700_s11, %s5701_s2  }
  0x2d   : > { %p38_p7 = scmp.eq.s32.totalorder %s37_s23, 0  ;;  %p47_p8 = scmp.ne.s32.totalorder %s5689_s19, %s5685_s18 }
  0x2e   : > { %p48_p9 = scmp.eq.s32.totalorder %s5693_s20, 0  ;;  %p53_p10 = scmp.ne.s32.totalorder %s5685_s18, %s5681_s17 }
  0x2f   : > { %s5853_s30 = scalar_select %p38_p7, %s5689_s19, %s40_s27  }
  0x30   : > { %p49_p11 = por %p48_p9, %p47_p8  ;;  %p5857_p12 = por %p54_p1, %p53_p10 }
  0x31   : > { %7595 = sst [smem:[#allocation25_spill]] %s5853_s30  ;;  %p297_p13 = scmp.eq.s32.totalorder %s5795_s24, 1 }
  0x32   : > { %p303_p0 = scmp.eq.s32.totalorder %s3837_s29, 1  ;;  %p5254_p2 = scmp.lt.s32.totalorder %s5693_s20, 2 }
  0x33   : > { %s413_s2 = sand.u32 1, %s5689_s19   ;;  %p5864_p4 = por %p297_p13, %p47_p8 }
  0x34   : > { %p5868_p6 = por %p303_p0, %p53_p10  ;;  %s5872_s15 = smul.u32 800, %s413_s2 }
  0x35   : > { %s7563_s3 = smul.u32 800, %s5693_s20  ;;  %p5875_p7 = pnand %p5254_p2, %p49_p11 }
  0x36   : > { %s417_s26 = scalar_lea.vmem [#allocation2], %s5872_s15  ;;  %s435_s23 = sand.u32 1, %s5693_s20  }
  0x37   : > { %s422_s22 = scalar_lea.hbm %s7550_s0, %s7563_s3  ;;  %s425_s28 = sshll.u32 %s417_s26, 4  ;;  %s426_s28 = int_to_ptr.vmem [resolvable:$true] %s425_s28 }
  0x38   : > { %s423_s29 = sshll.u32 %s422_s22, 4  ;;  %s414_s27 = scalar_lea.sflag [#allocation3], %s413_s2  ;;  %s424_s29 = int_to_ptr.hbm [resolvable:$true] %s423_s29 }
  0x39   : > { %s5547_s7 = sshra.s32 %s424_s29, 4  ;;  %p5551_p9 = pneg %p5875_p7  ;;  %s5548_s7 = int_to_ptr.hbm [resolvable:$true] %s5547_s7 }
  0x3a   : > { %s5549_s8 = scalar_lea.hbm %s5548_s7, 800  ;;  %s5554_s3 = scalar_lea.hbm %s7550_s0, 1600 }
  0x3b   : > { %p5550_p8 = scmp.ne.s32.totalorder %s5548_s7, %s5549_s8  ;;  %p5555_p13 = scmp.lt.s32.totalorder %s5548_s7, %s7550_s0 }
  0x3c   : > { %p5556_p0 = scmp.lt.s32.totalorder %s5554_s3, %s5549_s8 }
  0x3d   : > { %p5552_p10 = pnand %p5551_p9, %p5550_p8 }
  0x3e   : > { %p5557_p2 = por %p5556_p0, %p5555_p13 }
  0x3f   : > { %p5553_p11 = pneg %p5552_p10 }
  0x41   : > { %p5558_p5 = pnand %p5557_p2, %p5553_p11 }
  0x43   : > { %5561 = shalt.err (!%p5558_p5)
}
  0x44   : > { %s5705_s2 = smov 128   ;;  %s5706_s9 = smov 8  }
  0x45   : > { %5240 = dma.hbm_to_vmem [thread:$0]  (!%p5875_p7), %s424_s29, 12800, %s426_s28, %s414_s27, %s5705_s2, %s5705_s2, %s5706_s9  }
  0x46   : > { %s7600_s10 = smul.u32 800, %s5693_s20  ;;  %s439_s19 = scalar_lea.vmem [#allocation5], %s5872_s15 }
  0x47   : > { %s447_s26 = sshll.u32 %s439_s19, 4  ;;  %s436_s8 = scalar_lea.sflag [#allocation6], %s435_s23  ;;  %s448_s26 = int_to_ptr.vmem [resolvable:$true] %s447_s26 }
  0x48   : > { %s444_s21 = scalar_lea.hbm %s7551_s1, %s7600_s10  ;;  %s5584_s27 = scalar_lea.hbm %s7551_s1, 1600 }
  0x49   : > { %s445_s7 = sshll.u32 %s444_s21, 4  ;;  %s446_s7 = int_to_ptr.hbm [resolvable:$true] %s445_s7 }
  0x4a   : > { %s5577_s3 = sshra.s32 %s446_s7, 4  ;;  %s5578_s3 = int_to_ptr.hbm [resolvable:$true] %s5577_s3 }
  0x4b   : > { %s5579_s22 = scalar_lea.hbm %s5578_s3, 800  ;;  %p5585_p11 = scmp.lt.s32.totalorder %s5578_s3, %s7551_s1 }
  0x4c   : > { %p5580_p5 = scmp.ne.s32.totalorder %s5578_s3, %s5579_s22  ;;  %p5586_p13 = scmp.lt.s32.totalorder %s5584_s27, %s5579_s22 }
  0x4e   : > { %p5582_p8 = pnand %p5580_p5, %p5551_p9  ;;  %p5587_p0 = por %p5586_p13, %p5585_p11 }
  0x50   : > { %p5583_p10 = pneg %p5582_p8 }
  0x52   : > { %p5588_p2 = pnand %p5587_p0, %p5583_p10 }
  0x54   : > { %5591 = shalt.err (!%p5588_p2)
}
  0x55   : > { %5243 = dma.hbm_to_vmem [thread:$0]  (!%p5875_p7), %s446_s7, 12800, %s448_s26, %s436_s8, %s5705_s2, %s5705_s2, %s5706_s9  }
  0x56   : > { %467 = sbr.rel (%p5800_p3) target bundleno = 1347 (0x543), region = 64 }
  0x5b   : > { %s5919_s19 = sand.u32 1, %s5685_s18  }
  0x5c   : > { %s5173_s15 = smul.u32 800, %s5919_s19  ;;  %s470_s23 = scalar_lea.sflag [#allocation3], %s5919_s19 }
  0x5e   : > { %s5923_s16 = scalar_lea.vmem [#allocation2], %s5173_s15 }
  0x5f   : > { %5652 = dma.done.wait (%p5857_p12), %s470_s23, 12800  }
  0x60   : > { %5654 = vsyncadd (%p5857_p12), %s470_s23, 4294954496  ;;  %s479_s9 = sand.u32 1, %s5795_s24   ;;  %s5930_s4 = scalar_lea.vmem [#allocation5], %s5173_s15 }
  0x61   : > { %s480_s25 = scalar_lea.sflag [#allocation6], %s479_s9 }
  0x62   : > { %5656 = dma.done.wait (%p5857_p12), %s480_s25, 12800  }
  0x63   : > { %5658 = vsyncadd (%p5857_p12), %s480_s25, 4294954496 }
  0x64   : > { %5660 = dma.done.wait (%p54_p1), [#allocation6], 3584  }
  0x65   : > { %5662 = vsyncadd (%p54_p1), [#allocation6], 4294963712 }
  0x66   : > { %5664 = dma.done.wait (%p54_p1), [#allocation9], 5632  }
  0x67   : > { %5666 = vsyncadd (%p54_p1), [#allocation9], 4294961664 }
  0x68   : > { %5668 = dma.done.wait (%p54_p1), [#allocation12], 4096  }
  0x69   : > { %5670 = vsyncadd (%p54_p1), [#allocation12], 4294963200 }
  0x6a   : > { %5672 = dma.done.wait (%p54_p1), [#allocation15], 2048  }
  0x6b   : > { %5674 = vsyncadd (%p54_p1), [#allocation15], 4294965248  ;;  %v4028_v0 = vld [vmem:[%s5923_s16 + $0x70] sm:$0xf]  ;;  %v4955_v1 = vld [vmem:[%s5923_s16 + $0x74] sm:$0xf0] }
  0x6c   : > { %v4092_v2 = vld [vmem:[%s5923_s16 + $0xf0] sm:$0xf]  ;;  %v4029_v3 = vor.u32 %v4955_v1, %v4028_v0  ;;  %v4971_v4 = vld [vmem:[%s5923_s16 + $0xf4] sm:$0xf0]  ;;  %v4020_v11 = vld [vmem:[%s5923_s16 + $0x60] sm:$0xf] }
  0x6d   : > { %v4156_v5 = vld [vmem:[%s5923_s16 + $0x170] sm:$0xf]  ;;  %v4987_v6 = vld [vmem:[%s5923_s16 + $0x174] sm:$0xf0]  ;;  %v4093_v7 = vor.u32 %v4971_v4, %v4092_v2  ;;  %v4953_v13 = vld [vmem:[%s5923_s16 + $0x64] sm:$0xf0] }
  0x6e   : > { %v4157_v8 = vor.u32 %v4987_v6, %v4156_v5  ;;  %v4220_v9 = vld [vmem:[%s5923_s16 + $0x1f0] sm:$0xf]  ;;  %v5003_v10 = vld [vmem:[%s5923_s16 + $0x1f4] sm:$0xf0]  ;;  %1534 = vmatpush.bf16.msra.mxu0 %v4029_v3  ;;  %v4084_v14 = vld [vmem:[%s5923_s16 + $0xe0] sm:$0xf]  ;;  %v4021_v16 = vor.u32 %v4953_v13, %v4020_v11 }
  0x6f   : > { %v4221_v12 = vor.u32 %v5003_v10, %v4220_v9  ;;  %v4969_v15 = vld [vmem:[%s5923_s16 + $0xe4] sm:$0xf0]  ;;  %1563 = vmatpush.bf16.msra.mxu1 %v4093_v7  ;;  %v4148_v18 = vld [vmem:[%s5923_s16 + $0x160] sm:$0xf]  ;;  %v4012_v23 = vld [vmem:[%s5923_s16 + $0x50] sm:$0xf] }
  0x70   : > { %1592 = vmatpush.bf16.msra.mxu2 %v4157_v8  ;;  %v4085_v17 = vor.u32 %v4969_v15, %v4084_v14  ;;  %v4985_v19 = vld [vmem:[%s5923_s16 + $0x164] sm:$0xf0]  ;;  %v4212_v20 = vld [vmem:[%s5923_s16 + $0x1e0] sm:$0xf]  ;;  %v4951_v24 = vld [vmem:[%s5923_s16 + $0x54] sm:$0xf0] }
  0x71   : > { %1621 = vmatpush.bf16.msra.mxu3 %v4221_v12  ;;  %v4149_v21 = vor.u32 %v4985_v19, %v4148_v18  ;;  %v5001_v22 = vld [vmem:[%s5923_s16 + $0x1e4] sm:$0xf0]  ;;  %v4076_v26 = vld [vmem:[%s5923_s16 + $0xd0] sm:$0xf]  ;;  %v4967_v27 = vld [vmem:[%s5923_s16 + $0xd4] sm:$0xf0]  ;;  %v4013_v29 = vor.u32 %v4951_v24, %v4012_v23 }
  0x72   : > { %v4213_v25 = vor.u32 %v5001_v22, %v4212_v20  ;;  %v4140_v28 = vld [vmem:[%s5923_s16 + $0x150] sm:$0xf]  ;;  %1535 = vmatpush.bf16.msra.mxu0 %v4021_v16  ;;  %v4983_v30 = vld [vmem:[%s5923_s16 + $0x154] sm:$0xf0]  ;;  %v4077_v33 = vor.u32 %v4967_v27, %v4076_v26  ;;  %v4004_v35 = vld [vmem:[%s5923_s16 + $0x40] sm:$0xf] }
  0x73   : > { %v4204_v31 = vld [vmem:[%s5923_s16 + $0x1d0] sm:$0xf]  ;;  %v4999_v32 = vld [vmem:[%s5923_s16 + $0x1d4] sm:$0xf0]  ;;  %1564 = vmatpush.bf16.msra.mxu1 %v4085_v17  ;;  %v4141_v34 = vor.u32 %v4983_v30, %v4140_v28  ;;  %v4949_v36 = vld [vmem:[%s5923_s16 + $0x44] sm:$0xf0] }
  0x74   : > { %1593 = vmatpush.bf16.msra.mxu2 %v4149_v21  ;;  %v4068_v37 = vld [vmem:[%s5923_s16 + $0xc0] sm:$0xf]  ;;  %v4205_v38 = vor.u32 %v4999_v32, %v4204_v31  ;;  %v4965_v39 = vld [vmem:[%s5923_s16 + $0xc4] sm:$0xf0]  ;;  %v4005_v44 = vor.u32 %v4949_v36, %v4004_v35  ;;  %v3996_v47 = vld [vmem:[%s5923_s16 + $0x30] sm:$0xf] }
  0x75   : > { %1622 = vmatpush.bf16.msra.mxu3 %v4213_v25  ;;  %v4132_v40 = vld [vmem:[%s5923_s16 + $0x140] sm:$0xf]  ;;  %v4981_v41 = vld [vmem:[%s5923_s16 + $0x144] sm:$0xf0]  ;;  %v4069_v45 = vor.u32 %v4965_v39, %v4068_v37  ;;  %v4947_v48 = vld [vmem:[%s5923_s16 + $0x34] sm:$0xf0] }
  0x76   : > { %v4196_v42 = vld [vmem:[%s5923_s16 + $0x1c0] sm:$0xf]  ;;  %v4997_v43 = vld [vmem:[%s5923_s16 + $0x1c4] sm:$0xf0]  ;;  %1536 = vmatpush.bf16.msra.mxu0 %v4013_v29  ;;  %v4133_v46 = vor.u32 %v4981_v41, %v4132_v40  ;;  %v4060_v49 = vld [vmem:[%s5923_s16 + $0xb0] sm:$0xf]  ;;  %v3997_v56 = vor.u32 %v4947_v48, %v3996_v47 }
  0x77   : > { %1565 = vmatpush.bf16.msra.mxu1 %v4077_v33  ;;  %v4197_v50 = vor.u32 %v4997_v43, %v4196_v42  ;;  %v4963_v51 = vld [vmem:[%s5923_s16 + $0xb4] sm:$0xf0]  ;;  %v4124_v52 = vld [vmem:[%s5923_s16 + $0x130] sm:$0xf]  ;;  %v3988_v59 = vld [vmem:[%s5923_s16 + $0x20] sm:$0xf] }
  0x78   : > { %1594 = vmatpush.bf16.msra.mxu2 %v4141_v34  ;;  %v4979_v53 = vld [vmem:[%s5923_s16 + $0x134] sm:$0xf0]  ;;  %v4188_v54 = vld [vmem:[%s5923_s16 + $0x1b0] sm:$0xf]  ;;  %v4061_v57 = vor.u32 %v4963_v51, %v4060_v49  ;;  %v4945_v60 = vld [vmem:[%s5923_s16 + $0x24] sm:$0xf0] }
  0x79   : > { %1623 = vmatpush.bf16.msra.mxu3 %v4205_v38  ;;  %v4995_v55 = vld [vmem:[%s5923_s16 + $0x1b4] sm:$0xf0]  ;;  %v4125_v58 = vor.u32 %v4979_v53, %v4124_v52  ;;  %v4052_v61 = vld [vmem:[%s5923_s16 + $0xa0] sm:$0xf]  ;;  %v4961_v63 = vld [vmem:[%s5923_s16 + $0xa4] sm:$0xf0]  ;;  %v3989_v4 = vor.u32 %v4945_v60, %v3988_v59 }
  0x7a   : > { %1537 = vmatpush.bf16.msra.mxu0 %v4005_v44  ;;  %v4189_v62 = vor.u32 %v4995_v55, %v4188_v54  ;;  %v4116_v0 = vld [vmem:[%s5923_s16 + $0x120] sm:$0xf]  ;;  %v4977_v1 = vld [vmem:[%s5923_s16 + $0x124] sm:$0xf0]  ;;  %v4053_v5 = vor.u32 %v4961_v63, %v4052_v61  ;;  %v3980_v7 = vld [vmem:[%s5923_s16 + $0x10] sm:$0xf] }
  0x7b   : > { %1566 = vmatpush.bf16.msra.mxu1 %v4069_v45  ;;  %v4180_v2 = vld [vmem:[%s5923_s16 + $0x1a0] sm:$0xf]  ;;  %v4993_v3 = vld [vmem:[%s5923_s16 + $0x1a4] sm:$0xf0]  ;;  %v4117_v6 = vor.u32 %v4977_v1, %v4116_v0  ;;  %v4943_v8 = vld [vmem:[%s5923_s16 + $0x14] sm:$0xf0] }
  0x7c   : > { %1595 = vmatpush.bf16.msra.mxu2 %v4133_v46  ;;  %v4044_v9 = vld [vmem:[%s5923_s16 + $0x90] sm:$0xf]  ;;  %v4181_v10 = vor.u32 %v4993_v3, %v4180_v2  ;;  %v4959_v11 = vld [vmem:[%s5923_s16 + $0x94] sm:$0xf0]  ;;  %v3972_v16 = vld [vmem:[%s5923_s16] sm:$0xf]  ;;  %v3981_v17 = vor.u32 %v4943_v8, %v3980_v7 }
  0x7d   : > { %1624 = vmatpush.bf16.msra.mxu3 %v4197_v50  ;;  %v4108_v12 = vld [vmem:[%s5923_s16 + $0x110] sm:$0xf]  ;;  %v4975_v13 = vld [vmem:[%s5923_s16 + $0x114] sm:$0xf0]  ;;  %v4941_v18 = vld [vmem:[%s5923_s16 + $0x4] sm:$0xf0]  ;;  %v4045_v21 = vor.u32 %v4959_v11, %v4044_v9 }
  0x7e   : > { %1538 = vmatpush.bf16.msra.mxu0 %v3997_v56  ;;  %v4172_v14 = vld [vmem:[%s5923_s16 + $0x190] sm:$0xf]  ;;  %v4991_v15 = vld [vmem:[%s5923_s16 + $0x194] sm:$0xf0]  ;;  %v4036_v19 = vld [vmem:[%s5923_s16 + $0x80] sm:$0xf]  ;;  %v4109_v22 = vor.u32 %v4975_v13, %v4108_v12  ;;  %v3973_v33 = vor.u32 %v4941_v18, %v3972_v16 }
  0x7f   : > { %1567 = vmatpush.bf16.msra.mxu1 %v4061_v57  ;;  %v4957_v20 = vld [vmem:[%s5923_s16 + $0x84] sm:$0xf0]  ;;  %v4100_v23 = vld [vmem:[%s5923_s16 + $0x100] sm:$0xf]  ;;  %v4173_v26 = vor.u32 %v4991_v15, %v4172_v14  ;;  %v4915_v29 = vld [vmem:[#allocation7 + $0x18] sm:$0xf0] }
  0x80   : > { %1596 = vmatpush.bf16.msra.mxu2 %v4125_v58  ;;  %v4973_v24 = vld [vmem:[%s5923_s16 + $0x104] sm:$0xf0]  ;;  %v4164_v25 = vld [vmem:[%s5923_s16 + $0x180] sm:$0xf]  ;;  %v4284_v30 = vld [vmem:[%s5923_s16 + $0x270] sm:$0xf]  ;;  %v4037_v38 = vor.u32 %v4957_v20, %v4036_v19 }
  0x81   : > { %1625 = vmatpush.bf16.msra.mxu3 %v4189_v62  ;;  %v4989_v27 = vld [vmem:[%s5923_s16 + $0x184] sm:$0xf0]  ;;  %v3860_v28 = vld [vmem:[#allocation7] sm:$0xf]  ;;  %v5019_v31 = vld [vmem:[%s5923_s16 + $0x274] sm:$0xf0]  ;;  %v4101_v39 = vor.u32 %v4973_v24, %v4100_v23 }
  0x82   : > { %1539 = vmatpush.bf16.msra.mxu0 %v3989_v4  ;;  %v833_v32 = vld [vmem:[%s7555_s5] sm:$0xff]  ;;  %v4348_v35 = vld [vmem:[%s5923_s16 + $0x2f0] sm:$0xf]  ;;  %v5035_v36 = vld [vmem:[%s5923_s16 + $0x2f4] sm:$0xf0]  ;;  %v5707_v37 = vmov 0   ;;  %v4165_v43 = vor.u32 %v4989_v27, %v4164_v25  ;;  %v4285_v44 = vor.u32 %v5019_v31, %v4284_v30  ;;  %v6023_v47 = vor.u32 %v4915_v29, %v3860_v28 }
  0x83   : > { %1568 = vmatpush.bf16.msra.mxu1 %v4053_v5  ;;  %v4912_v34 = vld [vmem:[#allocation7 + $0x4] sm:$0xf]  ;;  %5310 = vset.pattern.permute.xlu0 %v5707_v37  ;;  %v3862_v40 = vld [vmem:[#allocation7 + $0x1c] sm:$0xf0]  ;;  %v3868_v41 = vld [vmem:[#allocation7 + $0x8] sm:$0xf]  ;;  %v4349_v48 = vor.u32 %v5035_v36, %v4348_v35 }
  0x84   : > { %1597 = vmatpush.bf16.msra.mxu2 %v4117_v6  ;;  %v4916_v42 = vld [vmem:[#allocation7 + $0x20] sm:$0xf0]  ;;  %v4913_v45 = vld [vmem:[#allocation7 + $0xc] sm:$0xf]  ;;  %v3870_v46 = vld [vmem:[#allocation7 + $0x24] sm:$0xf0]  ;;  %843 = vperm.xlu0 %5310, %v833_v32   ;;  %v6027_v51 = vor.u32 %v4912_v34, %v3862_v40 }
  0x85   : > { %1626 = vmatpush.bf16.msra.mxu3 %v4181_v10  ;;  %v4276_v49 = vld [vmem:[%s5923_s16 + $0x260] sm:$0xf]  ;;  %v5017_v50 = vld [vmem:[%s5923_s16 + $0x264] sm:$0xf0]  ;;  %5311 = vset.pattern.permute.xlu1 %v5707_v37  ;;  %v6029_v52 = vor.u32 %v4916_v42, %v3868_v41  ;;  %v6033_v55 = vor.u32 %v4913_v45, %v3870_v46  ;;  %v835_v57 = vld [vmem:[%s7555_s5 + $0x10] sm:$0xff]  ;;  %vm1521_vm0 = vcmask 261120  }
  0x86   : > { %1540 = vmatpush.bf16.msra.mxu0 %v3981_v17  ;;  %5312 = vset.pattern.permute.xlu2 %v5707_v37  ;;  %v4340_v53 = vld [vmem:[%s5923_s16 + $0x2e0] sm:$0xf]  ;;  %v5033_v54 = vld [vmem:[%s5923_s16 + $0x2e4] sm:$0xf0]  ;;  %v4277_v56 = vor.u32 %v5017_v50, %v4276_v49  ;;  %v4268_v59 = vld [vmem:[%s5923_s16 + $0x250] sm:$0xf] }
  0x87   : > { %1569 = vmatpush.bf16.msra.mxu1 %v4045_v21  ;;  %v4341_v58 = vor.u32 %v5033_v54, %v4340_v53  ;;  %v5015_v60 = vld [vmem:[%s5923_s16 + $0x254] sm:$0xf0]  ;;  %v834_v61 = vld [vmem:[%s7555_s5 + $0x8] sm:$0xff]  ;;  %v4332_v62 = vld [vmem:[%s5923_s16 + $0x2d0] sm:$0xf]  ;;  %853 = vperm.xlu1 %5311, %v835_v57   ;;  %p563_p1 = scmp.lt.s32.totalorder %s5795_s24, 1 }
  0x88   : > { %1598 = vmatpush.bf16.msra.mxu2 %v4109_v22  ;;  %v5031_v63 = vld [vmem:[%s5923_s16 + $0x2d4] sm:$0xf0]  ;;  %v4269_v0 = vor.u32 %v5015_v60, %v4268_v59  ;;  %v4260_v1 = vld [vmem:[%s5923_s16 + $0x240] sm:$0xf]  ;;  %v4954_v2 = vld [vmem:[%s5923_s16 + $0x74] sm:$0xf] }
  0x89   : > { %1627 = vmatpush.bf16.msra.mxu3 %v4173_v26  ;;  %v4030_v3 = vld [vmem:[%s5923_s16 + $0x78] sm:$0xf0]  ;;  %v4333_v4 = vor.u32 %v5031_v63, %v4332_v62  ;;  %v5013_v5 = vld [vmem:[%s5923_s16 + $0x244] sm:$0xf0]  ;;  %v4952_v7 = vld [vmem:[%s5923_s16 + $0x64] sm:$0xf] }
  0x8a   : > { %1541 = vmatpush.bf16.msra.mxu0 %v3973_v33  ;;  %v4033_v6 = vor.u32 %v4954_v2, %v4030_v3  ;;  %v4022_v8 = vld [vmem:[%s5923_s16 + $0x68] sm:$0xf0]  ;;  %v4324_v9 = vld [vmem:[%s5923_s16 + $0x2c0] sm:$0xf]  ;;  %v5029_v10 = vld [vmem:[%s5923_s16 + $0x2c4] sm:$0xf0]  ;;  %v4261_v13 = vor.u32 %v5013_v5, %v4260_v1 }
  0x8b   : > { %1570 = vmatpush.bf16.msra.mxu1 %v4037_v38  ;;  %v4025_v11 = vor.u32 %v4952_v7, %v4022_v8  ;;  %v3888_v12 = vld [vmem:[#allocation7 + $0x38] sm:$0xf]  ;;  %v4950_v15 = vld [vmem:[%s5923_s16 + $0x54] sm:$0xf]  ;;  %v4014_v16 = vld [vmem:[%s5923_s16 + $0x58] sm:$0xf0]  ;;  %v4325_v18 = vor.u32 %v5029_v10, %v4324_v9 }
  0x8c   : > { %1599 = vmatpush.bf16.msra.mxu2 %v4101_v39  ;;  %848 = vperm.xlu0 %5310, %v834_v61   ;;  %v836_v14 = vld [vmem:[%s7555_s5 + $0x18] sm:$0xff]  ;;  %v4922_v17 = vld [vmem:[#allocation7 + $0x50] sm:$0xf0]  ;;  %v4252_v19 = vld [vmem:[%s5923_s16 + $0x230] sm:$0xf]  ;;  %v4017_v27 = vor.u32 %v4950_v15, %v4014_v16  ;;  %s7370_s28 = scalar_select %p563_p1, %s5795_s24, 1 }
  0x8d   : > { %1628 = vmatpush.bf16.msra.mxu3 %v4165_v43  ;;  %1542 = vmatmul.bf16.vlgmr.msra.gmra.mxu0 %v6023_v47  ;;  %v5011_v20 = vld [vmem:[%s5923_s16 + $0x234] sm:$0xf0]  ;;  %v4919_v21 = vld [vmem:[#allocation7 + $0x3c] sm:$0xf]  ;;  %v4316_v22 = vld [vmem:[%s5923_s16 + $0x2b0] sm:$0xf]  ;;  %v6067_v32 = vor.u32 %v4922_v17, %v3888_v12 }
  0x8e   : > { %1650 = vmatpush.bf16.msrb.mxu0 %v4285_v44  ;;  %1571 = vmatmul.bf16.vlgmr.msra.gmra.mxu1 %v6027_v51  ;;  %v5027_v23 = vld [vmem:[%s5923_s16 + $0x2b4] sm:$0xf0]  ;;  %v3896_v25 = vld [vmem:[#allocation7 + $0x40] sm:$0xf]  ;;  %v4923_v26 = vld [vmem:[#allocation7 + $0x58] sm:$0xf0]  ;;  %v4253_v30 = vor.u32 %v5011_v20, %v4252_v19 }
  0x8f   : > { %1679 = vmatpush.bf16.msrb.mxu1 %v4349_v48  ;;  %1600 = vmatmul.bf16.vlgmr.msra.gmra.mxu2 %v6029_v52  ;;  %v3890_v24 = vld [vmem:[#allocation7 + $0x54] sm:$0xf0]  ;;  %v4920_v28 = vld [vmem:[#allocation7 + $0x44] sm:$0xf]  ;;  %v3898_v29 = vld [vmem:[#allocation7 + $0x5c] sm:$0xf0]  ;;  %v4317_v33 = vor.u32 %v5027_v23, %v4316_v22  ;;  %v6074_v38 = vor.u32 %v4923_v26, %v3896_v25 }
  0x90   : > { %1629 = vmatmul.bf16.vlgmr.msra.gmra.mxu3 %v6033_v55  ;;  %858 = vperm.xlu1 %5311, %v836_v14   ;;  %v4244_v31 = vld [vmem:[%s5923_s16 + $0x220] sm:$0xf]  ;;  %v5009_v34 = vld [vmem:[%s5923_s16 + $0x224] sm:$0xf0]  ;;  %v4948_v35 = vld [vmem:[%s5923_s16 + $0x44] sm:$0xf]  ;;  %v6072_v37 = vor.u32 %v4919_v21, %v3890_v24  ;;  %v6078_v41 = vor.u32 %v4920_v28, %v3898_v29 }
  0x91   : > { %1737 = vmatpush.bf16.msrb.mxu3 %v4033_v6  ;;  %v4006_v36 = vld [vmem:[%s5923_s16 + $0x48] sm:$0xf0]  ;;  %v4308_v39 = vld [vmem:[%s5923_s16 + $0x2a0] sm:$0xf]  ;;  %v5025_v40 = vld [vmem:[%s5923_s16 + $0x2a4] sm:$0xf0]  ;;  %v4245_v42 = vor.u32 %v5009_v34, %v4244_v31 }
  0x92   : > { %1651 = vmatpush.bf16.msrb.mxu0 %v4277_v56  ;;  %v4009_v43 = vor.u32 %v4948_v35, %v4006_v36  ;;  %v4309_v44 = vor.u32 %v5025_v40, %v4308_v39  ;;  %v4236_v45 = vld [vmem:[%s5923_s16 + $0x210] sm:$0xf]  ;;  %v5007_v46 = vld [vmem:[%s5923_s16 + $0x214] sm:$0xf0]  ;;  %v4946_v48 = vld [vmem:[%s5923_s16 + $0x34] sm:$0xf] }
  0x93   : > { %1680 = vmatpush.bf16.msrb.mxu1 %v4341_v58  ;;  %v4300_v49 = vld [vmem:[%s5923_s16 + $0x290] sm:$0xf]  ;;  %v5023_v50 = vld [vmem:[%s5923_s16 + $0x294] sm:$0xf0]  ;;  %v3998_v53 = vld [vmem:[%s5923_s16 + $0x38] sm:$0xf0]  ;;  %v4237_v54 = vor.u32 %v5007_v46, %v4236_v45 }
  0x94   : > { %v4001_v56 = vor.u32 %v4946_v48, %v3998_v53  ;;  %v4364_v57 = vld [vmem:[%s5923_s16 + $0x310] sm:$0xf]  ;;  %v5039_v58 = vld [vmem:[%s5923_s16 + $0x314] sm:$0xf0]  ;;  %v4944_v59 = vld [vmem:[%s5923_s16 + $0x24] sm:$0xf]  ;;  %v4301_v60 = vor.u32 %v5023_v50, %v4300_v49 }
  0x95   : > { %1738 = vmatpush.bf16.msrb.mxu3 %v4025_v11  ;;  %v4365_v61 = vor.u32 %v5039_v58, %v4364_v57  ;;  %v3990_v62 = vld [vmem:[%s5923_s16 + $0x28] sm:$0xf0]  ;;  %v4228_v63 = vld [vmem:[%s5923_s16 + $0x200] sm:$0xf]  ;;  %v5021_v2 = vld [vmem:[%s5923_s16 + $0x284] sm:$0xf0] }
  0x96   : > { %1652 = vmatpush.bf16.msrb.mxu0 %v4269_v0  ;;  %v5005_v0 = vld [vmem:[%s5923_s16 + $0x204] sm:$0xf0]  ;;  %v4292_v1 = vld [vmem:[%s5923_s16 + $0x280] sm:$0xf]  ;;  %v839_v3 = vld [vmem:[%s7555_s5 + $0x30] sm:$0xff]  ;;  %v3993_v5 = vor.u32 %v4944_v59, %v3990_v62  ;;  %s4911_s29 = sshll.u32 %s7370_s28, 6 }
  0x97   : > { %1681 = vmatpush.bf16.msrb.mxu1 %v4333_v4  ;;  %1714 = vmatpush.bf16.msrb.mxu2 %v4365_v61  ;;  %v4356_v4 = vld [vmem:[%s5923_s16 + $0x300] sm:$0xf]  ;;  %v4229_v6 = vor.u32 %v5005_v0, %v4228_v63  ;;  %v5037_v7 = vld [vmem:[%s5923_s16 + $0x304] sm:$0xf0]  ;;  %v4293_v8 = vor.u32 %v5021_v2, %v4292_v1  ;;  %v4942_v9 = vld [vmem:[%s5923_s16 + $0x14] sm:$0xf] }
  0x98   : > { %873 = vperm.xlu0 %5310, %v839_v3   ;;  %v3982_v10 = vld [vmem:[%s5923_s16 + $0x18] sm:$0xf0]  ;;  %v4357_v11 = vor.u32 %v5037_v7, %v4356_v4  ;;  %v3916_v12 = vld [vmem:[#allocation7 + $0x70] sm:$0xf]  ;;  %v4926_v14 = vld [vmem:[#allocation7 + $0x74] sm:$0xf] }
  0x99   : > { %1739 = vmatpush.bf16.msrb.mxu3 %v4017_v27  ;;  %v3918_v15 = vld [vmem:[#allocation7 + $0x8c] sm:$0xf0]  ;;  %v3924_v16 = vld [vmem:[#allocation7 + $0x78] sm:$0xf]  ;;  %v4930_v17 = vld [vmem:[#allocation7 + $0x90] sm:$0xf0]  ;;  %v3985_v20 = vor.u32 %v4942_v9, %v3982_v10 }
  0x9a   : > { %1653 = vmatpush.bf16.msrb.mxu0 %v4261_v13  ;;  %v4929_v13 = vld [vmem:[#allocation7 + $0x88] sm:$0xf0]  ;;  %v3926_v19 = vld [vmem:[#allocation7 + $0x94] sm:$0xf0]  ;;  %v4940_v22 = vld [vmem:[%s5923_s16 + $0x4] sm:$0xf]  ;;  %v6109_v24 = vor.u32 %v4926_v14, %v3918_v15  ;;  %v6111_v25 = vor.u32 %v4930_v17, %v3924_v16 }
  0x9b   : > { %1682 = vmatpush.bf16.msrb.mxu1 %v4325_v18  ;;  %1715 = vmatpush.bf16.msrb.mxu2 %v4357_v11  ;;  %v4927_v18 = vld [vmem:[#allocation7 + $0x7c] sm:$0xf]  ;;  %v6105_v21 = vor.u32 %v4929_v13, %v3916_v12  ;;  %v3974_v23 = vld [vmem:[%s5923_s16 + $0x8] sm:$0xf0]  ;;  %v4970_v28 = vld [vmem:[%s5923_s16 + $0xf4] sm:$0xf] }
  0x9c   : > { %v6113_v26 = vor.u32 %v4927_v18, %v3926_v19  ;;  %v3977_v27 = vor.u32 %v4940_v22, %v3974_v23  ;;  %v4094_v29 = vld [vmem:[%s5923_s16 + $0xf8] sm:$0xf0]  ;;  %v4986_v31 = vld [vmem:[%s5923_s16 + $0x174] sm:$0xf]  ;;  %v837_v34 = vld [vmem:[%s7555_s5 + $0x20] sm:$0xff] }
  0x9d   : > { %1547 = vmatmul.bf16.gmra.mxu0 %v6067_v32  ;;  %1740 = vmatpush.bf16.msrb.mxu3 %v4009_v43  ;;  %v840_v36 = vld [vmem:[%s7555_s5 + $0x38] sm:$0xff]  ;;  %v4968_v39 = vld [vmem:[%s5923_s16 + $0xe4] sm:$0xf]  ;;  %v4086_v40 = vld [vmem:[%s5923_s16 + $0xe8] sm:$0xf0] }
  0x9e   : > { %1654 = vmatpush.bf16.msrb.mxu0 %v4253_v30  ;;  %1576 = vmatmul.bf16.gmra.mxu1 %v6072_v37  ;;  %v4097_v30 = vor.u32 %v4970_v28, %v4094_v29  ;;  %v4984_v43 = vld [vmem:[%s5923_s16 + $0x164] sm:$0xf]  ;;  %v838_v46 = vld [vmem:[%s7555_s5 + $0x28] sm:$0xff]  ;;  %v4934_v57 = vld [vmem:[#allocation7 + $0xb4] sm:$0xf] }
  0x9f   : > { %1683 = vmatpush.bf16.msrb.mxu1 %v4317_v33  ;;  %1605 = vmatmul.bf16.gmra.mxu2 %v6074_v38  ;;  %v4158_v33 = vld [vmem:[%s5923_s16 + $0x178] sm:$0xf0]  ;;  %v3944_v48 = vld [vmem:[#allocation7 + $0xa8] sm:$0xf]  ;;  %v4936_v49 = vld [vmem:[#allocation7 + $0xc0] sm:$0xf0] }
  0xa0   : > { %1634 = vmatmul.bf16.gmra.mxu3 %v6078_v41  ;;  %v4161_v35 = vor.u32 %v4986_v31, %v4158_v33  ;;  %863 = vperm.xlu2 %5312, %v837_v34   ;;  %v4933_v50 = vld [vmem:[#allocation7 + $0xac] sm:$0xf]  ;;  %v3946_v53 = vld [vmem:[#allocation7 + $0xc4] sm:$0xf0]  ;;  %v3954_v58 = vld [vmem:[#allocation7 + $0xcc] sm:$0xf0]  ;;  %v6136_v59 = vor.u32 %v4936_v49, %v3944_v48 }
  0xa1   : > { %1741 = vmatpush.bf16.msrb.mxu3 %v4001_v56  ;;  %878 = vperm.xlu1 %5311, %v840_v36   ;;  %v4937_v56 = vld [vmem:[#allocation7 + $0xc8] sm:$0xf0]  ;;  %v6142_v62 = vor.u32 %v4934_v57, %v3954_v58  ;;  %v4966_v63 = vld [vmem:[%s5923_s16 + $0xd4] sm:$0xf]  ;;  %v4078_v0 = vld [vmem:[%s5923_s16 + $0xd8] sm:$0xf0] }
  0xa2   : > { %1655 = vmatpush.bf16.msrb.mxu0 %v4245_v42  ;;  %v4089_v42 = vor.u32 %v4968_v39, %v4086_v40  ;;  %v4081_v1 = vor.u32 %v4966_v63, %v4078_v0  ;;  %v4982_v2 = vld [vmem:[%s5923_s16 + $0x154] sm:$0xf]  ;;  %v4142_v3 = vld [vmem:[%s5923_s16 + $0x158] sm:$0xf0]  ;;  %v4964_v4 = vld [vmem:[%s5923_s16 + $0xc4] sm:$0xf] }
  0xa3   : > { %1684 = vmatpush.bf16.msrb.mxu1 %v4309_v44  ;;  %v4150_v44 = vld [vmem:[%s5923_s16 + $0x168] sm:$0xf0]  ;;  %v4980_v7 = vld [vmem:[%s5923_s16 + $0x144] sm:$0xf]  ;;  %v3876_v11 = vld [vmem:[#allocation7 + $0x10] sm:$0xf] }
  0xa4   : > { %v4153_v45 = vor.u32 %v4984_v43, %v4150_v44  ;;  %v4917_v12 = vld [vmem:[#allocation7 + $0x28] sm:$0xf0]  ;;  %v4914_v13 = vld [vmem:[#allocation7 + $0x14] sm:$0xf]  ;;  %v3878_v14 = vld [vmem:[#allocation7 + $0x2c] sm:$0xf0] }
  0xa5   : > { %1742 = vmatpush.bf16.msrb.mxu3 %v3993_v5  ;;  %v4145_v5 = vor.u32 %v4982_v2, %v4142_v3  ;;  %v3884_v15 = vld [vmem:[#allocation7 + $0x18] sm:$0xf]  ;;  %v4918_v16 = vld [vmem:[#allocation7 + $0x30] sm:$0xf0]  ;;  %v6156_v17 = vor.u32 %v4917_v12, %v3876_v11  ;;  %v6158_v18 = vor.u32 %v4914_v13, %v3878_v14  ;;  %v4222_v22 = vld [vmem:[%s5923_s16 + $0x1f8] sm:$0xf0] }
  0xa6   : > { %1656 = vmatpush.bf16.msrb.mxu0 %v4237_v54  ;;  %v3952_v54 = vld [vmem:[#allocation7 + $0xb0] sm:$0xf]  ;;  %v6160_v19 = vor.u32 %v4918_v16, %v3884_v15  ;;  %v4062_v28 = vld [vmem:[%s5923_s16 + $0xb8] sm:$0xf0]  ;;  %v5018_v29 = vld [vmem:[%s5923_s16 + $0x274] sm:$0xf] }
  0xa7   : > { %1685 = vmatpush.bf16.msrb.mxu1 %v4301_v60  ;;  %v6138_v60 = vor.u32 %v4933_v50, %v3946_v53  ;;  %v6140_v61 = vor.u32 %v4937_v56, %v3952_v54  ;;  %v4978_v31 = vld [vmem:[%s5923_s16 + $0x134] sm:$0xf]  ;;  %v4126_v33 = vld [vmem:[%s5923_s16 + $0x138] sm:$0xf0]  ;;  %v5000_v39 = vld [vmem:[%s5923_s16 + $0x1e4] sm:$0xf] }
  0xa8   : > { %868 = vperm.xlu2 %5312, %v838_v46   ;;  %v4286_v34 = vld [vmem:[%s5923_s16 + $0x278] sm:$0xf0]  ;;  %v4214_v40 = vld [vmem:[%s5923_s16 + $0x1e8] sm:$0xf0]  ;;  %v4998_v49 = vld [vmem:[%s5923_s16 + $0x1d4] sm:$0xf] }
  0xa9   : > { %1743 = vmatpush.bf16.msrb.mxu3 %v3985_v20  ;;  %v5002_v20 = vld [vmem:[%s5923_s16 + $0x1f4] sm:$0xf]  ;;  %v4289_v36 = vor.u32 %v5018_v29, %v4286_v34  ;;  %v4217_v43 = vor.u32 %v5000_v39, %v4214_v40  ;;  %v4278_v44 = vld [vmem:[%s5923_s16 + $0x268] sm:$0xf0]  ;;  %v4206_v50 = vld [vmem:[%s5923_s16 + $0x1d8] sm:$0xf0] }
  0xaa   : > { %1657 = vmatpush.bf16.msrb.mxu0 %v4229_v6  ;;  %v4070_v6 = vld [vmem:[%s5923_s16 + $0xc8] sm:$0xf0]  ;;  %v4225_v23 = vor.u32 %v5002_v20, %v4222_v22  ;;  %v4976_v53 = vld [vmem:[%s5923_s16 + $0x124] sm:$0xf]  ;;  %v4209_v54 = vor.u32 %v4998_v49, %v4206_v50  ;;  %v5014_v57 = vld [vmem:[%s5923_s16 + $0x254] sm:$0xf] }
  0xab   : > { %1686 = vmatpush.bf16.msrb.mxu1 %v4293_v8  ;;  %v4134_v8 = vld [vmem:[%s5923_s16 + $0x148] sm:$0xf0]  ;;  %v4073_v9 = vor.u32 %v4964_v4, %v4070_v6  ;;  %v4270_v58 = vld [vmem:[%s5923_s16 + $0x258] sm:$0xf0]  ;;  %v4996_v0 = vld [vmem:[%s5923_s16 + $0x1c4] sm:$0xf] }
  0xac   : > { %v4137_v10 = vor.u32 %v4980_v7, %v4134_v8  ;;  %1824 = vmatpush.bf16.msra.mxu2 %v4225_v23  ;;  %v4118_v56 = vld [vmem:[%s5923_s16 + $0x128] sm:$0xf0]  ;;  %v3904_v2 = vld [vmem:[#allocation7 + $0x48] sm:$0xf]  ;;  %v4924_v3 = vld [vmem:[#allocation7 + $0x60] sm:$0xf0] }
  0xad   : > { %1552 = vmatmul.bf16.gmra.mxu0 %v6105_v21  ;;  %1744 = vmatpush.bf16.msrb.mxu3 %v3977_v27  ;;  %v4962_v27 = vld [vmem:[%s5923_s16 + $0xb4] sm:$0xf]  ;;  %v4121_v63 = vor.u32 %v4976_v53, %v4118_v56  ;;  %v4921_v4 = vld [vmem:[#allocation7 + $0x4c] sm:$0xf]  ;;  %v3906_v6 = vld [vmem:[#allocation7 + $0x64] sm:$0xf0] }
  0xae   : > { %1581 = vmatmul.bf16.gmra.mxu1 %v6109_v24  ;;  %1766 = vmatpush.bf16.msra.mxu0 %v4097_v30  ;;  %v4065_v30 = vor.u32 %v4962_v27, %v4062_v28  ;;  %v3912_v7 = vld [vmem:[#allocation7 + $0x50] sm:$0xf]  ;;  %v4925_v8 = vld [vmem:[#allocation7 + $0x68] sm:$0xf0]  ;;  %v5012_v11 = vld [vmem:[%s5923_s16 + $0x244] sm:$0xf]  ;;  %v6193_v13 = vor.u32 %v4921_v4, %v3906_v6 }
  0xaf   : > { %1610 = vmatmul.bf16.gmra.mxu2 %v6111_v25  ;;  %1795 = vmatpush.bf16.msra.mxu1 %v4161_v35  ;;  %v4129_v35 = vor.u32 %v4978_v31, %v4126_v33  ;;  %v4262_v12 = vld [vmem:[%s5923_s16 + $0x248] sm:$0xf0]  ;;  %v6195_v14 = vor.u32 %v4925_v8, %v3912_v7  ;;  %v4994_v16 = vld [vmem:[%s5923_s16 + $0x1b4] sm:$0xf]  ;;  %v4190_v20 = vld [vmem:[%s5923_s16 + $0x1b8] sm:$0xf0] }
  0xb0   : > { %1639 = vmatmul.bf16.gmra.mxu3 %v6113_v26  ;;  %1825 = vmatpush.bf16.msra.mxu2 %v4217_v43  ;;  %v4265_v15 = vor.u32 %v5012_v11, %v4262_v12  ;;  %v4193_v22 = vor.u32 %v4994_v16, %v4190_v20  ;;  %v4958_v23 = vld [vmem:[%s5923_s16 + $0x94] sm:$0xf]  ;;  %v4046_v27 = vld [vmem:[%s5923_s16 + $0x98] sm:$0xf0]  ;;  %v4182_v39 = vld [vmem:[%s5923_s16 + $0x1a8] sm:$0xf0] }
  0xb1   : > { %1853 = vmatpush.bf16.msra.mxu3 %v4289_v36  ;;  %v5010_v28 = vld [vmem:[%s5923_s16 + $0x234] sm:$0xf]  ;;  %v4049_v29 = vor.u32 %v4958_v23, %v4046_v27  ;;  %v4110_v31 = vld [vmem:[%s5923_s16 + $0x118] sm:$0xf0]  ;;  %v4992_v36 = vld [vmem:[%s5923_s16 + $0x1a4] sm:$0xf] }
  0xb2   : > { %1767 = vmatpush.bf16.msra.mxu0 %v4089_v42  ;;  %v5016_v42 = vld [vmem:[%s5923_s16 + $0x264] sm:$0xf]  ;;  %v4254_v33 = vld [vmem:[%s5923_s16 + $0x238] sm:$0xf0]  ;;  %v4102_v50 = vld [vmem:[%s5923_s16 + $0x108] sm:$0xf0] }
  0xb3   : > { %1796 = vmatpush.bf16.msra.mxu1 %v4153_v45  ;;  %v4054_v45 = vld [vmem:[%s5923_s16 + $0xa8] sm:$0xf0]  ;;  %v4281_v46 = vor.u32 %v5016_v42, %v4278_v44  ;;  %v5008_v40 = vld [vmem:[%s5923_s16 + $0x224] sm:$0xf]  ;;  %v4185_v42 = vor.u32 %v4992_v36, %v4182_v39  ;;  %v5006_v56 = vld [vmem:[%s5923_s16 + $0x214] sm:$0xf] }
  0xb4   : > { %1826 = vmatpush.bf16.msra.mxu2 %v4209_v54  ;;  %v4956_v43 = vld [vmem:[%s5923_s16 + $0x84] sm:$0xf]  ;;  %v4038_v44 = vld [vmem:[%s5923_s16 + $0x88] sm:$0xf0]  ;;  %v5034_v20 = vld [vmem:[%s5923_s16 + $0x2f4] sm:$0xf] }
  0xb5   : > { %1854 = vmatpush.bf16.msra.mxu3 %v4281_v46  ;;  %v4174_v46 = vld [vmem:[%s5923_s16 + $0x198] sm:$0xf0]  ;;  %v4166_v6 = vld [vmem:[%s5923_s16 + $0x188] sm:$0xf0]  ;;  %v5004_v12 = vld [vmem:[%s5923_s16 + $0x204] sm:$0xf] }
  0xb6   : > { %1768 = vmatpush.bf16.msra.mxu0 %v4081_v1  ;;  %v4198_v1 = vld [vmem:[%s5923_s16 + $0x1c8] sm:$0xf0]  ;;  %v5038_v27 = vld [vmem:[%s5923_s16 + $0x314] sm:$0xf]  ;;  %v3962_v39 = vld [vmem:[#allocation7 + $0xd4] sm:$0xf0] }
  0xb7   : > { %1797 = vmatpush.bf16.msra.mxu1 %v4145_v5  ;;  %v4273_v5 = vor.u32 %v5014_v57, %v4270_v58  ;;  %v4238_v57 = vld [vmem:[%s5923_s16 + $0x218] sm:$0xf0]  ;;  %v3932_v58 = vld [vmem:[#allocation7 + $0x80] sm:$0xf] }
  0xb8   : > { %v4241_v4 = vor.u32 %v5006_v56, %v4238_v57  ;;  %v4548_v57 = vld [vmem:[%s5930_s4 + $0x70] sm:$0xf] }
  0xb9   : > { %1855 = vmatpush.bf16.msra.mxu3 %v4273_v5  ;;  %v4988_v5 = vld [vmem:[%s5923_s16 + $0x184] sm:$0xf] }
  0xba   : > { %1769 = vmatpush.bf16.msra.mxu0 %v4073_v9  ;;  %v4201_v9 = vor.u32 %v4996_v0, %v4198_v1  ;;  %v4928_v0 = vld [vmem:[#allocation7 + $0x84] sm:$0xf]  ;;  %v3934_v1 = vld [vmem:[#allocation7 + $0x9c] sm:$0xf0]  ;;  %v4169_v8 = vor.u32 %v4988_v5, %v4166_v6  ;;  %v4358_v5 = vld [vmem:[%s5923_s16 + $0x308] sm:$0xf0] }
  0xbb   : > { %1798 = vmatpush.bf16.msra.mxu1 %v4137_v10  ;;  %v6189_v10 = vor.u32 %v4924_v3, %v3904_v2  ;;  %v3940_v2 = vld [vmem:[#allocation7 + $0x88] sm:$0xf]  ;;  %v4932_v3 = vld [vmem:[#allocation7 + $0xa0] sm:$0xf0]  ;;  %v5099_v6 = vld [vmem:[%s5930_s4 + $0xf4] sm:$0xf0] }
  0xbc   : > { %1827 = vmatpush.bf16.msra.mxu2 %v4201_v9  ;;  %v6226_v9 = vor.u32 %v4928_v0, %v3934_v1  ;;  %v6228_v11 = vor.u32 %v4932_v3, %v3940_v2  ;;  %v5026_v0 = vld [vmem:[%s5923_s16 + $0x2b4] sm:$0xf]  ;;  %v4318_v1 = vld [vmem:[%s5923_s16 + $0x2b8] sm:$0xf0]  ;;  %v4612_v2 = vld [vmem:[%s5930_s4 + $0xf0] sm:$0xf] }
  0xbd   : > { %1557 = vmatmul.bf16.gmra.mxu0 %v6136_v59  ;;  %1856 = vmatpush.bf16.msra.mxu3 %v4265_v15  ;;  %v4230_v15 = vld [vmem:[%s5923_s16 + $0x208] sm:$0xf0]  ;;  %v4321_v3 = vor.u32 %v5026_v0, %v4318_v1 }
  0xbe   : > { %1586 = vmatmul.bf16.gmra.mxu1 %v6138_v60  ;;  %1770 = vmatpush.bf16.msra.mxu0 %v4065_v30  ;;  %v4974_v30 = vld [vmem:[%s5923_s16 + $0x114] sm:$0xf]  ;;  %v4233_v16 = vor.u32 %v5004_v12, %v4230_v15  ;;  %v4613_v12 = vor.u32 %v5099_v6, %v4612_v2  ;;  %v4540_v15 = vld [vmem:[%s5930_s4 + $0x60] sm:$0xf] }
  0xbf   : > { %1615 = vmatmul.bf16.gmra.mxu2 %v6140_v61  ;;  %1799 = vmatpush.bf16.msra.mxu1 %v4129_v35  ;;  %v4113_v34 = vor.u32 %v4974_v30, %v4110_v31  ;;  %v4257_v35 = vor.u32 %v5010_v28, %v4254_v33  ;;  %v4366_v28 = vld [vmem:[%s5923_s16 + $0x318] sm:$0xf0]  ;;  %v5032_v30 = vld [vmem:[%s5923_s16 + $0x2e4] sm:$0xf]  ;;  %v4342_v31 = vld [vmem:[%s5923_s16 + $0x2e8] sm:$0xf0] }
  0xc0   : > { %1644 = vmatmul.bf16.gmra.mxu3 %v6142_v62  ;;  %1828 = vmatpush.bf16.msra.mxu2 %v4193_v22  ;;  %v4350_v22 = vld [vmem:[%s5923_s16 + $0x2f8] sm:$0xf0]  ;;  %v3960_v33 = vld [vmem:[#allocation7 + $0xb8] sm:$0xf]  ;;  %v4345_v36 = vor.u32 %v5032_v30, %v4342_v31 }
  0xc1   : > { %1857 = vmatpush.bf16.msra.mxu3 %v4257_v35  ;;  %v4353_v23 = vor.u32 %v5034_v20, %v4350_v22  ;;  %v4935_v35 = vld [vmem:[#allocation7 + $0xbc] sm:$0xf] }
  0xc3   : > { %1800 = vmatpush.bf16.msra.mxu1 %v4121_v63  ;;  %v4931_v63 = vld [vmem:[#allocation7 + $0x98] sm:$0xf0] }
  0xc4   : > { %1829 = vmatpush.bf16.msra.mxu2 %v4185_v42  ;;  %v6224_v7 = vor.u32 %v4931_v63, %v3932_v58 }
  0xc7   : > { %1801 = vmatpush.bf16.msra.mxu1 %v4113_v34  ;;  %v4938_v34 = vld [vmem:[#allocation7 + $0xd0] sm:$0xf0] }
  0xc8   : > { %v6243_v42 = vor.u32 %v4938_v34, %v3960_v33  ;;  %v4532_v33 = vld [vmem:[%s5930_s4 + $0x50] sm:$0xf]  ;;  %v5079_v34 = vld [vmem:[%s5930_s4 + $0x54] sm:$0xf0] }
  0xcd   : > { %1658 = vmatmul.bf16.vlgmr.msrb.gmra.mxu0 %v6156_v17 }
  0xce   : > { %1687 = vmatmul.bf16.vlgmr.msrb.gmra.mxu1 %v6158_v18 }
  0xcf   : > { %4370 = vmatmul.msk.bf16.vlgmr.msrb.gmra.mxu2 %vm1521_vm0, %v6160_v19 }
  0xd0   : > { %1745 = vmatmul.bf16.vlgmr.msrb.gmra.mxu3 %v6023_v47  ;;  %v4960_v47 = vld [vmem:[%s5923_s16 + $0xa4] sm:$0xf] }
  0xd1   : > { %v4057_v48 = vor.u32 %v4960_v47, %v4054_v45  ;;  %v4041_v47 = vor.u32 %v4956_v43, %v4038_v44  ;;  %v4990_v45 = vld [vmem:[%s5923_s16 + $0x194] sm:$0xf] }
  0xd2   : > { %v4177_v49 = vor.u32 %v4990_v45, %v4174_v46  ;;  %v5030_v44 = vld [vmem:[%s5923_s16 + $0x2d4] sm:$0xf]  ;;  %v5028_v46 = vld [vmem:[%s5923_s16 + $0x2c4] sm:$0xf] }
  0xd3   : > { %1771 = vmatpush.bf16.msra.mxu0 %v4057_v48  ;;  %v4972_v48 = vld [vmem:[%s5923_s16 + $0x104] sm:$0xf] }
  0xd4   : > { %v4105_v54 = vor.u32 %v4972_v48, %v4102_v50  ;;  %1830 = vmatpush.bf16.msra.mxu2 %v4177_v49  ;;  %v4326_v48 = vld [vmem:[%s5923_s16 + $0x2c8] sm:$0xf0] }
  0xd5   : > { %v4329_v50 = vor.u32 %v5028_v46, %v4326_v48  ;;  %v4524_v48 = vld [vmem:[%s5930_s4 + $0x40] sm:$0xf] }
  0xd6   : > { %1802 = vmatpush.bf16.msra.mxu1 %v4105_v54 }
  0xd7   : > { %1772 = vmatpush.bf16.msra.mxu0 %v4049_v29  ;;  %v4369_v29 = vor.u32 %v5038_v27, %v4366_v28  ;;  %v5097_v27 = vld [vmem:[%s5930_s4 + $0xe4] sm:$0xf0] }
  0xd8   : > { %1831 = vmatpush.bf16.msra.mxu2 %v4169_v8 }
  0xda   : > { %1917 = vmatpush.bf16.msrb.mxu1 %v4369_v29 }
  0xdb   : > { %1773 = vmatpush.bf16.msra.mxu0 %v4041_v47  ;;  %v4334_v47 = vld [vmem:[%s5923_s16 + $0x2d8] sm:$0xf0] }
  0xdc   : > { %v4337_v45 = vor.u32 %v5030_v44, %v4334_v47  ;;  %v4596_v47 = vld [vmem:[%s5930_s4 + $0xd0] sm:$0xf] }
  0xdd   : > { %1663 = vmatmul.bf16.gmra.mxu0 %v6189_v10 }
  0xde   : > { %1692 = vmatmul.bf16.gmra.mxu1 %v6193_v13 }
  0xdf   : > { %4371 = vmatmul.msk.bf16.gmra.mxu2 %vm1521_vm0, %v6195_v14  ;;  %1882 = vmatpush.bf16.msrb.mxu0 %v4353_v23  ;;  %v4604_v23 = vld [vmem:[%s5930_s4 + $0xe0] sm:$0xf] }
  0xe0   : > { %1750 = vmatmul.bf16.gmra.mxu3 %v6067_v32  ;;  %v4246_v32 = vld [vmem:[%s5923_s16 + $0x228] sm:$0xf0]  ;;  %v4605_v30 = vor.u32 %v5097_v27, %v4604_v23 }
  0xe1   : > { %v4249_v53 = vor.u32 %v5008_v40, %v4246_v32  ;;  %v3968_v40 = vld [vmem:[#allocation7 + $0xc0] sm:$0xf]  ;;  %v6245_v32 = vor.u32 %v4935_v35, %v3962_v39  ;;  %v4310_v39 = vld [vmem:[%s5923_s16 + $0x2a8] sm:$0xf0] }
  0xe3   : > { %1858 = vmatpush.bf16.msra.mxu3 %v4249_v53  ;;  %1883 = vmatpush.bf16.msrb.mxu0 %v4345_v36  ;;  %v5024_v36 = vld [vmem:[%s5923_s16 + $0x2a4] sm:$0xf] }
  0xe4   : > { %v4313_v44 = vor.u32 %v5024_v36, %v4310_v39  ;;  %v4500_v36 = vld [vmem:[%s5930_s4 + $0x10] sm:$0xf]  ;;  %v5071_v39 = vld [vmem:[%s5930_s4 + $0x14] sm:$0xf0] }
  0xe7   : > { %1859 = vmatpush.bf16.msra.mxu3 %v4241_v4  ;;  %1884 = vmatpush.bf16.msrb.mxu0 %v4337_v45  ;;  %v5036_v4 = vld [vmem:[%s5923_s16 + $0x304] sm:$0xf]  ;;  %v5095_v45 = vld [vmem:[%s5930_s4 + $0xd4] sm:$0xf0] }
  0xe8   : > { %v4361_v8 = vor.u32 %v5036_v4, %v4358_v5  ;;  %v4597_v46 = vor.u32 %v5095_v45, %v4596_v47  ;;  %v4516_v4 = vld [vmem:[%s5930_s4 + $0x30] sm:$0xf]  ;;  %v5075_v5 = vld [vmem:[%s5930_s4 + $0x34] sm:$0xf0]  ;;  %v4294_v47 = vld [vmem:[%s5923_s16 + $0x288] sm:$0xf0]  ;;  %v4501_v45 = vor.u32 %v5071_v39, %v4500_v36 }
  0xe9   : > { %v1940_v36 = vld [vmem:[%s7556_s6] sm:$0xff] }
  0xea   : > { %1918 = vmatpush.bf16.msrb.mxu1 %v4361_v8  ;;  %v4517_v8 = vor.u32 %v5075_v5, %v4516_v4  ;;  %v5085_v4 = vld [vmem:[%s5930_s4 + $0x84] sm:$0xf0]  ;;  %1950 = vperm.xlu0 %5310, %v1940_v36   ;;  %v4796_v36 = vld [vmem:[%s5930_s4 + $0x260] sm:$0xf] }
  0xeb   : > { %1860 = vmatpush.bf16.msra.mxu3 %v4233_v16  ;;  %1885 = vmatpush.bf16.msrb.mxu0 %v4329_v50  ;;  %v5077_v50 = vld [vmem:[%s5930_s4 + $0x44] sm:$0xf0] }
  0xed   : > { %1668 = vmatmul.bf16.gmra.mxu0 %v6224_v7 }
  0xee   : > { %1697 = vmatmul.bf16.gmra.mxu1 %v6226_v9 }
  0xef   : > { %4372 = vmatmul.msk.bf16.gmra.mxu2 %vm1521_vm0, %v6228_v11  ;;  %1886 = vmatpush.bf16.msrb.mxu0 %v4321_v3 }
  0xf0   : > { %1755 = vmatmul.bf16.gmra.mxu3 %v6105_v21  ;;  %v4939_v21 = vld [vmem:[#allocation7 + $0xd8] sm:$0xf0] }
  0xf1   : > { %v6247_v43 = vor.u32 %v4939_v21, %v3968_v40  ;;  %2669 = vmatpush.bf16.msrb.mxu3 %v4613_v12  ;;  %v4533_v40 = vor.u32 %v5079_v34, %v4532_v33  ;;  %v5022_v12 = vld [vmem:[%s5923_s16 + $0x294] sm:$0xf] }
  0xf3   : > { %1887 = vmatpush.bf16.msrb.mxu0 %v4313_v44  ;;  %v5020_v44 = vld [vmem:[%s5923_s16 + $0x284] sm:$0xf] }
  0xf5   : > { %2670 = vmatpush.bf16.msrb.mxu3 %v4605_v30 }
  0xf6   : > { %v6258_v49 = vpop.permute.xlu0 %843 }
  0xf9   : > { %v6286_v21 = vpop.permute.xlu1 %853  ;;  %2671 = vmatpush.bf16.msrb.mxu3 %v4597_v46 }
  0xfa   : > { %v6320_v46 = vpop.permute.xlu2 %863 }
  0xfd   : > { %1673 = vmatmul.bf16.gmra.mxu0 %v6243_v42 }
  0xfe   : > { %1702 = vmatmul.bf16.gmra.mxu1 %v6245_v32 }
  0xff   : > { %4373 = vmatmul.msk.bf16.gmra.mxu2 %vm1521_vm0, %v6247_v43 }
 0x100   : > { %1760 = vmatmul.bf16.gmra.mxu3 %v6136_v59  ;;  %v5083_v59 = vld [vmem:[%s5930_s4 + $0x74] sm:$0xf0] }
 0x101   : > { %v4549_v63 = vor.u32 %v5083_v59, %v4548_v57 }
 0x103   : > { %2640 = vmatpush.bf16.msrb.mxu2 %v4549_v63  ;;  %v5093_v63 = vld [vmem:[%s5930_s4 + $0xc4] sm:$0xf0] }
 0x10a   : > { %v1543_v53 = vpop.f32.mrf.mxu0 }
 0x10b   : > { %v1544_v54 = vadd.f32 %v1543_v53, %v6258_v49  ;;  %v1572_v56 = vpop.f32.mrf.mxu1 }
 0x10d   : > { %v1573_v58 = vadd.f32 %v1572_v56, %v1544_v54  ;;  %1774 = vmatmul.bf16.vlgmr.msra.gmra.mxu0 %v6027_v51  ;;  %v6273_v51 = vpop.permute.xlu0 %848  ;;  %v4525_v54 = vor.u32 %v5077_v50, %v4524_v48  ;;  %v4297_v48 = vor.u32 %v5020_v44, %v4294_v47  ;;  %v4564_v50 = vld [vmem:[%s5930_s4 + $0x90] sm:$0xf] }
 0x10e   : > { %1803 = vmatmul.bf16.vlgmr.msra.gmra.mxu1 %v6029_v52  ;;  %v5081_v52 = vld [vmem:[%s5930_s4 + $0x64] sm:$0xf0] }
 0x10f   : > { %1832 = vmatmul.bf16.vlgmr.msra.gmra.mxu2 %v6033_v55  ;;  %v4541_v16 = vor.u32 %v5081_v52, %v4540_v15  ;;  %v4302_v15 = vld [vmem:[%s5923_s16 + $0x298] sm:$0xf0]  ;;  %v4580_v52 = vld [vmem:[%s5930_s4 + $0xb0] sm:$0xf] }
 0x110   : > { %1861 = vmatmul.bf16.vlgmr.msra.gmra.mxu3 %v6156_v17 }
 0x111   : > { %2641 = vmatpush.bf16.msrb.mxu2 %v4541_v16  ;;  %v5091_v16 = vld [vmem:[%s5930_s4 + $0xb4] sm:$0xf0] }
 0x112   : > { %v1601_v55 = vpop.f32.mrf.mxu2  ;;  %v1545_v20 = vpop.f32.mrf.mxu0 }
 0x113   : > { %v1602_v17 = vadd.f32 %v1601_v55, %v1573_v58  ;;  %v1630_v22 = vpop.f32.mrf.mxu3  ;;  %v1546_v28 = vadd.f32 %v1545_v20, %v6273_v51  ;;  %v1574_v29 = vpop.f32.mrf.mxu1  ;;  %v4588_v58 = vld [vmem:[%s5930_s4 + $0xc0] sm:$0xf]  ;;  %v4305_v55 = vor.u32 %v5022_v12, %v4302_v15  ;;  %v4581_v20 = vor.u32 %v5091_v16, %v4580_v52  ;;  %v1941_v12 = vld [vmem:[%s7556_s6 + $0x8] sm:$0xff] }
 0x114   : > { %v4589_v3 = vor.u32 %v5093_v63, %v4588_v58  ;;  %1955 = vperm.xlu1 %5311, %v1941_v12  }
 0x115   : > { %v6280_v31 = vadd.f32 %v1630_v22, %v1602_v17  ;;  %v1575_v35 = vadd.f32 %v1574_v29, %v1546_v28  ;;  %2642 = vmatpush.bf16.msrb.mxu2 %v4533_v40  ;;  %v6307_v17 = vpop.permute.xlu1 %858  ;;  %v5073_v22 = vld [vmem:[%s5930_s4 + $0x24] sm:$0xf0]  ;;  %1888 = vmatpush.bf16.msrb.mxu0 %v4305_v55  ;;  %v4572_v28 = vld [vmem:[%s5930_s4 + $0xa0] sm:$0xf]  ;;  %v6338_v55 = vpop.permute.xlu2 %868 }
 0x116   : > { %2672 = vmatpush.bf16.msrb.mxu3 %v4589_v3  ;;  %v5089_v29 = vld [vmem:[%s5930_s4 + $0xa4] sm:$0xf0]  ;;  %v4556_v3 = vld [vmem:[%s5930_s4 + $0x80] sm:$0xf] }
 0x117   : > { %v4557_v15 = vor.u32 %v5085_v4, %v4556_v3 }
 0x119   : > { %2643 = vmatpush.bf16.msrb.mxu2 %v4525_v54  ;;  %1889 = vmatpush.bf16.msrb.mxu0 %v4297_v48 }
 0x11a   : > { %v1603_v53 = vpop.f32.mrf.mxu2  ;;  %v1548_v57 = vpop.f32.mrf.mxu0  ;;  %2673 = vmatpush.bf16.msrb.mxu3 %v4581_v20 }
 0x11b   : > { %v1604_v56 = vadd.f32 %v1603_v53, %v1575_v35  ;;  %v1632_v59 = vpop.f32.mrf.mxu3  ;;  %v1549_v0 = vadd.f32 %v1548_v57, %v6286_v21  ;;  %v1577_v1 = vpop.f32.mrf.mxu1  ;;  %v4573_v35 = vor.u32 %v5089_v29, %v4572_v28  ;;  %v5087_v53 = vld [vmem:[%s5930_s4 + $0x94] sm:$0xf0]  ;;  %v5069_v57 = vld [vmem:[%s5930_s4 + $0x4] sm:$0xf0] }
 0x11c   : > { %v4565_v54 = vor.u32 %v5087_v53, %v4564_v50 }
 0x11d   : > { %v6295_v2 = vadd.f32 %v1632_v59, %v1604_v56  ;;  %v1578_v6 = vadd.f32 %v1577_v1, %v1549_v0  ;;  %1779 = vmatmul.bf16.gmra.mxu0 %v6072_v37  ;;  %2644 = vmatpush.bf16.msrb.mxu2 %v4517_v8  ;;  %v4508_v37 = vld [vmem:[%s5930_s4 + $0x20] sm:$0xf] }
 0x11e   : > { %1808 = vmatmul.bf16.gmra.mxu1 %v6074_v38  ;;  %2674 = vmatpush.bf16.msrb.mxu3 %v4573_v35  ;;  %v4492_v56 = vld [vmem:[%s5930_s4] sm:$0xf] }
 0x11f   : > { %1837 = vmatmul.bf16.gmra.mxu2 %v6078_v41  ;;  %v4509_v41 = vor.u32 %v5073_v22, %v4508_v37  ;;  %v4493_v58 = vor.u32 %v5069_v57, %v4492_v56  ;;  %v1944_v35 = vld [vmem:[%s7556_s6 + $0x20] sm:$0xff]  ;;  %v5043_v56 = vld [vmem:[#allocation8 + $0x18] sm:$0xf0] }
 0x120   : > { %1866 = vmatmul.bf16.gmra.mxu3 %v6189_v10  ;;  %v5040_v57 = vld [vmem:[#allocation8 + $0x4] sm:$0xf] }
 0x121   : > { %2645 = vmatpush.bf16.msrb.mxu2 %v4509_v41 }
 0x122   : > { %v1606_v38 = vpop.f32.mrf.mxu2  ;;  %v1550_v27 = vpop.f32.mrf.mxu0  ;;  %2675 = vmatpush.bf16.msrb.mxu3 %v4565_v54 }
 0x123   : > { %v1607_v23 = vadd.f32 %v1606_v38, %v1578_v6  ;;  %v1635_v10 = vpop.f32.mrf.mxu3  ;;  %v1551_v30 = vadd.f32 %v1550_v27, %v6307_v17  ;;  %v1579_v33 = vpop.f32.mrf.mxu1 }
 0x125   : > { %v6314_v34 = vadd.f32 %v1635_v10, %v1607_v23  ;;  %v1580_v40 = vadd.f32 %v1579_v33, %v1551_v30  ;;  %2646 = vmatpush.bf16.msrb.mxu2 %v4501_v45 }
 0x126   : > { %2676 = vmatpush.bf16.msrb.mxu3 %v4557_v15  ;;  %v1946_v15 = vld [vmem:[%s7556_s6 + $0x30] sm:$0xff] }
 0x129   : > { %2647 = vmatpush.bf16.msrb.mxu2 %v4493_v58 }
 0x12a   : > { %v1608_v59 = vpop.f32.mrf.mxu2  ;;  %v1553_v0 = vpop.f32.mrf.mxu0 }
 0x12b   : > { %v1609_v63 = vadd.f32 %v1608_v59, %v1580_v40  ;;  %v1637_v1 = vpop.f32.mrf.mxu3  ;;  %v1554_v5 = vadd.f32 %v1553_v0, %v6320_v46  ;;  %v1582_v6 = vpop.f32.mrf.mxu1  ;;  %v4382_v59 = vld [vmem:[#allocation8 + $0x1c] sm:$0xf0] }
 0x12c   : > { %v6361_v40 = vpop.permute.xlu1 %878 }
 0x12d   : > { %v6329_v8 = vadd.f32 %v1637_v1, %v1609_v63  ;;  %v1583_v52 = vadd.f32 %v1582_v6, %v1554_v5  ;;  %1784 = vmatmul.bf16.gmra.mxu0 %v6109_v24  ;;  %v1943_v24 = vld [vmem:[%s7556_s6 + $0x18] sm:$0xff]  ;;  %v6375_v6 = vor.u32 %v5040_v57, %v4382_v59  ;;  %v4724_v59 = vld [vmem:[%s5930_s4 + $0x1d0] sm:$0xf] }
 0x12e   : > { %1813 = vmatmul.bf16.gmra.mxu1 %v6111_v25  ;;  %1965 = vperm.xlu1 %5311, %v1943_v24   ;;  %v5147_v24 = vld [vmem:[%s5930_s4 + $0x274] sm:$0xf0] }
 0x12f   : > { %1842 = vmatmul.bf16.gmra.mxu2 %v6113_v26  ;;  %v6346_v26 = vpop.permute.xlu0 %873  ;;  %v5111_v57 = vld [vmem:[%s5930_s4 + $0x154] sm:$0xf0] }
 0x130   : > { %1871 = vmatmul.bf16.gmra.mxu3 %v6224_v7 }
 0x132   : > { %v1611_v16 = vpop.f32.mrf.mxu2  ;;  %v1555_v37 = vpop.f32.mrf.mxu0 }
 0x133   : > { %v1612_v20 = vadd.f32 %v1611_v16, %v1583_v52  ;;  %v1640_v22 = vpop.f32.mrf.mxu3  ;;  %v1556_v38 = vadd.f32 %v1555_v37, %v6338_v55  ;;  %v1584_v41 = vpop.f32.mrf.mxu1  ;;  %v4676_v52 = vld [vmem:[%s5930_s4 + $0x170] sm:$0xf]  ;;  %v5115_v16 = vld [vmem:[%s5930_s4 + $0x174] sm:$0xf0] }
 0x134   : > { %v4740_v37 = vld [vmem:[%s5930_s4 + $0x1f0] sm:$0xf] }
 0x135   : > { %v6341_v23 = vadd.f32 %v1640_v22, %v1612_v20  ;;  %v1585_v25 = vadd.f32 %v1584_v41, %v1556_v38  ;;  %v5131_v22 = vld [vmem:[%s5930_s4 + $0x1f4] sm:$0xf0]  ;;  %v4804_v38 = vld [vmem:[%s5930_s4 + $0x270] sm:$0xf] }
 0x136   : > { %1970 = vperm.xlu1 %5311, %v1944_v35   ;;  %v4741_v41 = vor.u32 %v5131_v22, %v4740_v37  ;;  %v5129_v35 = vld [vmem:[%s5930_s4 + $0x1e4] sm:$0xf0]  ;;  %v4410_v37 = vld [vmem:[#allocation8 + $0x54] sm:$0xf0] }
 0x138   : > { %2727 = vmatpush.bf16.msra.mxu1 %v4741_v41  ;;  %v5109_v41 = vld [vmem:[%s5930_s4 + $0x144] sm:$0xf0] }
 0x13a   : > { %v1613_v7 = vpop.f32.mrf.mxu2  ;;  %v1558_v10 = vpop.f32.mrf.mxu0 }
 0x13b   : > { %v1614_v27 = vadd.f32 %v1613_v7, %v1585_v25  ;;  %v1642_v28 = vpop.f32.mrf.mxu3  ;;  %v1559_v29 = vadd.f32 %v1558_v10, %v6346_v26  ;;  %v1587_v30 = vpop.f32.mrf.mxu1  ;;  %v4868_v25 = vld [vmem:[%s5930_s4 + $0x2f0] sm:$0xf]  ;;  %v5163_v7 = vld [vmem:[%s5930_s4 + $0x2f4] sm:$0xf0]  ;;  %v4668_v10 = vld [vmem:[%s5930_s4 + $0x160] sm:$0xf] }
 0x13d   : > { %v6349_v33 = vadd.f32 %v1642_v28, %v1614_v27  ;;  %v1588_v39 = vadd.f32 %v1587_v30, %v1559_v29  ;;  %1789 = vmatmul.bf16.gmra.mxu0 %v6138_v60  ;;  %v1945_v60 = vld [vmem:[%s7556_s6 + $0x28] sm:$0xff]  ;;  %v4869_v27 = vor.u32 %v5163_v7, %v4868_v25 }
 0x13e   : > { %1818 = vmatmul.bf16.gmra.mxu1 %v6140_v61  ;;  %v1942_v61 = vld [vmem:[%s7556_s6 + $0x10] sm:$0xff]  ;;  %1975 = vperm.xlu1 %5311, %v1945_v60   ;;  %v5113_v28 = vld [vmem:[%s5930_s4 + $0x164] sm:$0xf0] }
 0x13f   : > { %1847 = vmatmul.bf16.gmra.mxu2 %v6142_v62  ;;  %1960 = vperm.xlu0 %5310, %v1942_v61   ;;  %v4669_v30 = vor.u32 %v5113_v28, %v4668_v10  ;;  %v5161_v60 = vld [vmem:[%s5930_s4 + $0x2e4] sm:$0xf0] }
 0x140   : > { %1876 = vmatmul.bf16.gmra.mxu3 %v6243_v42  ;;  %v4380_v42 = vld [vmem:[#allocation8] sm:$0xf]  ;;  %v5125_v7 = vld [vmem:[%s5930_s4 + $0x1c4] sm:$0xf0] }
 0x141   : > { %v6372_v3 = vor.u32 %v5043_v56, %v4380_v42  ;;  %2785 = vmatpush.bf16.msra.mxu3 %v4869_v27  ;;  %v4660_v56 = vld [vmem:[%s5930_s4 + $0x150] sm:$0xf]  ;;  %v4780_v27 = vld [vmem:[%s5930_s4 + $0x240] sm:$0xf]  ;;  %v5141_v10 = vld [vmem:[%s5930_s4 + $0x244] sm:$0xf0] }
 0x142   : > { %v1616_v44 = vpop.f32.mrf.mxu2  ;;  %v1560_v45 = vpop.f32.mrf.mxu0 }
 0x143   : > { %v1617_v47 = vadd.f32 %v1616_v44, %v1588_v39  ;;  %v1645_v48 = vpop.f32.mrf.mxu3  ;;  %v1561_v50 = vadd.f32 %v1560_v45, %v6361_v40  ;;  %v1589_v53 = vpop.f32.mrf.mxu1  ;;  %v5145_v39 = vld [vmem:[%s5930_s4 + $0x264] sm:$0xf0] }
 0x145   : > { %v6364_v54 = vadd.f32 %v1645_v48, %v1617_v47  ;;  %v1590_v62 = vadd.f32 %v1589_v53, %v1561_v50  ;;  %v4797_v50 = vor.u32 %v5145_v39, %v4796_v36  ;;  %v4860_v53 = vld [vmem:[%s5930_s4 + $0x2e0] sm:$0xf]  ;;  %v4781_v36 = vor.u32 %v5141_v10, %v4780_v27 }
 0x146   : > { %1980 = vperm.xlu1 %5311, %v1946_v15   ;;  %v4861_v42 = vor.u32 %v5161_v60, %v4860_v53  ;;  %v4844_v39 = vld [vmem:[%s5930_s4 + $0x2c0] sm:$0xf] }
 0x148   : > { %2786 = vmatpush.bf16.msra.mxu3 %v4861_v42  ;;  %v4708_v42 = vld [vmem:[%s5930_s4 + $0x1b0] sm:$0xf] }
 0x14a   : > { %v1618_v58 = vpop.f32.mrf.mxu2  ;;  %v1659_v1 = vpop.f32.mrf.mxu0 }
 0x14b   : > { %v1619_v63 = vadd.f32 %v1618_v58, %v1590_v62  ;;  %v1647_v0 = vpop.f32.mrf.mxu3  ;;  %v1660_v4 = vadd.f32 %v1659_v1, %v6280_v31  ;;  %v1688_v5 = vpop.f32.mrf.mxu1  ;;  %v4677_v31 = vor.u32 %v5115_v16, %v4676_v52  ;;  %v4788_v1 = vld [vmem:[%s5930_s4 + $0x250] sm:$0xf]  ;;  %v5159_v16 = vld [vmem:[%s5930_s4 + $0x2d4] sm:$0xf0] }
 0x14c   : > { %v4852_v52 = vld [vmem:[%s5930_s4 + $0x2d0] sm:$0xf] }
 0x14d   : > { %v6377_v12 = vadd.f32 %v1647_v0, %v1619_v63  ;;  %v1689_v20 = vadd.f32 %v1688_v5, %v1660_v4  ;;  %1890 = vmatmul.bf16.vlgmr.msrb.gmra.mxu0 %v6158_v18  ;;  %v4805_v18 = vor.u32 %v5147_v24, %v4804_v38  ;;  %v4661_v63 = vor.u32 %v5111_v57, %v4660_v56  ;;  %v5127_v0 = vld [vmem:[%s5930_s4 + $0x1d4] sm:$0xf0]  ;;  %v4652_v38 = vld [vmem:[%s5930_s4 + $0x140] sm:$0xf] }
 0x14e   : > { %4374 = vmatmul.msk.bf16.vlgmr.msrb.gmra.mxu1 %vm1521_vm0, %v6160_v19  ;;  %2698 = vmatpush.bf16.msra.mxu0 %v4677_v31  ;;  %v4732_v19 = vld [vmem:[%s5930_s4 + $0x1e0] sm:$0xf]  ;;  %v5143_v4 = vld [vmem:[%s5930_s4 + $0x254] sm:$0xf0]  ;;  %v5047_v31 = vld [vmem:[#allocation8 + $0x3c] sm:$0xf]  ;;  %v4853_v22 = vor.u32 %v5159_v16, %v4852_v52  ;;  %v4653_v25 = vor.u32 %v5109_v41, %v4652_v38 }
 0x14f   : > { %2648 = vmatmul.bf16.vlgmr.msrb.gmra.mxu2 %v6372_v3  ;;  %v4733_v48 = vor.u32 %v5129_v35, %v4732_v19  ;;  %v4408_v5 = vld [vmem:[#allocation8 + $0x38] sm:$0xf]  ;;  %v4789_v15 = vor.u32 %v5143_v4, %v4788_v1  ;;  %v4716_v24 = vld [vmem:[%s5930_s4 + $0x1c0] sm:$0xf]  ;;  %v6431_v53 = vor.u32 %v5047_v31, %v4410_v37  ;;  %v4836_v1 = vld [vmem:[%s5930_s4 + $0x2b0] sm:$0xf] }
 0x150   : > { %2677 = vmatmul.bf16.vlgmr.msrb.gmra.mxu3 %v6375_v6  ;;  %2756 = vmatpush.bf16.msra.mxu2 %v4805_v18  ;;  %v4717_v35 = vor.u32 %v5125_v7, %v4716_v24  ;;  %v5121_v16 = vld [vmem:[%s5930_s4 + $0x1a4] sm:$0xf0] }
 0x151   : > { %2728 = vmatpush.bf16.msra.mxu1 %v4733_v48  ;;  %2787 = vmatpush.bf16.msra.mxu3 %v4853_v22  ;;  %v5137_v31 = vld [vmem:[%s5930_s4 + $0x224] sm:$0xf0] }
 0x152   : > { %v1717_v29 = vpop.f32.mrf.mxu2  ;;  %v1661_v47 = vpop.f32.mrf.mxu0  ;;  %2699 = vmatpush.bf16.msra.mxu0 %v4669_v30 }
 0x153   : > { %v6401_v44 = vadd.f32 %v1717_v29, %v1689_v20  ;;  %v6403_v45 = vpop.f32.mrf.mxu3  ;;  %v1662_v61 = vadd.f32 %v1661_v47, %v6295_v2  ;;  %v1690_v62 = vpop.f32.mrf.mxu1  ;;  %v4725_v2 = vor.u32 %v5127_v0, %v4724_v59  ;;  %v5050_v20 = vld [vmem:[#allocation8 + $0x50] sm:$0xf0]  ;;  %v5157_v47 = vld [vmem:[%s5930_s4 + $0x2c4] sm:$0xf0]  ;;  %v5123_v59 = vld [vmem:[%s5930_s4 + $0x1b4] sm:$0xf0] }
 0x154   : > { %2757 = vmatpush.bf16.msra.mxu2 %v4797_v50  ;;  %v6426_v30 = vor.u32 %v5050_v20, %v4408_v5  ;;  %v4845_v60 = vor.u32 %v5157_v47, %v4844_v39  ;;  %v4636_v5 = vld [vmem:[%s5930_s4 + $0x120] sm:$0xf] }
 0x155   : > { %v1691_v58 = vadd.f32 %v1690_v62, %v1662_v61  ;;  %2729 = vmatpush.bf16.msra.mxu1 %v4725_v2  ;;  %v4644_v61 = vld [vmem:[%s5930_s4 + $0x130] sm:$0xf]  ;;  %v5107_v62 = vld [vmem:[%s5930_s4 + $0x134] sm:$0xf0]  ;;  %v5105_v2 = vld [vmem:[%s5930_s4 + $0x124] sm:$0xf0] }
 0x156   : > { %2700 = vmatpush.bf16.msra.mxu0 %v4661_v63  ;;  %v4645_v57 = vor.u32 %v5107_v62, %v4644_v61  ;;  %v4709_v63 = vor.u32 %v5123_v59, %v4708_v42  ;;  %2788 = vmatpush.bf16.msra.mxu3 %v4845_v60  ;;  %v4637_v52 = vor.u32 %v5105_v2, %v4636_v5  ;;  %v4764_v20 = vld [vmem:[%s5930_s4 + $0x220] sm:$0xf]  ;;  %v5135_v60 = vld [vmem:[%s5930_s4 + $0x214] sm:$0xf0]  ;;  %v4820_v42 = vld [vmem:[%s5930_s4 + $0x290] sm:$0xf] }
 0x157   : > { %v4765_v24 = vor.u32 %v5137_v31, %v4764_v20  ;;  %v5054_v59 = vld [vmem:[#allocation8 + $0x74] sm:$0xf]  ;;  %v5117_v5 = vld [vmem:[%s5930_s4 + $0x184] sm:$0xf0]  ;;  %v4748_v2 = vld [vmem:[%s5930_s4 + $0x200] sm:$0xf] }
 0x158   : > { %2758 = vmatpush.bf16.msra.mxu2 %v4789_v15 }
 0x159   : > { %2730 = vmatpush.bf16.msra.mxu1 %v4717_v35  ;;  %v5103_v35 = vld [vmem:[%s5930_s4 + $0x114] sm:$0xf0] }
 0x15a   : > { %v1719_v18 = vpop.f32.mrf.mxu2  ;;  %v1664_v19 = vpop.f32.mrf.mxu0  ;;  %2701 = vmatpush.bf16.msra.mxu0 %v4653_v25  ;;  %v5153_v25 = vld [vmem:[%s5930_s4 + $0x2a4] sm:$0xf0] }
 0x15b   : > { %v6422_v28 = vadd.f32 %v1719_v18, %v1691_v58  ;;  %v6424_v29 = vpop.f32.mrf.mxu3  ;;  %v1665_v48 = vadd.f32 %v1664_v19, %v6314_v34  ;;  %v1693_v50 = vpop.f32.mrf.mxu1  ;;  %v4772_v34 = vld [vmem:[%s5930_s4 + $0x230] sm:$0xf]  ;;  %v5139_v58 = vld [vmem:[%s5930_s4 + $0x234] sm:$0xf0]  ;;  %v4828_v18 = vld [vmem:[%s5930_s4 + $0x2a0] sm:$0xf] }
 0x15c   : > { %2759 = vmatpush.bf16.msra.mxu2 %v4781_v36  ;;  %v4773_v0 = vor.u32 %v5139_v58, %v4772_v34  ;;  %v4829_v10 = vor.u32 %v5153_v25, %v4828_v18  ;;  %v4628_v19 = vld [vmem:[%s5930_s4 + $0x110] sm:$0xf] }
 0x15d   : > { %7601 = vst [vmem:[#allocation26_spill] sm:$0xff] %v6422_v28  ;;  %v1694_v56 = vadd.f32 %v1693_v50, %v1665_v48  ;;  %1895 = vmatmul.bf16.gmra.mxu0 %v6193_v13  ;;  %v5155_v13 = vld [vmem:[%s5930_s4 + $0x2b4] sm:$0xf0]  ;;  %2731 = vmatpush.bf16.msra.mxu1 %v4709_v63  ;;  %v4692_v36 = vld [vmem:[%s5930_s4 + $0x190] sm:$0xf]  ;;  %v4629_v47 = vor.u32 %v5103_v35, %v4628_v19 }
 0x15e   : > { %4375 = vmatmul.msk.bf16.gmra.mxu1 %vm1521_vm0, %v6195_v14  ;;  %2702 = vmatpush.bf16.msra.mxu0 %v4645_v57  ;;  %v4837_v4 = vor.u32 %v5155_v13, %v4836_v1  ;;  %v4700_v14 = vld [vmem:[%s5930_s4 + $0x1a0] sm:$0xf]  ;;  %v5119_v48 = vld [vmem:[%s5930_s4 + $0x194] sm:$0xf0]  ;;  %v4756_v50 = vld [vmem:[%s5930_s4 + $0x210] sm:$0xf] }
 0x15f   : > { %2653 = vmatmul.bf16.gmra.mxu2 %v6426_v30  ;;  %v4701_v41 = vor.u32 %v5121_v16, %v4700_v14  ;;  %v4693_v61 = vor.u32 %v5119_v48, %v4692_v36  ;;  %v4757_v62 = vor.u32 %v5135_v60, %v4756_v50  ;;  %v5057_v57 = vld [vmem:[#allocation8 + $0x88] sm:$0xf0]  ;;  %v4438_v34 = vld [vmem:[#allocation8 + $0x8c] sm:$0xf0]  ;;  %v4620_v63 = vld [vmem:[%s5930_s4 + $0x100] sm:$0xf] }
 0x160   : > { %2682 = vmatmul.bf16.gmra.mxu3 %v6431_v53  ;;  %2760 = vmatpush.bf16.msra.mxu2 %v4773_v0  ;;  %v5101_v0 = vld [vmem:[%s5930_s4 + $0x104] sm:$0xf0]  ;;  %v4684_v1 = vld [vmem:[%s5930_s4 + $0x180] sm:$0xf]  ;;  %v5064_v50 = vld [vmem:[#allocation8 + $0xc0] sm:$0xf0] }
 0x161   : > { %2789 = vmatpush.bf16.msra.mxu3 %v4837_v4  ;;  %2732 = vmatpush.bf16.msra.mxu1 %v4701_v41  ;;  %v4621_v4 = vor.u32 %v5101_v0, %v4620_v63  ;;  %v5133_v14 = vld [vmem:[%s5930_s4 + $0x204] sm:$0xf0]  ;;  %v4685_v31 = vor.u32 %v5117_v5, %v4684_v1  ;;  %v4812_v41 = vld [vmem:[%s5930_s4 + $0x280] sm:$0xf]  ;;  %v5061_v60 = vld [vmem:[#allocation8 + $0xac] sm:$0xf] }
 0x162   : > { %v1722_v15 = vpop.f32.mrf.mxu2  ;;  %v1666_v22 = vpop.f32.mrf.mxu0  ;;  %2703 = vmatpush.bf16.msra.mxu0 %v4637_v52  ;;  %v4388_v5 = vld [vmem:[#allocation8 + $0x8] sm:$0xf] }
 0x163   : > { %v6452_v37 = vadd.f32 %v1722_v15, %v1694_v56  ;;  %v6454_v38 = vpop.f32.mrf.mxu3  ;;  %v1667_v7 = vadd.f32 %v1666_v22, %v6329_v8  ;;  %v1695_v27 = vpop.f32.mrf.mxu1  ;;  %v4436_v8 = vld [vmem:[#allocation8 + $0x70] sm:$0xf]  ;;  %v5151_v56 = vld [vmem:[%s5930_s4 + $0x294] sm:$0xf0]  ;;  %v4749_v22 = vor.u32 %v5133_v14, %v4748_v2  ;;  %v5044_v2 = vld [vmem:[#allocation8 + $0x20] sm:$0xf0] }
 0x164   : > { %2761 = vmatpush.bf16.msra.mxu2 %v4765_v24  ;;  %v4821_v58 = vor.u32 %v5151_v56, %v4820_v42  ;;  %v6477_v20 = vor.u32 %v5057_v57, %v4436_v8  ;;  %v5149_v24 = vld [vmem:[%s5930_s4 + $0x284] sm:$0xf0] }
 0x165   : > { %7602 = vst [vmem:[#allocation27_spill] sm:$0xff] %v6452_v37  ;;  %v1696_v39 = vadd.f32 %v1695_v27, %v1667_v7  ;;  %2790 = vmatpush.bf16.msra.mxu3 %v4829_v10  ;;  %2733 = vmatpush.bf16.msra.mxu1 %v4693_v61  ;;  %v6482_v7 = vor.u32 %v5054_v59, %v4438_v34  ;;  %v4466_v8 = vld [vmem:[#allocation8 + $0xc4] sm:$0xf0] }
 0x166   : > { %2704 = vmatpush.bf16.msra.mxu0 %v4629_v47  ;;  %v4813_v27 = vor.u32 %v5149_v24, %v4812_v41  ;;  %v6501_v34 = vor.u32 %v5061_v60, %v4466_v8  ;;  %v4390_v14 = vld [vmem:[#allocation8 + $0x24] sm:$0xf0]  ;;  %v4398_v41 = vld [vmem:[#allocation8 + $0x2c] sm:$0xf0]  ;;  %v4614_v60 = vld [vmem:[%s5930_s4 + $0xf8] sm:$0xf0] }
 0x168   : > { %2762 = vmatpush.bf16.msra.mxu2 %v4757_v62 }
 0x169   : > { %2791 = vmatpush.bf16.msra.mxu3 %v4821_v58  ;;  %2734 = vmatpush.bf16.msra.mxu1 %v4685_v31  ;;  %v5045_v31 = vld [vmem:[#allocation8 + $0x28] sm:$0xf0] }
 0x16a   : > { %v1724_v13 = vpop.f32.mrf.mxu2  ;;  %v1669_v52 = vpop.f32.mrf.mxu0  ;;  %2705 = vmatpush.bf16.msra.mxu0 %v4621_v4 }
 0x16b   : > { %v6473_v15 = vadd.f32 %v1724_v13, %v1696_v39  ;;  %v6475_v16 = vpop.f32.mrf.mxu3  ;;  %v1670_v18 = vadd.f32 %v1669_v52, %v6341_v23  ;;  %v1698_v25 = vpop.f32.mrf.mxu1  ;;  %v4396_v52 = vld [vmem:[#allocation8 + $0x10] sm:$0xf] }
 0x16c   : > { %2763 = vmatpush.bf16.msra.mxu2 %v4749_v22  ;;  %v5042_v22 = vld [vmem:[#allocation8 + $0x14] sm:$0xf] }
 0x16d   : > { %v1699_v10 = vadd.f32 %v1698_v25, %v1670_v18  ;;  %1900 = vmatmul.bf16.gmra.mxu0 %v6226_v9  ;;  %2792 = vmatpush.bf16.msra.mxu3 %v4813_v27  ;;  %v4464_v9 = vld [vmem:[#allocation8 + $0xa8] sm:$0xf]  ;;  %v6515_v18 = vor.u32 %v5044_v2, %v4388_v5 }
 0x16e   : > { %4376 = vmatmul.msk.bf16.gmra.mxu1 %vm1521_vm0, %v6228_v11  ;;  %v6498_v56 = vor.u32 %v5064_v50, %v4464_v9  ;;  %v5098_v9 = vld [vmem:[%s5930_s4 + $0xf4] sm:$0xf] }
 0x16f   : > { %2658 = vmatmul.bf16.gmra.mxu2 %v6477_v20  ;;  %v4617_v8 = vor.u32 %v5098_v9, %v4614_v60  ;;  %v4424_v60 = vld [vmem:[#allocation8 + $0x48] sm:$0xf] }
 0x170   : > { %2687 = vmatmul.bf16.gmra.mxu3 %v6482_v7 }
 0x171   : > { %2872 = vmatpush.bf16.msrb.mxu2 %v4617_v8 }
 0x172   : > { %v1727_v23 = vpop.f32.mrf.mxu2  ;;  %v1671_v35 = vpop.f32.mrf.mxu0 }
 0x173   : > { %v6489_v19 = vadd.f32 %v1727_v23, %v1699_v10  ;;  %v6491_v36 = vpop.f32.mrf.mxu3  ;;  %v1672_v39 = vadd.f32 %v1671_v35, %v6349_v33  ;;  %v1700_v47 = vpop.f32.mrf.mxu1  ;;  %v6525_v35 = vor.u32 %v5042_v22, %v4398_v41 }
 0x175   : > { %v1701_v48 = vadd.f32 %v1700_v47, %v1672_v39  ;;  %v5082_v47 = vld [vmem:[%s5930_s4 + $0x74] sm:$0xf] }
 0x17a   : > { %v1729_v11 = vpop.f32.mrf.mxu2  ;;  %v1674_v62 = vpop.f32.mrf.mxu0 }
 0x17b   : > { %v6494_v61 = vadd.f32 %v1729_v11, %v1701_v48  ;;  %v6496_v42 = vpop.f32.mrf.mxu3  ;;  %v1675_v57 = vadd.f32 %v1674_v62, %v6364_v54  ;;  %v1703_v59 = vpop.f32.mrf.mxu1  ;;  %v4550_v48 = vld [vmem:[%s5930_s4 + $0x78] sm:$0xf0]  ;;  %v5114_v11 = vld [vmem:[%s5930_s4 + $0x174] sm:$0xf] }
 0x17c   : > { %v4553_v50 = vor.u32 %v5082_v47, %v4550_v48  ;;  %v4678_v62 = vld [vmem:[%s5930_s4 + $0x178] sm:$0xf0]  ;;  %v5048_v47 = vld [vmem:[#allocation8 + $0x44] sm:$0xf]  ;;  %v4418_v48 = vld [vmem:[#allocation8 + $0x5c] sm:$0xf0] }
 0x17d   : > { %v1704_v33 = vadd.f32 %v1703_v59, %v1675_v57  ;;  %1905 = vmatmul.bf16.gmra.mxu0 %v6245_v32  ;;  %v5041_v32 = vld [vmem:[#allocation8 + $0xc] sm:$0xf]  ;;  %v4681_v57 = vor.u32 %v5114_v11, %v4678_v62  ;;  %v5080_v59 = vld [vmem:[%s5930_s4 + $0x64] sm:$0xf]  ;;  %v5110_v11 = vld [vmem:[%s5930_s4 + $0x154] sm:$0xf] }
 0x17e   : > { %4377 = vmatmul.msk.bf16.gmra.mxu1 %vm1521_vm0, %v6247_v43  ;;  %v1747_v43 = vadd.f32 %v6403_v45, %v6258_v49  ;;  %v6521_v10 = vor.u32 %v5041_v32, %v4390_v14  ;;  %v6523_v49 = vor.u32 %v5045_v31, %v4396_v52  ;;  %v5112_v14 = vld [vmem:[%s5930_s4 + $0x164] sm:$0xf]  ;;  %v4670_v52 = vld [vmem:[%s5930_s4 + $0x168] sm:$0xf0]  ;;  %v4662_v62 = vld [vmem:[%s5930_s4 + $0x158] sm:$0xf0] }
 0x17f   : > { %2663 = vmatmul.bf16.gmra.mxu2 %v6498_v56  ;;  %2843 = vmatpush.bf16.msrb.mxu1 %v4553_v50  ;;  %v4673_v41 = vor.u32 %v5112_v14, %v4670_v52  ;;  %v4598_v50 = vld [vmem:[%s5930_s4 + $0xd8] sm:$0xf0] }
 0x180   : > { %2692 = vmatmul.bf16.gmra.mxu3 %v6501_v34 }
 0x181   : > { %2901 = vmatpush.bf16.msrb.mxu3 %v4681_v57  ;;  %v1752_v57 = vadd.f32 %v6454_v38, %v6286_v21  ;;  %v6561_v21 = vor.u32 %v5048_v47, %v4418_v48  ;;  %v5074_v48 = vld [vmem:[%s5930_s4 + $0x34] sm:$0xf] }
 0x182   : > { %v1732_v58 = vpop.f32.mrf.mxu2  ;;  %v1676_v0 = vpop.f32.mrf.mxu0 }
 0x183   : > { %v6508_v63 = vadd.f32 %v1732_v58, %v1704_v33  ;;  %v6510_v1 = vpop.f32.mrf.mxu3  ;;  %v1677_v54 = vadd.f32 %v1676_v0, %v6377_v12  ;;  %v1705_v13 = vpop.f32.mrf.mxu1  ;;  %v4542_v33 = vld [vmem:[%s5930_s4 + $0x68] sm:$0xf0]  ;;  %v5096_v58 = vld [vmem:[%s5930_s4 + $0xe4] sm:$0xf]  ;;  %v1749_v0 = vadd.f32 %v6424_v29, %v6273_v51  ;;  %v4416_v51 = vld [vmem:[#allocation8 + $0x40] sm:$0xf] }
 0x184   : > { %v5051_v29 = vld [vmem:[#allocation8 + $0x58] sm:$0xf0] }
 0x185   : > { %v1706_v4 = vadd.f32 %v1705_v13, %v1677_v54  ;;  %v4545_v13 = vor.u32 %v5080_v59, %v4542_v33  ;;  %2902 = vmatpush.bf16.msrb.mxu3 %v4673_v41  ;;  %v5052_v59 = vld [vmem:[#allocation8 + $0x60] sm:$0xf0]  ;;  %v5049_v33 = vld [vmem:[#allocation8 + $0x4c] sm:$0xf] }
 0x186   : > { %v6563_v38 = vor.u32 %v5052_v59, %v4424_v60  ;;  %v5108_v41 = vld [vmem:[%s5930_s4 + $0x144] sm:$0xf] }
 0x187   : > { %2844 = vmatpush.bf16.msrb.mxu1 %v4545_v13  ;;  %v4526_v13 = vld [vmem:[%s5930_s4 + $0x48] sm:$0xf0] }
 0x188   : > { %7603 = vst [vmem:[#allocation28_spill] sm:$0xff] %v6563_v38 }
 0x18a   : > { %v1734_v24 = vpop.f32.mrf.mxu2  ;;  %v1775_v27 = vpop.f32.mrf.mxu0 }
 0x18b   : > { %v6517_v12 = vadd.f32 %v1734_v24, %v1706_v4  ;;  %v6519_v25 = vpop.f32.mrf.mxu3  ;;  %v1776_v45 = vadd.f32 %v1775_v27, %v1747_v43  ;;  %v1804_v23 = vpop.f32.mrf.mxu1  ;;  %v4606_v4 = vld [vmem:[%s5930_s4 + $0xe8] sm:$0xf0]  ;;  %v5078_v27 = vld [vmem:[%s5930_s4 + $0x54] sm:$0xf] }
 0x18c   : > { %v4609_v43 = vor.u32 %v5096_v58, %v4606_v4  ;;  %v4426_v58 = vld [vmem:[#allocation8 + $0x64] sm:$0xf0]  ;;  %v5092_v4 = vld [vmem:[%s5930_s4 + $0xc4] sm:$0xf] }
 0x18d   : > { %v1805_v39 = vadd.f32 %v1804_v23, %v1776_v45  ;;  %2706 = vmatmul.bf16.vlgmr.msra.gmra.mxu0 %v6515_v18  ;;  %v4534_v45 = vld [vmem:[%s5930_s4 + $0x58] sm:$0xf0]  ;;  %v5094_v23 = vld [vmem:[%s5930_s4 + $0xd4] sm:$0xf] }
 0x18e   : > { %2735 = vmatmul.bf16.vlgmr.msra.gmra.mxu1 %v6521_v10  ;;  %2873 = vmatpush.bf16.msrb.mxu2 %v4609_v43  ;;  %v4537_v9 = vor.u32 %v5078_v27, %v4534_v45  ;;  %v4601_v8 = vor.u32 %v5094_v23, %v4598_v50  ;;  %v4590_v43 = vld [vmem:[%s5930_s4 + $0xc8] sm:$0xf0]  ;;  %v6567_v45 = vor.u32 %v5049_v33, %v4426_v58  ;;  %v5090_v50 = vld [vmem:[%s5930_s4 + $0xb4] sm:$0xf]  ;;  %v5072_v33 = vld [vmem:[%s5930_s4 + $0x24] sm:$0xf] }
 0x18f   : > { %2764 = vmatmul.bf16.vlgmr.msra.gmra.mxu2 %v6523_v49  ;;  %v4654_v27 = vld [vmem:[%s5930_s4 + $0x148] sm:$0xf0] }
 0x190   : > { %2793 = vmatmul.bf16.vlgmr.msra.gmra.mxu3 %v6525_v35  ;;  %2845 = vmatpush.bf16.msrb.mxu1 %v4537_v9  ;;  %7604 = vst [vmem:[#allocation29_spill] sm:$0xff] %v6567_v45  ;;  %v4518_v9 = vld [vmem:[%s5930_s4 + $0x38] sm:$0xf0]  ;;  %v4510_v58 = vld [vmem:[%s5930_s4 + $0x28] sm:$0xf0] }
 0x191   : > { %v4521_v60 = vor.u32 %v5074_v48, %v4518_v9  ;;  %v4884_v48 = vld [vmem:[%s5930_s4 + $0x310] sm:$0xf]  ;;  %v5167_v9 = vld [vmem:[%s5930_s4 + $0x314] sm:$0xf0] }
 0x192   : > { %v1833_v54 = vpop.f32.mrf.mxu2  ;;  %v1777_v2 = vpop.f32.mrf.mxu0  ;;  %2874 = vmatpush.bf16.msrb.mxu2 %v4601_v8  ;;  %v4582_v8 = vld [vmem:[%s5930_s4 + $0xb8] sm:$0xf0] }
 0x193   : > { %v1834_v5 = vadd.f32 %v1833_v54, %v1805_v39  ;;  %v1862_v32 = vpop.f32.mrf.mxu3  ;;  %v1778_v31 = vadd.f32 %v1777_v2, %v1749_v0  ;;  %v1806_v22 = vpop.f32.mrf.mxu1  ;;  %v4665_v0 = vor.u32 %v5110_v11, %v4662_v62  ;;  %v5076_v54 = vld [vmem:[%s5930_s4 + $0x44] sm:$0xf]  ;;  %v6558_v2 = vor.u32 %v5051_v29, %v4416_v51  ;;  %v5106_v62 = vld [vmem:[%s5930_s4 + $0x134] sm:$0xf] }
 0x194   : > { %v4585_v11 = vor.u32 %v5090_v50, %v4582_v8  ;;  %v5070_v50 = vld [vmem:[%s5930_s4 + $0x14] sm:$0xf]  ;;  %v4885_v8 = vor.u32 %v5167_v9, %v4884_v48  ;;  %v5084_v48 = vld [vmem:[%s5930_s4 + $0x84] sm:$0xf]  ;;  %v4558_v9 = vld [vmem:[%s5930_s4 + $0x88] sm:$0xf0] }
 0x195   : > { %v6545_v24 = vadd.f32 %v1862_v32, %v1834_v5  ;;  %v1807_v39 = vadd.f32 %v1806_v22, %v1778_v31  ;;  %v4529_v32 = vor.u32 %v5076_v54, %v4526_v13  ;;  %2903 = vmatpush.bf16.msrb.mxu3 %v4665_v0  ;;  %v4593_v22 = vor.u32 %v5092_v4, %v4590_v43  ;;  %v5088_v0 = vld [vmem:[%s5930_s4 + $0xa4] sm:$0xf] }
 0x196   : > { %v1754_v54 = vadd.f32 %v6475_v16, %v6307_v17  ;;  %v4513_v4 = vor.u32 %v5072_v33, %v4510_v58  ;;  %v4444_v17 = vld [vmem:[#allocation8 + $0x78] sm:$0xf]  ;;  %v5058_v16 = vld [vmem:[#allocation8 + $0x90] sm:$0xf0]  ;;  %v4452_v33 = vld [vmem:[#allocation8 + $0x80] sm:$0xf]  ;;  %2820 = vmatpush.bf16.msrb.mxu0 %v4885_v8 }
 0x197   : > { %2846 = vmatpush.bf16.msrb.mxu1 %v4529_v32  ;;  %2875 = vmatpush.bf16.msrb.mxu2 %v4593_v22  ;;  %v4638_v22 = vld [vmem:[%s5930_s4 + $0x128] sm:$0xf0] }
 0x19a   : > { %v1835_v5 = vpop.f32.mrf.mxu2  ;;  %v1780_v52 = vpop.f32.mrf.mxu0 }
 0x19b   : > { %v1836_v14 = vadd.f32 %v1835_v5, %v1807_v39  ;;  %v1864_v31 = vpop.f32.mrf.mxu3  ;;  %v1781_v51 = vadd.f32 %v1780_v52, %v1752_v57  ;;  %v1809_v29 = vpop.f32.mrf.mxu1  ;;  %v4657_v39 = vor.u32 %v5108_v41, %v4654_v27  ;;  %v4646_v57 = vld [vmem:[%s5930_s4 + $0x138] sm:$0xf0]  ;;  %2847 = vmatpush.bf16.msrb.mxu1 %v4521_v60  ;;  %2876 = vmatpush.bf16.msrb.mxu2 %v4585_v11  ;;  %v4574_v5 = vld [vmem:[%s5930_s4 + $0xa8] sm:$0xf0] }
 0x19c   : > { %v4649_v59 = vor.u32 %v5106_v62, %v4646_v57  ;;  %v4577_v52 = vor.u32 %v5088_v0, %v4574_v5  ;;  %v4502_v11 = vld [vmem:[%s5930_s4 + $0x18] sm:$0xf0]  ;;  %v5086_v62 = vld [vmem:[%s5930_s4 + $0x94] sm:$0xf]  ;;  %v5056_v5 = vld [vmem:[#allocation8 + $0x84] sm:$0xf] }
 0x19d   : > { %v6569_v23 = vadd.f32 %v1864_v31, %v1836_v14  ;;  %v1810_v47 = vadd.f32 %v1809_v29, %v1781_v51  ;;  %2711 = vmatmul.bf16.gmra.mxu0 %v6558_v2  ;;  %2904 = vmatpush.bf16.msrb.mxu3 %v4657_v39  ;;  %v5104_v31 = vld [vmem:[%s5930_s4 + $0x124] sm:$0xf]  ;;  %v5055_v29 = vld [vmem:[#allocation8 + $0x7c] sm:$0xf]  ;;  %v4446_v39 = vld [vmem:[#allocation8 + $0x94] sm:$0xf0]  ;;  %v4505_v58 = vor.u32 %v5070_v50, %v4502_v11 }
 0x19e   : > { %2740 = vmatmul.bf16.gmra.mxu1 %v6561_v21  ;;  %v4566_v57 = vld [vmem:[%s5930_s4 + $0x98] sm:$0xf0] }
 0x19f   : > { %2769 = vmatmul.bf16.gmra.mxu2 %v6563_v38  ;;  %2848 = vmatpush.bf16.msrb.mxu1 %v4513_v4  ;;  %v4569_v0 = vor.u32 %v5086_v62, %v4566_v57  ;;  %v5059_v4 = vld [vmem:[#allocation8 + $0x98] sm:$0xf0]  ;;  %v4561_v57 = vor.u32 %v5084_v48, %v4558_v9  ;;  %v4482_v9 = vld [vmem:[#allocation8 + $0xd4] sm:$0xf0] }
 0x1a0   : > { %2798 = vmatmul.bf16.gmra.mxu3 %v6567_v45  ;;  %2877 = vmatpush.bf16.msrb.mxu2 %v4577_v52  ;;  %v5165_v52 = vld [vmem:[%s5930_s4 + $0x304] sm:$0xf0]  ;;  %v6611_v11 = vor.u32 %v5059_v4, %v4452_v33  ;;  %v5063_v48 = vld [vmem:[#allocation8 + $0xbc] sm:$0xf]  ;;  %v6695_v45 = vpop.permute.xlu1 %1955 }
 0x1a1   : > { %2905 = vmatpush.bf16.msrb.mxu3 %v4649_v59  ;;  %v4630_v59 = vld [vmem:[%s5930_s4 + $0x118] sm:$0xf0] }
 0x1a2   : > { %v1838_v13 = vpop.f32.mrf.mxu2  ;;  %v1782_v43 = vpop.f32.mrf.mxu0  ;;  %7606 = vst [vmem:[#allocation31_spill] sm:$0xff] %v6611_v11 }
 0x1a3   : > { %v1839_v32 = vadd.f32 %v1838_v13, %v1810_v47  ;;  %v1867_v14 = vpop.f32.mrf.mxu3  ;;  %v1783_v41 = vadd.f32 %v1782_v43, %v1754_v54  ;;  %v1811_v27 = vpop.f32.mrf.mxu1  ;;  %v4641_v47 = vor.u32 %v5104_v31, %v4638_v22  ;;  %v5102_v54 = vld [vmem:[%s5930_s4 + $0x114] sm:$0xf]  ;;  %v1757_v13 = vadd.f32 %v6491_v36, %v6320_v46  ;;  %2849 = vmatpush.bf16.msrb.mxu1 %v4505_v58  ;;  %v5068_v31 = vld [vmem:[%s5930_s4 + $0x4] sm:$0xf]  ;;  %v4494_v36 = vld [vmem:[%s5930_s4 + $0x8] sm:$0xf0] }
 0x1a4   : > { %v4633_v43 = vor.u32 %v5102_v54, %v4630_v59  ;;  %2878 = vmatpush.bf16.msrb.mxu2 %v4569_v0  ;;  %v4497_v62 = vor.u32 %v5068_v31, %v4494_v36  ;;  %v5100_v58 = vld [vmem:[%s5930_s4 + $0x104] sm:$0xf]  ;;  %v4622_v54 = vld [vmem:[%s5930_s4 + $0x108] sm:$0xf0]  ;;  %v5062_v31 = vld [vmem:[#allocation8 + $0xb4] sm:$0xf] }
 0x1a5   : > { %v6589_v51 = vadd.f32 %v1867_v14, %v1839_v32  ;;  %v1812_v60 = vadd.f32 %v1811_v27, %v1783_v41  ;;  %v4454_v32 = vld [vmem:[#allocation8 + $0x9c] sm:$0xf0]  ;;  %2906 = vmatpush.bf16.msrb.mxu3 %v4641_v47  ;;  %v6604_v41 = vor.u32 %v5058_v16, %v4444_v17  ;;  %v6606_v27 = vor.u32 %v5055_v29, %v4446_v39  ;;  %v5066_v36 = vld [vmem:[#allocation8 + $0xd0] sm:$0xf0] }
 0x1a6   : > { %v4876_v14 = vld [vmem:[%s5930_s4 + $0x300] sm:$0xf]  ;;  %v6615_v17 = vor.u32 %v5056_v5, %v4454_v32  ;;  %v4625_v29 = vor.u32 %v5100_v58, %v4622_v54  ;;  %v6643_v58 = vor.u32 %v5063_v48, %v4482_v9  ;;  %v5146_v48 = vld [vmem:[%s5930_s4 + $0x274] sm:$0xf]  ;;  %v4806_v9 = vld [vmem:[%s5930_s4 + $0x278] sm:$0xf0] }
 0x1a7   : > { %7605 = vst [vmem:[#allocation30_spill] sm:$0xff] %v6606_v27  ;;  %v4877_v46 = vor.u32 %v5165_v52, %v4876_v14  ;;  %2850 = vmatpush.bf16.msrb.mxu1 %v4497_v62  ;;  %v4472_v14 = vld [vmem:[#allocation8 + $0xb0] sm:$0xf]  ;;  %v5065_v52 = vld [vmem:[#allocation8 + $0xc8] sm:$0xf0] }
 0x1a8   : > { %7607 = vst [vmem:[#allocation32_spill] sm:$0xff] %v6615_v17  ;;  %2879 = vmatpush.bf16.msrb.mxu2 %v4561_v57 }
 0x1a9   : > { %2821 = vmatpush.bf16.msrb.mxu0 %v4877_v46  ;;  %2907 = vmatpush.bf16.msrb.mxu3 %v4633_v43  ;;  %v4480_v46 = vld [vmem:[#allocation8 + $0xb8] sm:$0xf]  ;;  %7610 = vst [vmem:[#allocation35_spill] sm:$0xff] %v6643_v58 }
 0x1aa   : > { %v1840_v22 = vpop.f32.mrf.mxu2  ;;  %v1785_v8 = vpop.f32.mrf.mxu0  ;;  %v6639_v62 = vor.u32 %v5066_v36, %v4480_v46  ;;  %v4870_v46 = vld [vmem:[%s5930_s4 + $0x2f8] sm:$0xf0] }
 0x1ab   : > { %v1841_v50 = vadd.f32 %v1840_v22, %v1812_v60  ;;  %v1869_v47 = vpop.f32.mrf.mxu3  ;;  %v1786_v59 = vadd.f32 %v1785_v8, %v1757_v13  ;;  %v1814_v38 = vpop.f32.mrf.mxu1  ;;  %v1759_v60 = vadd.f32 %v6496_v42, %v6338_v55  ;;  %v4474_v22 = vld [vmem:[#allocation8 + $0xcc] sm:$0xf0]  ;;  %v6631_v55 = vor.u32 %v5065_v52, %v4472_v14  ;;  %v5130_v14 = vld [vmem:[%s5930_s4 + $0x1f4] sm:$0xf]  ;;  %v4742_v52 = vld [vmem:[%s5930_s4 + $0x1f8] sm:$0xf0] }
 0x1ac   : > { %7609 = vst [vmem:[#allocation34_spill] sm:$0xff] %v6639_v62 }
 0x1ad   : > { %v6617_v16 = vadd.f32 %v1869_v47, %v1841_v50  ;;  %v1815_v39 = vadd.f32 %v1814_v38, %v1786_v59  ;;  %2716 = vmatmul.bf16.gmra.mxu0 %v6604_v41  ;;  %2908 = vmatpush.bf16.msrb.mxu3 %v4625_v29  ;;  %v6637_v47 = vor.u32 %v5062_v31, %v4474_v22  ;;  %v5162_v31 = vld [vmem:[%s5930_s4 + $0x2f4] sm:$0xf] }
 0x1ae   : > { %2745 = vmatmul.bf16.gmra.mxu1 %v6606_v27  ;;  %v4745_v22 = vor.u32 %v5130_v14, %v4742_v52  ;;  %v4873_v36 = vor.u32 %v5162_v31, %v4870_v46  ;;  %v6677_v14 = vpop.permute.xlu0 %1950  ;;  %v4862_v52 = vld [vmem:[%s5930_s4 + $0x2e8] sm:$0xf0] }
 0x1af   : > { %2774 = vmatmul.bf16.gmra.mxu2 %v6611_v11  ;;  %7608 = vst [vmem:[#allocation33_spill] sm:$0xff] %v6637_v47 }
 0x1b0   : > { %2803 = vmatmul.bf16.gmra.mxu3 %v6615_v17  ;;  %2930 = vmatpush.bf16.msra.mxu0 %v4745_v22  ;;  %7611 = vst [vmem:[#allocation36_spill] sm:$0xff] %v6677_v14  ;;  %v5053_v17 = vld [vmem:[#allocation8 + $0x68] sm:$0xf0] }
 0x1b1   : > { %2988 = vmatpush.bf16.msra.mxu2 %v4873_v36  ;;  %v4798_v36 = vld [vmem:[%s5930_s4 + $0x268] sm:$0xf0] }
 0x1b2   : > { %v1843_v33 = vpop.f32.mrf.mxu2  ;;  %v1787_v13 = vpop.f32.mrf.mxu0 }
 0x1b3   : > { %v1844_v0 = vadd.f32 %v1843_v33, %v1815_v39  ;;  %v1872_v4 = vpop.f32.mrf.mxu3  ;;  %v1788_v5 = vadd.f32 %v1787_v13, %v1759_v60  ;;  %v1816_v32 = vpop.f32.mrf.mxu1  ;;  %v4404_v60 = vld [vmem:[#allocation8 + $0x18] sm:$0xf]  ;;  %v5046_v33 = vld [vmem:[#allocation8 + $0x30] sm:$0xf0] }
 0x1b4   : > { %v6659_v13 = vor.u32 %v5046_v33, %v4404_v60  ;;  %v4809_v60 = vor.u32 %v5146_v48, %v4806_v9  ;;  %v5128_v33 = vld [vmem:[%s5930_s4 + $0x1e4] sm:$0xf] }
 0x1b5   : > { %v6625_v38 = vadd.f32 %v1872_v4, %v1844_v0  ;;  %v6627_v43 = vadd.f32 %v1816_v32, %v1788_v5  ;;  %v5144_v48 = vld [vmem:[%s5930_s4 + $0x264] sm:$0xf] }
 0x1b6   : > { %2959 = vmatpush.bf16.msra.mxu1 %v4809_v60  ;;  %v5126_v60 = vld [vmem:[%s5930_s4 + $0x1d4] sm:$0xf] }
 0x1ba   : > { %v6629_v50 = vpop.f32.mrf.mxu2  ;;  %v6633_v42 = vpop.f32.mrf.mxu0 }
 0x1bb   : > { %v6635_v8 = vpop.f32.mrf.mxu3  ;;  %v6641_v57 = vpop.f32.mrf.mxu1 }
 0x1bd   : > { %2721 = vmatmul.bf16.gmra.mxu0 %v6631_v55 }
 0x1be   : > { %2750 = vmatmul.bf16.gmra.mxu1 %v6637_v47  ;;  %v4801_v47 = vor.u32 %v5144_v48, %v4798_v36  ;;  %v4790_v48 = vld [vmem:[%s5930_s4 + $0x258] sm:$0xf0]  ;;  %v5156_v36 = vld [vmem:[%s5930_s4 + $0x2c4] sm:$0xf] }
 0x1bf   : > { %2779 = vmatmul.bf16.gmra.mxu2 %v6639_v62  ;;  %v4734_v62 = vld [vmem:[%s5930_s4 + $0x1e8] sm:$0xf0] }
 0x1c0   : > { %2808 = vmatmul.bf16.gmra.mxu3 %v6643_v58  ;;  %v5160_v58 = vld [vmem:[%s5930_s4 + $0x2e4] sm:$0xf]  ;;  %2960 = vmatpush.bf16.msra.mxu1 %v4801_v47 }
 0x1c1   : > { %v4865_v22 = vor.u32 %v5160_v58, %v4862_v52  ;;  %v4854_v52 = vld [vmem:[%s5930_s4 + $0x2d8] sm:$0xf0] }
 0x1c2   : > { %v6649_v54 = vpop.f32.mrf.mxu2  ;;  %v6651_v59 = vpop.f32.mrf.mxu0 }
 0x1c3   : > { %v6653_v29 = vpop.f32.mrf.mxu3  ;;  %v6655_v39 = vpop.f32.mrf.mxu1  ;;  %2989 = vmatpush.bf16.msra.mxu2 %v4865_v22  ;;  %v4718_v22 = vld [vmem:[%s5930_s4 + $0x1c8] sm:$0xf0] }
 0x1ca   : > { %v6657_v0 = vpop.f32.mrf.mxu2  ;;  %v1891_v5 = vpop.f32.mrf.mxu0 }
 0x1cb   : > { %v6661_v4 = vpop.f32.mrf.mxu3  ;;  %v1920_v32 = vpop.f32.mrf.mxu1 }
 0x1cd   : > { %4890 = vmatmul.msk.bf16.vlgmr.msrb.gmra.mxu0 %vm1521_vm0, %v6659_v13 }
 0x1ce   : > { %2851 = vmatmul.bf16.vlgmr.msrb.gmra.mxu1 %v6372_v3 }
 0x1cf   : > { %2880 = vmatmul.bf16.vlgmr.msrb.gmra.mxu2 %v6375_v6  ;;  %v4737_v6 = vor.u32 %v5128_v33, %v4734_v62  ;;  %v4726_v62 = vld [vmem:[%s5930_s4 + $0x1d8] sm:$0xf0]  ;;  %v5158_v33 = vld [vmem:[%s5930_s4 + $0x2d4] sm:$0xf] }
 0x1d0   : > { %2909 = vmatmul.bf16.vlgmr.msrb.gmra.mxu3 %v6515_v18  ;;  %v4729_v58 = vor.u32 %v5126_v60, %v4726_v62  ;;  %v4857_v27 = vor.u32 %v5158_v33, %v4854_v52  ;;  %v4846_v62 = vld [vmem:[%s5930_s4 + $0x2c8] sm:$0xf0] }
 0x1d1   : > { %2931 = vmatpush.bf16.msra.mxu0 %v4737_v6  ;;  %v5142_v6 = vld [vmem:[%s5930_s4 + $0x254] sm:$0xf]  ;;  %v4849_v52 = vor.u32 %v5156_v36, %v4846_v62  ;;  %v4774_v62 = vld [vmem:[%s5930_s4 + $0x238] sm:$0xf0] }
 0x1d2   : > { %v2649_v3 = vpop.f32.mrf.mxu2  ;;  %v1893_v18 = vpop.f32.mrf.mxu0  ;;  %2990 = vmatpush.bf16.msra.mxu2 %v4857_v27 }
 0x1d3   : > { %v2650_v31 = vadd.f32 %v2649_v3, %v6677_v14  ;;  %v2678_v46 = vpop.f32.mrf.mxu3  ;;  %v1922_v9 = vpop.f32.mrf.mxu1  ;;  %v1892_v3 = vadd.f32 %v1891_v5, %v6545_v24  ;;  %v4432_v14 = vld [vmem:[#allocation8 + $0x50] sm:$0xf] }
 0x1d4   : > { %v6699_v5 = vor.u32 %v5053_v17, %v4432_v14 }
 0x1d5   : > { %v6683_v11 = vadd.f32 %v2678_v46, %v2650_v31  ;;  %2932 = vmatpush.bf16.msra.mxu0 %v4729_v58  ;;  %v4793_v31 = vor.u32 %v5142_v6, %v4790_v48  ;;  %v5124_v46 = vld [vmem:[%s5930_s4 + $0x1c4] sm:$0xf]  ;;  %v6697_v24 = vadd.f32 %v1920_v32, %v1892_v3  ;;  %v4782_v48 = vld [vmem:[%s5930_s4 + $0x248] sm:$0xf0]  ;;  %v1894_v32 = vadd.f32 %v1893_v18, %v6569_v23  ;;  %v4838_v18 = vld [vmem:[%s5930_s4 + $0x2b8] sm:$0xf0] }
 0x1d6   : > { %v4721_v60 = vor.u32 %v5124_v46, %v4718_v22  ;;  %v5140_v6 = vld [vmem:[%s5930_s4 + $0x244] sm:$0xf]  ;;  %2991 = vmatpush.bf16.msra.mxu2 %v4849_v52  ;;  %v4710_v46 = vld [vmem:[%s5930_s4 + $0x1b8] sm:$0xf0]  ;;  %v5154_v22 = vld [vmem:[%s5930_s4 + $0x2b4] sm:$0xf] }
 0x1d7   : > { %7612 = vst [vmem:[#allocation37_spill] sm:$0xff] %v6697_v24  ;;  %2961 = vmatpush.bf16.msra.mxu1 %v4793_v31  ;;  %v4785_v17 = vor.u32 %v5140_v6, %v4782_v48  ;;  %v5122_v31 = vld [vmem:[%s5930_s4 + $0x1b4] sm:$0xf]  ;;  %v3046_v36 = vadd.f32 %v6697_v24, %v6401_v44  ;;  %v5120_v52 = vld [vmem:[%s5930_s4 + $0x1a4] sm:$0xf] }
 0x1d8   : > { %v4713_v23 = vor.u32 %v5122_v31, %v4710_v46  ;;  %v4702_v6 = vld [vmem:[%s5930_s4 + $0x1a8] sm:$0xf0]  ;;  %v5152_v48 = vld [vmem:[%s5930_s4 + $0x2a4] sm:$0xf] }
 0x1d9   : > { %2933 = vmatpush.bf16.msra.mxu0 %v4721_v60  ;;  %v5138_v60 = vld [vmem:[%s5930_s4 + $0x234] sm:$0xf] }
 0x1da   : > { %v2651_v47 = vpop.f32.mrf.mxu2  ;;  %v1896_v27 = vpop.f32.mrf.mxu0 }
 0x1db   : > { %v2652_v33 = vadd.f32 %v2651_v47, %v6695_v45  ;;  %v2680_v58 = vpop.f32.mrf.mxu3  ;;  %v1925_v3 = vpop.f32.mrf.mxu1  ;;  %2962 = vmatpush.bf16.msra.mxu1 %v4785_v17  ;;  %v4841_v47 = vor.u32 %v5154_v22, %v4838_v18  ;;  %v5136_v18 = vld [vmem:[%s5930_s4 + $0x224] sm:$0xf] }
 0x1dc   : > { %v6727_v17 = vpop.permute.xlu0 %1960 }
 0x1dd   : > { %v6706_v14 = vadd.f32 %v2680_v58, %v2652_v33  ;;  %4891 = vmatmul.msk.bf16.gmra.mxu0 %vm1521_vm0, %v6699_v5  ;;  %v6720_v33 = vadd.f32 %v1922_v9, %v1894_v32  ;;  %v4777_v58 = vor.u32 %v5138_v60, %v4774_v62  ;;  %2992 = vmatpush.bf16.msra.mxu2 %v4841_v47  ;;  %v4766_v47 = vld [vmem:[%s5930_s4 + $0x228] sm:$0xf0] }
 0x1de   : > { %2856 = vmatmul.bf16.gmra.mxu1 %v6426_v30  ;;  %2934 = vmatpush.bf16.msra.mxu0 %v4713_v23  ;;  %v3047_v30 = vadd.f32 %v3046_v36, %v6422_v28  ;;  %v4705_v9 = vor.u32 %v5120_v52, %v4702_v6  ;;  %v6734_v36 = vpop.permute.xlu1 %1965  ;;  %v4694_v52 = vld [vmem:[%s5930_s4 + $0x198] sm:$0xf0]  ;;  %v5150_v6 = vld [vmem:[%s5930_s4 + $0x294] sm:$0xf] }
 0x1df   : > { %2885 = vmatmul.bf16.gmra.mxu2 %v6431_v53  ;;  %7613 = vst [vmem:[#allocation38_spill] sm:$0xff] %v6720_v33  ;;  %v1897_v53 = vadd.f32 %v1896_v27, %v6589_v51  ;;  %2963 = vmatpush.bf16.msra.mxu1 %v4777_v58  ;;  %v4769_v27 = vor.u32 %v5136_v18, %v4766_v47  ;;  %v5118_v58 = vld [vmem:[%s5930_s4 + $0x194] sm:$0xf]  ;;  %v4758_v18 = vld [vmem:[%s5930_s4 + $0x218] sm:$0xf0] }
 0x1e0   : > { %2914 = vmatmul.bf16.gmra.mxu3 %v6558_v2  ;;  %v4830_v2 = vld [vmem:[%s5930_s4 + $0x2a8] sm:$0xf0]  ;;  %v3048_v60 = vadd.f32 %v3047_v30, %v6720_v33  ;;  %v4697_v30 = vor.u32 %v5118_v58, %v4694_v52  ;;  %v4822_v33 = vld [vmem:[%s5930_s4 + $0x298] sm:$0xf0]  ;;  %v5134_v28 = vld [vmem:[%s5930_s4 + $0x214] sm:$0xf] }
 0x1e1   : > { %v4833_v23 = vor.u32 %v5152_v48, %v4830_v2  ;;  %v6742_v48 = vadd.f32 %v1925_v3, %v1897_v53  ;;  %v5060_v2 = vld [vmem:[#allocation8 + $0xa0] sm:$0xf0]  ;;  %v4761_v3 = vor.u32 %v5134_v28, %v4758_v18  ;;  %v4886_v53 = vld [vmem:[%s5930_s4 + $0x318] sm:$0xf0]  ;;  %v4686_v58 = vld [vmem:[%s5930_s4 + $0x188] sm:$0xf0] }
 0x1e2   : > { %v2654_v31 = vpop.f32.mrf.mxu2  ;;  %v1898_v46 = vpop.f32.mrf.mxu0  ;;  %2935 = vmatpush.bf16.msra.mxu0 %v4705_v9  ;;  %v4825_v9 = vor.u32 %v5150_v6, %v4822_v33  ;;  %v5148_v52 = vld [vmem:[%s5930_s4 + $0x284] sm:$0xf] }
 0x1e3   : > { %v2655_v32 = vadd.f32 %v2654_v31, %v6727_v17  ;;  %v2683_v22 = vpop.f32.mrf.mxu3  ;;  %v1927_v51 = vpop.f32.mrf.mxu1  ;;  %2993 = vmatpush.bf16.msra.mxu2 %v4833_v23  ;;  %v4460_v31 = vld [vmem:[#allocation8 + $0x88] sm:$0xf]  ;;  %2964 = vmatpush.bf16.msra.mxu1 %v4769_v27  ;;  %v1899_v23 = vadd.f32 %v1898_v46, %v6617_v16  ;;  %v5116_v27 = vld [vmem:[%s5930_s4 + $0x184] sm:$0xf]  ;;  %v4814_v16 = vld [vmem:[%s5930_s4 + $0x288] sm:$0xf0] }
 0x1e4   : > { %v6755_v24 = vor.u32 %v5060_v2, %v4460_v31  ;;  %v5132_v18 = vld [vmem:[%s5930_s4 + $0x204] sm:$0xf] }
 0x1e5   : > { %v6737_v62 = vadd.f32 %v2683_v22, %v2655_v32  ;;  %v5166_v32 = vld [vmem:[%s5930_s4 + $0x314] sm:$0xf]  ;;  %v3049_v22 = vadd.f32 %v3048_v60, %v6452_v37  ;;  %v4689_v60 = vor.u32 %v5116_v27, %v4686_v58  ;;  %v1762_v37 = vadd.f32 %v6510_v1, %v6346_v26 }
 0x1e6   : > { %2936 = vmatpush.bf16.msra.mxu0 %v4697_v30  ;;  %v4889_v47 = vor.u32 %v5166_v32, %v4886_v53  ;;  %v4750_v32 = vld [vmem:[%s5930_s4 + $0x208] sm:$0xf0]  ;;  %v5164_v53 = vld [vmem:[%s5930_s4 + $0x304] sm:$0xf] }
 0x1e7   : > { %2994 = vmatpush.bf16.msra.mxu2 %v4825_v9  ;;  %v3050_v33 = vadd.f32 %v3049_v22, %v6742_v48  ;;  %2965 = vmatpush.bf16.msra.mxu1 %v4761_v3  ;;  %v4817_v9 = vor.u32 %v5148_v52, %v4814_v16  ;;  %v6764_v22 = vadd.f32 %v1927_v51, %v1899_v23  ;;  %v4878_v3 = vld [vmem:[%s5930_s4 + $0x308] sm:$0xf0]  ;;  %v6771_v52 = vpop.permute.xlu1 %1970  ;;  %s7657_s4 = sld [smem:[#allocation39_spill]] }
 0x1e8   : > { %3023 = vmatpush.bf16.msra.mxu3 %v4889_v47  ;;  %v4753_v2 = vor.u32 %v5132_v18, %v4750_v32  ;;  %v4881_v58 = vor.u32 %v5164_v53, %v4878_v3  ;;  %v1846_v47 = vadd.f32 %v6629_v50, %v6627_v43  ;;  %v1791_v26 = vadd.f32 %v6633_v42, %v1762_v37 }
 0x1ea   : > { %v2656_v6 = vpop.f32.mrf.mxu2  ;;  %v1901_v46 = vpop.f32.mrf.mxu0  ;;  %2937 = vmatpush.bf16.msra.mxu0 %v4689_v60  ;;  %v1875_v43 = vadd.f32 %v6635_v8, %v1846_v47 }
 0x1eb   : > { %v2657_v28 = vadd.f32 %v2656_v6, %v6734_v36  ;;  %v2685_v30 = vpop.f32.mrf.mxu3  ;;  %v1930_v31 = vpop.f32.mrf.mxu1  ;;  %2995 = vmatpush.bf16.msra.mxu2 %v4817_v9  ;;  %v3051_v6 = vadd.f32 %v3050_v33, %v6473_v15  ;;  %v1902_v16 = vadd.f32 %v1901_v46, %v6625_v38  ;;  %2966 = vmatpush.bf16.msra.mxu1 %v4753_v2  ;;  %v4488_v46 = vld [vmem:[#allocation8 + $0xc0] sm:$0xf] }
 0x1ec   : > { %3024 = vmatpush.bf16.msra.mxu3 %v4881_v58 }
 0x1ed   : > { %v6767_v27 = vadd.f32 %v2685_v30, %v2657_v28  ;;  %4892 = vmatmul.msk.bf16.gmra.mxu0 %vm1521_vm0, %v6755_v24  ;;  %v3052_v1 = vadd.f32 %v3051_v6, %v6764_v22  ;;  %v6783_v50 = vadd.f32 %v1930_v31, %v1902_v16  ;;  %v5067_v30 = vld [vmem:[#allocation8 + $0xd8] sm:$0xf0]  ;;  %s7460_s10 = scalar_lea.vmem %s7657_s4, %s4911_s29 }
 0x1ee   : > { %2861 = vmatmul.bf16.gmra.mxu1 %v6477_v20  ;;  %v1820_v20 = vadd.f32 %v6641_v57, %v1791_v26  ;;  %v6801_v2 = vor.u32 %v5067_v30, %v4488_v46 }
 0x1ef   : > { %2890 = vmatmul.bf16.gmra.mxu2 %v6482_v7  ;;  %v3053_v7 = vadd.f32 %v3052_v1, %v6489_v19  ;;  %v6795_v18 = vpop.permute.xlu1 %1975 }
 0x1f0   : > { %2919 = vmatmul.bf16.gmra.mxu3 %v6604_v41  ;;  %v1764_v41 = vadd.f32 %v6519_v25, %v6361_v40  ;;  %v1849_v8 = vadd.f32 %v6649_v54, %v1820_v20 }
 0x1f1   : > { %v3054_v28 = vadd.f32 %v3053_v7, %v6783_v50 }
 0x1f2   : > { %v2659_v38 = vpop.f32.mrf.mxu2  ;;  %v1903_v23 = vpop.f32.mrf.mxu0  ;;  %v1793_v9 = vadd.f32 %v6651_v59, %v1764_v41  ;;  %v1878_v32 = vadd.f32 %v6653_v29, %v1849_v8 }
 0x1f3   : > { %v2660_v51 = vadd.f32 %v2659_v38, %v6771_v52  ;;  %v2688_v33 = vpop.f32.mrf.mxu3  ;;  %v1904_v60 = vadd.f32 %v1903_v23, %v1875_v43  ;;  %v1932_v37 = vpop.f32.mrf.mxu1  ;;  %v3055_v53 = vadd.f32 %v3054_v28, %v6494_v61 }
 0x1f4   : > { %v1822_v3 = vadd.f32 %v6655_v39, %v1793_v9 }
 0x1f5   : > { %v6788_v42 = vadd.f32 %v2688_v33, %v2660_v51  ;;  %v6797_v57 = vadd.f32 %v1932_v37, %v1904_v60 }
 0x1f6   : > { %v1851_v16 = vadd.f32 %v6657_v0, %v1822_v3 }
 0x1f7   : > { %v3056_v58 = vadd.f32 %v3055_v53, %v6797_v57  ;;  %v6818_v1 = vpop.permute.xlu1 %1980 }
 0x1f8   : > { %v1880_v39 = vadd.f32 %v6661_v4, %v1851_v16 }
 0x1f9   : > { %v3057_v26 = vadd.f32 %v3056_v58, %v6508_v63 }
 0x1fa   : > { %v2661_v31 = vpop.f32.mrf.mxu2  ;;  %v1906_v25 = vpop.f32.mrf.mxu0 }
 0x1fb   : > { %v2662_v40 = vadd.f32 %v2661_v31, %v6795_v18  ;;  %v2690_v54 = vpop.f32.mrf.mxu3  ;;  %v1907_v59 = vadd.f32 %v1906_v25, %v1878_v32  ;;  %v1935_v47 = vpop.f32.mrf.mxu1 }
 0x1fd   : > { %v6806_v6 = vadd.f32 %v2690_v54, %v2662_v40  ;;  %v6809_v29 = vadd.f32 %v1935_v47, %v1907_v59  ;;  %4893 = vmatmul.msk.bf16.gmra.mxu0 %vm1521_vm0, %v6801_v2  ;;  %v7614_v59 = vld [vmem:[#allocation29_spill] sm:$0xff]  ;;  %v7615_v47 = vld [vmem:[#allocation28_spill] sm:$0xff] }
 0x1fe   : > { %2866 = vmatmul.bf16.gmra.mxu1 %v6498_v56 }
 0x1ff   : > { %2895 = vmatmul.bf16.gmra.mxu2 %v6501_v34  ;;  %v3058_v43 = vadd.f32 %v3057_v26, %v6809_v29 }
 0x200   : > { %2924 = vmatmul.bf16.gmra.mxu3 %v6631_v55 }
 0x201   : > { %v3059_v7 = vadd.f32 %v3058_v43, %v6517_v12 }
 0x202   : > { %v2664_v0 = vpop.f32.mrf.mxu2  ;;  %v1908_v51 = vpop.f32.mrf.mxu0 }
 0x203   : > { %v2665_v38 = vadd.f32 %v2664_v0, %v6818_v1  ;;  %v2693_v23 = vpop.f32.mrf.mxu3  ;;  %v1909_v33 = vadd.f32 %v1908_v51, %v1880_v39  ;;  %v1937_v20 = vpop.f32.mrf.mxu1 }
 0x205   : > { %v6822_v56 = vadd.f32 %v2693_v23, %v2665_v38  ;;  %v6824_v34 = vadd.f32 %v1937_v20, %v1909_v33 }
 0x207   : > { %v3060_v55 = vadd.f32 %v3059_v7, %v6824_v34 }
 0x209   : > { %3061 = vadd.xlane.f32.xlu2 %v3060_v55 }
 0x20a   : > { %v6828_v4 = vpop.f32.mrf.mxu2  ;;  %v2707_v37 = vpop.f32.mrf.mxu0 }
 0x20b   : > { %v6830_v60 = vpop.f32.mrf.mxu3  ;;  %v2708_v41 = vadd.f32 %v2707_v37, %v6683_v11  ;;  %v2736_v8 = vpop.f32.mrf.mxu1 }
 0x20d   : > { %v2737_v28 = vadd.f32 %v2736_v8, %v2708_v41  ;;  %2938 = vmatmul.bf16.vlgmr.msra.gmra.mxu0 %v6521_v10  ;;  %v7617_v8 = vld [vmem:[#allocation32_spill] sm:$0xff] }
 0x20e   : > { %2967 = vmatmul.bf16.vlgmr.msra.gmra.mxu1 %v6523_v49 }
 0x20f   : > { %2996 = vmatmul.bf16.vlgmr.msra.gmra.mxu2 %v6525_v35 }
 0x210   : > { %4894 = vmatmul.msk.bf16.vlgmr.msra.gmra.mxu3 %vm1521_vm0, %v6659_v13 }
 0x212   : > { %v2765_v46 = vpop.f32.mrf.mxu2  ;;  %v2709_v9 = vpop.f32.mrf.mxu0 }
 0x213   : > { %v2766_v30 = vadd.f32 %v2765_v46, %v2737_v28  ;;  %v2794_v32 = vpop.f32.mrf.mxu3  ;;  %v2710_v53 = vadd.f32 %v2709_v9, %v6706_v14  ;;  %v2738_v31 = vpop.f32.mrf.mxu1  ;;  %v1947_v14 = vld [vmem:[%s7556_s6 + $0x38] sm:$0xff]  ;;  %v7618_v28 = vld [vmem:[#allocation31_spill] sm:$0xff] }
 0x215   : > { %v6839_v40 = vadd.f32 %v2794_v32, %v2766_v30  ;;  %v2739_v11 = vadd.f32 %v2738_v31, %v2710_v53 }
 0x21a   : > { %v2767_v25 = vpop.f32.mrf.mxu2  ;;  %v2712_v10 = vpop.f32.mrf.mxu0 }
 0x21b   : > { %v2768_v54 = vadd.f32 %v2767_v25, %v2739_v11  ;;  %v2796_v3 = vpop.f32.mrf.mxu3  ;;  %v2713_v35 = vadd.f32 %v2712_v10, %v6737_v62  ;;  %v2741_v49 = vpop.f32.mrf.mxu1 }
 0x21d   : > { %v6842_v58 = vadd.f32 %v2796_v3, %v2768_v54  ;;  %v2742_v13 = vadd.f32 %v2741_v49, %v2713_v35  ;;  %2943 = vmatmul.bf16.gmra.mxu0 %v6561_v21 }
 0x21e   : > { %2972 = vmatmul.bf16.gmra.mxu1 %v7615_v47  ;;  %v7621_v47 = vld [vmem:[#allocation34_spill] sm:$0xff] }
 0x21f   : > { %3001 = vmatmul.bf16.gmra.mxu2 %v7614_v59  ;;  %v7619_v59 = vld [vmem:[#allocation33_spill] sm:$0xff] }
 0x220   : > { %4895 = vmatmul.msk.bf16.gmra.mxu3 %vm1521_vm0, %v6699_v5  ;;  %v7616_v5 = vld [vmem:[#allocation30_spill] sm:$0xff] }
 0x221   : > { %1985 = vperm.xlu2 %5312, %v1947_v14  }
 0x222   : > { %v2770_v16 = vpop.f32.mrf.mxu2  ;;  %v2714_v26 = vpop.f32.mrf.mxu0 }
 0x223   : > { %v2771_v62 = vadd.f32 %v2770_v16, %v2742_v13  ;;  %v2799_v39 = vpop.f32.mrf.mxu3  ;;  %v2715_v43 = vadd.f32 %v2714_v26, %v6767_v27  ;;  %v2743_v0 = vpop.f32.mrf.mxu1 }
 0x225   : > { %v2800_v21 = vadd.f32 %v2799_v39, %v2771_v62  ;;  %v2744_v38 = vadd.f32 %v2743_v0, %v2715_v43 }
 0x22a   : > { %v2772_v51 = vpop.f32.mrf.mxu2  ;;  %v2717_v33 = vpop.f32.mrf.mxu0 }
 0x22b   : > { %v2773_v23 = vadd.f32 %v2772_v51, %v2744_v38  ;;  %v2801_v20 = vpop.f32.mrf.mxu3  ;;  %v2718_v7 = vadd.f32 %v2717_v33, %v6788_v42  ;;  %v2746_v55 = vpop.f32.mrf.mxu1 }
 0x22d   : > { %v2802_v37 = vadd.f32 %v2801_v20, %v2773_v23  ;;  %v2747_v41 = vadd.f32 %v2746_v55, %v2718_v7  ;;  %2948 = vmatmul.bf16.gmra.mxu0 %v7616_v5  ;;  %v7622_v23 = vld [vmem:[#allocation36_spill] sm:$0xff] }
 0x22e   : > { %2977 = vmatmul.bf16.gmra.mxu1 %v7618_v28 }
 0x22f   : > { %3006 = vmatmul.bf16.gmra.mxu2 %v7617_v8 }
 0x230   : > { %4896 = vmatmul.msk.bf16.gmra.mxu3 %vm1521_vm0, %v6755_v24  ;;  %v7620_v24 = vld [vmem:[#allocation35_spill] sm:$0xff] }
 0x232   : > { %v2775_v27 = vpop.f32.mrf.mxu2  ;;  %v2719_v30 = vpop.f32.mrf.mxu0 }
 0x233   : > { %v2776_v46 = vadd.f32 %v2775_v27, %v2747_v41  ;;  %v2804_v9 = vpop.f32.mrf.mxu3  ;;  %v2720_v32 = vadd.f32 %v2719_v30, %v6806_v6  ;;  %v2748_v53 = vpop.f32.mrf.mxu1 }
 0x235   : > { %v2805_v42 = vadd.f32 %v2804_v9, %v2776_v46  ;;  %v2749_v31 = vadd.f32 %v2748_v53, %v2720_v32 }
 0x23a   : > { %v2777_v11 = vpop.f32.mrf.mxu2  ;;  %v2722_v54 = vpop.f32.mrf.mxu0 }
 0x23b   : > { %v2778_v25 = vadd.f32 %v2777_v11, %v2749_v31  ;;  %v2806_v10 = vpop.f32.mrf.mxu3  ;;  %v2723_v3 = vadd.f32 %v2722_v54, %v6822_v56  ;;  %v2751_v35 = vpop.f32.mrf.mxu1 }
 0x23d   : > { %v2807_v49 = vadd.f32 %v2806_v10, %v2778_v25  ;;  %v2752_v13 = vadd.f32 %v2751_v35, %v2723_v3  ;;  %2953 = vmatmul.bf16.gmra.mxu0 %v7619_v59 }
 0x23e   : > { %2982 = vmatmul.bf16.gmra.mxu1 %v7621_v47 }
 0x23f   : > { %3011 = vmatmul.bf16.gmra.mxu2 %v7620_v24 }
 0x240   : > { %4897 = vmatmul.msk.bf16.gmra.mxu3 %vm1521_vm0, %v6801_v2 }
 0x242   : > { %v2780_v6 = vpop.f32.mrf.mxu2  ;;  %v6866_v16 = vpop.f32.mrf.mxu0 }
 0x243   : > { %v2781_v14 = vadd.f32 %v2780_v6, %v2752_v13  ;;  %v2809_v62 = vpop.f32.mrf.mxu3  ;;  %v6868_v26 = vpop.f32.mrf.mxu1 }
 0x245   : > { %v2810_v56 = vadd.f32 %v2809_v62, %v2781_v14 }
 0x24a   : > { %v6870_v39 = vpop.f32.mrf.mxu2  ;;  %v2823_v0 = vpop.f32.mrf.mxu0 }
 0x24b   : > { %v6872_v43 = vpop.f32.mrf.mxu3  ;;  %v6875_v38 = vadd.f32 %v2823_v0, %v6839_v40  ;;  %v2852_v51 = vpop.f32.mrf.mxu1 }
 0x24c   : > { %v2853_v33 = vadd.f32 %v2852_v51, %v7622_v23 }
 0x252   : > { %v2881_v2 = vpop.f32.mrf.mxu2  ;;  %v2825_v7 = vpop.f32.mrf.mxu0 }
 0x253   : > { %v2882_v20 = vadd.f32 %v2881_v2, %v2853_v33  ;;  %v2910_v55 = vpop.f32.mrf.mxu3  ;;  %v6879_v41 = vadd.f32 %v2825_v7, %v6842_v58  ;;  %v2854_v5 = vpop.f32.mrf.mxu1 }
 0x254   : > { %v2855_v28 = vadd.f32 %v2854_v5, %v6695_v45 }
 0x255   : > { %v6881_v8 = vadd.f32 %v2910_v55, %v2882_v20 }
 0x25a   : > { %v2883_v27 = vpop.f32.mrf.mxu2  ;;  %v2828_v30 = vpop.f32.mrf.mxu0 }
 0x25b   : > { %v2884_v46 = vadd.f32 %v2883_v27, %v2855_v28  ;;  %v2912_v40 = vpop.f32.mrf.mxu3  ;;  %v6884_v9 = vadd.f32 %v2828_v30, %v2800_v21  ;;  %v2857_v32 = vpop.f32.mrf.mxu1 }
 0x25c   : > { %v2858_v31 = vadd.f32 %v2857_v32, %v6727_v17  ;;  %v5708_v17 = vmov 16384.0  }
 0x25d   : > { %v6886_v53 = vadd.f32 %v2912_v40, %v2884_v46  ;;  %5313 = vrcp.f32 %v5708_v17 }
 0x262   : > { %v2886_v11 = vpop.f32.mrf.mxu2  ;;  %v2830_v58 = vpop.f32.mrf.mxu0 }
 0x263   : > { %v2887_v25 = vadd.f32 %v2886_v11, %v2858_v31  ;;  %v2915_v54 = vpop.f32.mrf.mxu3  ;;  %v6889_v10 = vadd.f32 %v2830_v58, %v2802_v37  ;;  %v2859_v3 = vpop.f32.mrf.mxu1 }
 0x264   : > { %v2860_v45 = vadd.f32 %v2859_v3, %v6734_v36  ;;  %v5314_v2 = vpop.eup %5313 }
 0x265   : > { %v6891_v35 = vadd.f32 %v2915_v54, %v2887_v25  ;;  %v3071_v7 = vmul.f32 16384.0, %v5314_v2  ;;  %vm3075_vm1 = vweird.f32 %v5314_v2 }
 0x267   : > { %v3072_v30 = vsub.f32 1.0, %v3071_v7 }
 0x269   : > { %v3073_v11 = vmul.f32 %v5314_v2, %v3072_v30 }
 0x26a   : > { %v2888_v13 = vpop.f32.mrf.mxu2  ;;  %v2833_v21 = vpop.f32.mrf.mxu0 }
 0x26b   : > { %v2889_v59 = vadd.f32 %v2888_v13, %v2860_v45  ;;  %v2917_v24 = vpop.f32.mrf.mxu3  ;;  %v6894_v47 = vadd.f32 %v2833_v21, %v2805_v42  ;;  %v2862_v6 = vpop.f32.mrf.mxu1 }
 0x26c   : > { %v2863_v62 = vadd.f32 %v2862_v6, %v6771_v52 }
 0x26d   : > { %v6896_v14 = vadd.f32 %v2917_v24, %v2889_v59 }
 0x272   : > { %v2891_v37 = vpop.f32.mrf.mxu2  ;;  %v2835_v51 = vpop.f32.mrf.mxu0 }
 0x273   : > { %v2892_v0 = vadd.f32 %v2891_v37, %v2863_v62  ;;  %v2920_v23 = vpop.f32.mrf.mxu3  ;;  %v6899_v33 = vadd.f32 %v2835_v51, %v2807_v49  ;;  %v2864_v36 = vpop.f32.mrf.mxu1 }
 0x274   : > { %v2865_v42 = vadd.f32 %v2864_v36, %v6795_v18 }
 0x275   : > { %v6901_v20 = vadd.f32 %v2920_v23, %v2892_v0 }
 0x27a   : > { %v2893_v55 = vpop.f32.mrf.mxu2  ;;  %v2838_v28 = vpop.f32.mrf.mxu0 }
 0x27b   : > { %v2894_v5 = vadd.f32 %v2893_v55, %v2865_v42  ;;  %v2922_v27 = vpop.f32.mrf.mxu3  ;;  %v6904_v46 = vadd.f32 %v2838_v28, %v2810_v56  ;;  %v6906_v52 = vpop.f32.mrf.mxu1  ;;  %v3074_v56 = vadd.f32 %v5314_v2, %v3073_v11 }
 0x27c   : > { %v3062_v49 = vpop.xlane.xlu2 %3061 }
 0x27d   : > { %v6908_v40 = vadd.f32 %v2922_v27, %v2894_v5  ;;  %v3063_v32 = vrot.slane %v3062_v49, 4  ;;  %v3076_v17 = vsel %vm3075_vm1, %v5314_v2, %v3074_v56 }
 0x27f   : > { %v3064_v31 = vadd.f32 %v3063_v32, %v3062_v49 }
 0x281   : > { %v3065_v25 = vrot.slane %v3064_v31, 2 }
 0x282   : > { %v6910_v58 = vpop.f32.mrf.mxu2  ;;  %v2840_v54 = vpop.f32.mrf.mxu0 }
 0x283   : > { %v6912_v18 = vpop.f32.mrf.mxu3  ;;  %v6914_v3 = vpop.f32.mrf.mxu1  ;;  %v3066_v45 = vadd.f32 %v3065_v25, %v3064_v31 }
 0x284   : > { %v6916_v13 = vpop.permute.xlu2 %1985 }
 0x285   : > { %v2667_v59 = vadd.f32 %v6828_v4, %v6916_v13  ;;  %v3067_v21 = vrot.slane %v3066_v45, 1 }
 0x287   : > { %v2696_v24 = vadd.f32 %v6830_v60, %v2667_v59  ;;  %v3068_v6 = vadd.f32 %v3067_v21, %v3066_v45 }
 0x289   : > { %v2725_v62 = vadd.f32 %v6866_v16, %v2696_v24  ;;  %5174 = vpush %v3068_v6 }
 0x28a   : > { %v6922_v37 = vpop.f32.mrf.mxu2  ;;  %5176 = vpush %v3076_v17  ;;  %v2939_v51 = vpop.f32.mrf.mxu0 }
 0x28b   : > { %v6924_v0 = vpop.f32.mrf.mxu3  ;;  %v2754_v23 = vadd.f32 %v6868_v26, %v2725_v62  ;;  %v2968_v36 = vpop.f32.mrf.mxu1  ;;  %v2940_v5 = vadd.f32 %v2939_v51, %v6881_v8 }
 0x28d   : > { %v2783_v7 = vadd.f32 %v6870_v39, %v2754_v23  ;;  %v2969_v27 = vadd.f32 %v2968_v36, %v2940_v5 }
 0x28f   : > { %v2812_v4 = vadd.f32 %v6872_v43, %v2783_v7 }
 0x291   : > { %v6929_v60 = vadd.f32 %v2840_v54, %v2812_v4 }
 0x292   : > { %v2997_v42 = vpop.f32.mrf.mxu2  ;;  %v2941_v2 = vpop.f32.mrf.mxu0 }
 0x293   : > { %v3026_v55 = vpop.f32.mrf.mxu3  ;;  %v2970_v16 = vpop.f32.mrf.mxu1  ;;  %v2998_v31 = vadd.f32 %v2997_v42, %v2969_v27  ;;  %v2942_v26 = vadd.f32 %v2941_v2, %v6886_v53 }
 0x295   : > { %v6933_v11 = vadd.f32 %v3026_v55, %v2998_v31  ;;  %v2971_v39 = vadd.f32 %v2970_v16, %v2942_v26 }
 0x297   : > { %v3239_v8 = vadd.f32 %v6933_v11, %v6875_v38 }
 0x299   : > { %v3240_v6 = vadd.f32 %v3239_v8, %v6879_v41 }
 0x29a   : > { %v2999_v28 = vpop.f32.mrf.mxu2  ;;  %v2944_v30 = vpop.f32.mrf.mxu0 }
 0x29b   : > { %v3028_v49 = vpop.f32.mrf.mxu3  ;;  %v2973_v32 = vpop.f32.mrf.mxu1  ;;  %v3000_v25 = vadd.f32 %v2999_v28, %v2971_v39  ;;  %v2945_v54 = vadd.f32 %v2944_v30, %v6891_v35 }
 0x29d   : > { %v6938_v21 = vadd.f32 %v3028_v49, %v3000_v25  ;;  %v2974_v24 = vadd.f32 %v2973_v32, %v2945_v54  ;;  %v2868_v32 = vadd.f32 %v6906_v52, %v6818_v1 }
 0x29f   : > { %v3241_v51 = vadd.f32 %v3240_v6, %v6938_v21 }
 0x2a1   : > { %v3242_v42 = vadd.f32 %v3241_v51, %v6884_v9 }
 0x2a2   : > { %v3002_v43 = vpop.f32.mrf.mxu2  ;;  %v2946_v45 = vpop.f32.mrf.mxu0 }
 0x2a3   : > { %v3031_v56 = vpop.f32.mrf.mxu3  ;;  %v2975_v59 = vpop.f32.mrf.mxu1  ;;  %v3003_v17 = vadd.f32 %v3002_v43, %v2974_v24  ;;  %v2947_v53 = vadd.f32 %v2946_v45, %v6896_v14  ;;  %v2897_v43 = vadd.f32 %v6910_v58, %v2868_v32 }
 0x2a5   : > { %v6943_v7 = vadd.f32 %v3031_v56, %v3003_v17  ;;  %v2976_v4 = vadd.f32 %v2975_v59, %v2947_v53  ;;  %v2926_v56 = vadd.f32 %v6912_v18, %v2897_v43 }
 0x2a7   : > { %v3243_v16 = vadd.f32 %v3242_v42, %v6943_v7 }
 0x2a9   : > { %v3244_v31 = vadd.f32 %v3243_v16, %v6889_v10 }
 0x2aa   : > { %v3004_v62 = vpop.f32.mrf.mxu2  ;;  %v2949_v23 = vpop.f32.mrf.mxu0 }
 0x2ab   : > { %v3033_v36 = vpop.f32.mrf.mxu3  ;;  %v2978_v35 = vpop.f32.mrf.mxu1  ;;  %v3005_v2 = vadd.f32 %v3004_v62, %v2976_v4  ;;  %v2950_v55 = vadd.f32 %v2949_v23, %v6901_v20 }
 0x2ad   : > { %v6948_v28 = vadd.f32 %v3033_v36, %v3005_v2  ;;  %v2979_v14 = vadd.f32 %v2978_v35, %v2950_v55  ;;  %v7623_v36 = vld [vmem:[#allocation37_spill] sm:$0xff]  ;;  %v7624_v55 = vld [vmem:[#allocation26_spill] sm:$0xff] }
 0x2af   : > { %v3245_v20 = vadd.f32 %v3244_v31, %v6948_v28  ;;  %v7626_v31 = vld [vmem:[#allocation27_spill] sm:$0xff] }
 0x2b1   : > { %v3246_v59 = vadd.f32 %v3245_v20, %v6894_v47 }
 0x2b2   : > { %v3007_v5 = vpop.f32.mrf.mxu2  ;;  %v2951_v27 = vpop.f32.mrf.mxu0 }
 0x2b3   : > { %v3036_v30 = vpop.f32.mrf.mxu3  ;;  %v2980_v49 = vpop.f32.mrf.mxu1  ;;  %v3008_v26 = vadd.f32 %v3007_v5, %v2979_v14  ;;  %v2952_v39 = vadd.f32 %v2951_v27, %v6908_v40  ;;  %v2870_v40 = vadd.f32 %v6914_v3, %v6916_v13 }
 0x2b5   : > { %v6956_v25 = vadd.f32 %v3036_v30, %v3008_v26  ;;  %v2981_v54 = vadd.f32 %v2980_v49, %v2952_v39  ;;  %v2899_v17 = vadd.f32 %v6922_v37, %v2870_v40  ;;  %v7625_v49 = vld [vmem:[#allocation38_spill] sm:$0xff] }
 0x2b7   : > { %v3247_v58 = vadd.f32 %v3246_v59, %v6956_v25  ;;  %v2928_v3 = vadd.f32 %v6924_v0, %v2899_v17 }
 0x2b9   : > { %v3248_v62 = vadd.f32 %v3247_v58, %v6899_v33 }
 0x2ba   : > { %v3009_v45 = vpop.f32.mrf.mxu2  ;;  %v2954_v24 = vpop.f32.mrf.mxu0  ;;  %s5175_s15 = spop %5174 }
 0x2bb   : > { %v3010_v8 = vadd.f32 %v3009_v45, %v2981_v54  ;;  %v3038_v1 = vpop.f32.mrf.mxu3  ;;  %s6960_s23 = spop %5176  ;;  %v2983_v52 = vpop.f32.mrf.mxu1  ;;  %v2955_v6 = vadd.f32 %v2954_v24, %v2926_v56 }
 0x2bc   : > { %s3078_s9 = smul.f32 %s6960_s23, %s5175_s15  ;;  %s3855_s15 = sshll.u32 %s5919_s19, 6 }
 0x2bd   : > { %v6967_v18 = vadd.f32 %v3038_v1, %v3010_v8  ;;  %v2984_v51 = vadd.f32 %v2983_v52, %v2955_v6 }
 0x2be   : > { %v3079_v53 = vstv %s3078_s9 }
 0x2bf   : > { %v6971_v23 = vsub.f32 %v6401_v44, %v3079_v53  ;;  %v6974_v35 = vsub.f32 %v7623_v36, %v3079_v53  ;;  %v3249_v13 = vadd.f32 %v3248_v62, %v6967_v18  ;;  %v6979_v16 = vsub.f32 %v7624_v55, %v3079_v53 }
 0x2c0   : > { %v6989_v32 = vsub.f32 %v7625_v49, %v3079_v53  ;;  %v6992_v26 = vsub.f32 %v7626_v31, %v3079_v53  ;;  %v6998_v8 = vsub.f32 %v6742_v48, %v3079_v53  ;;  %v7003_v52 = vsub.f32 %v6473_v15, %v3079_v53 }
 0x2c1   : > { %v3096_v44 = vmul.f32 %v6971_v23, %v6971_v23  ;;  %v3097_v27 = vmul.f32 %v6974_v35, %v6974_v35  ;;  %v3250_v0 = vadd.f32 %v3249_v13, %v6904_v46  ;;  %v3098_v20 = vmul.f32 %v6979_v16, %v6979_v16 }
 0x2c2   : > { %v3012_v4 = vpop.f32.mrf.mxu2  ;;  %v2956_v2 = vpop.f32.mrf.mxu0  ;;  %v3099_v24 = vmul.f32 %v6989_v32, %v6989_v32  ;;  %v3100_v6 = vmul.f32 %v6992_v26, %v6992_v26  ;;  %v7012_v48 = vsub.f32 %v6764_v22, %v3079_v53  ;;  %v7017_v15 = vsub.f32 %v6489_v19, %v3079_v53 }
 0x2c3   : > { %v3013_v42 = vadd.f32 %v3012_v4, %v2984_v51  ;;  %v3041_v37 = vpop.f32.mrf.mxu3  ;;  %v2957_v5 = vadd.f32 %v2956_v2, %v2928_v3  ;;  %v2985_v30 = vpop.f32.mrf.mxu1  ;;  %v3112_v54 = vadd.f32 %v3097_v27, %v3096_v44  ;;  %v3101_v51 = vmul.f32 %v6998_v8, %v6998_v8 }
 0x2c4   : > { %v3102_v4 = vmul.f32 %v7003_v52, %v7003_v52  ;;  %v7022_v13 = vsub.f32 %v6783_v50, %v3079_v53  ;;  %v7027_v2 = vsub.f32 %v6494_v61, %v3079_v53  ;;  %v7032_v19 = vsub.f32 %v6797_v57, %v3079_v53 }
 0x2c5   : > { %v6981_v14 = vadd.f32 %v3041_v37, %v3013_v42  ;;  %v2986_v43 = vadd.f32 %v2985_v30, %v2957_v5  ;;  %v3113_v1 = vadd.f32 %v3112_v54, %v3098_v20  ;;  %v3103_v42 = vmul.f32 %v7012_v48, %v7012_v48 }
 0x2c6   : > { %v3104_v37 = vmul.f32 %v7017_v15, %v7017_v15  ;;  %v3105_v5 = vmul.f32 %v7022_v13, %v7022_v13  ;;  %v7037_v50 = vsub.f32 %v6508_v63, %v3079_v53  ;;  %v3106_v27 = vmul.f32 %v7027_v2, %v7027_v2 }
 0x2c7   : > { %v3251_v39 = vadd.f32 %v3250_v0, %v6981_v14  ;;  %v3114_v17 = vadd.f32 %v3113_v1, %v3099_v24  ;;  %v7042_v61 = vsub.f32 %v6809_v29, %v3079_v53  ;;  %v3107_v0 = vmul.f32 %v7032_v19, %v7032_v19 }
 0x2c8   : > { %v7047_v57 = vsub.f32 %v6517_v12, %v3079_v53  ;;  %v3108_v31 = vmul.f32 %v7037_v50, %v7037_v50  ;;  %v7052_v63 = vsub.f32 %v6824_v34, %v3079_v53 }
 0x2c9   : > { %v3252_v58 = vadd.f32 %v3251_v39, %v6929_v60  ;;  %v3115_v36 = vadd.f32 %v3114_v17, %v3100_v6 }
 0x2ca   : > { %v3014_v45 = vpop.f32.mrf.mxu2  ;;  %v3110_v29 = vmul.f32 %v7047_v57, %v7047_v57  ;;  %v3111_v12 = vmul.f32 %v7052_v63, %v7052_v63 }
 0x2cb   : > { %v3015_v56 = vadd.f32 %v3014_v45, %v2986_v43  ;;  %v3043_v59 = vpop.f32.mrf.mxu3  ;;  %v3116_v3 = vadd.f32 %v3115_v36, %v3101_v51  ;;  %v3109_v43 = vmul.f32 %v7042_v61, %v7042_v61 }
 0x2cd   : > { %v7005_v40 = vadd.f32 %v3043_v59, %v3015_v56  ;;  %v3117_v22 = vadd.f32 %v3116_v3, %v3102_v4 }
 0x2cf   : > { %v3253_v62 = vadd.f32 %v3252_v58, %v7005_v40  ;;  %v3118_v55 = vadd.f32 %v3117_v22, %v3103_v42 }
 0x2d1   : > { %3254 = vadd.xlane.f32.xlu1 %v3253_v62  ;;  %v3119_v44 = vadd.f32 %v3118_v55, %v3104_v37 }
 0x2d3   : > { %v3120_v30 = vadd.f32 %v3119_v44, %v3105_v5 }
 0x2d5   : > { %v3121_v49 = vadd.f32 %v3120_v30, %v3106_v27 }
 0x2d7   : > { %v3122_v39 = vadd.f32 %v3121_v49, %v3107_v0 }
 0x2d9   : > { %v3123_v20 = vadd.f32 %v3122_v39, %v3108_v31 }
 0x2db   : > { %v3124_v54 = vadd.f32 %v3123_v20, %v3109_v43 }
 0x2dd   : > { %v3125_v45 = vadd.f32 %v3124_v54, %v3110_v29 }
 0x2df   : > { %v3126_v56 = vadd.f32 %v3125_v45, %v3111_v12 }
 0x2e1   : > { %3127 = vadd.xlane.f32.xlu0 %v3126_v56 }
 0x344   : > { %v3255_v17 = vpop.xlane.xlu1 %3254 }
 0x345   : > { %v3256_v62 = vrot.slane %v3255_v17, 4 }
 0x347   : > { %v3257_v36 = vadd.f32 %v3256_v62, %v3255_v17 }
 0x349   : > { %v3258_v4 = vrot.slane %v3257_v36, 2 }
 0x34b   : > { %v3259_v22 = vadd.f32 %v3258_v4, %v3257_v36 }
 0x34d   : > { %v3260_v44 = vrot.slane %v3259_v22, 1 }
 0x34f   : > { %v3261_v0 = vadd.f32 %v3260_v44, %v3259_v22 }
 0x354   : > { %v3128_v59 = vpop.xlane.xlu0 %3127 }
 0x355   : > { %v3129_v24 = vrot.slane %v3128_v59, 4 }
 0x357   : > { %v3130_v1 = vadd.f32 %v3129_v24, %v3128_v59 }
 0x359   : > { %v3131_v34 = vrot.slane %v3130_v1, 2 }
 0x35b   : > { %v3132_v53 = vadd.f32 %v3131_v34, %v3130_v1 }
 0x35d   : > { %v3133_v58 = vrot.slane %v3132_v53, 1 }
 0x35f   : > { %v3134_v6 = vadd.f32 %v3133_v58, %v3132_v53 }
 0x361   : > { %5178 = vpush %v3134_v6 }
 0x392   : > { %s5179_s16 = spop %5178 }
 0x393   : > { %s3144_s25 = smul.f32 %s5179_s16, %s6960_s23  ;;  %s7660_s16 = sld [smem:[#allocation46_spill]] }
 0x395   : > { %s3145_s12 = sadd.f32 1e-05, %s3144_s25 }
 0x397   : > { %v3146_v51 = vstv %s3145_s12  ;;  %s562_s12 = scalar_lea.vmem [#allocation16], %s3855_s15 }
 0x398   : > { %5315 = vrsqrt.f32 %v3146_v51  ;;  %vm3153_vm3 = vweird.f32 %v3146_v51 }
 0x399   : > { %s5627_s28 = scalar_lea.hbm %s7660_s16, 128 }
 0x39e   : > { %v5316_v3 = vpop.eup %5315 }
 0x39f   : > { %v3148_v42 = vmul.f32 %v5316_v3, %v3146_v51  ;;  %vm3154_vm2 = vweird.f32 %v5316_v3 }
 0x3a0   : > { %vm3155_vm4 = vmor %vm3153_vm3, %vm3154_vm2 }
 0x3a1   : > { %v3149_v37 = vmul.f32 %v5316_v3, %v3148_v42 }
 0x3a3   : > { %v3150_v55 = vmul.f32 0.5, %v3149_v37 }
 0x3a5   : > { %v3151_v5 = vsub.f32 1.5, %v3150_v55 }
 0x3a7   : > { %v3152_v27 = vmul.f32 %v5316_v3, %v3151_v5 }
 0x3a9   : > { %v3156_v30 = vsel %vm3155_vm4, %v5316_v3, %v3152_v27 }
 0x3aa   : > { %5180 = vpush %v3156_v30 }
 0x3ab   : > { %5182 = vpush %v3261_v0 }
 0x3db   : > { %s7061_s2 = spop %5180 }
 0x3dc   : > { %s5183_s21 = spop %5182 }
 0x3dd   : > { %s3271_s26 = smul.f32 %s5183_s21, %s6960_s23 }
 0x3df   : > { %v3272_v49 = vstv %s3271_s26  ;;  %s3657_s26 = scalar_lea.sflag [#allocation4], %s5919_s19 }
 0x3e0   : > { %v7065_v31 = vsub.f32 %v6875_v38, %v3272_v49  ;;  %v7068_v39 = vsub.f32 %v6933_v11, %v3272_v49  ;;  %v7071_v43 = vsub.f32 %v6879_v41, %v3272_v49  ;;  %v7078_v54 = vsub.f32 %v6938_v21, %v3272_v49 }
 0x3e1   : > { %v7081_v12 = vsub.f32 %v6884_v9, %v3272_v49  ;;  %v7086_v45 = vsub.f32 %v6943_v7, %v3272_v49  ;;  %v7091_v59 = vsub.f32 %v6889_v10, %v3272_v49  ;;  %v7096_v9 = vsub.f32 %v6948_v28, %v3272_v49 }
 0x3e2   : > { %v3289_v20 = vmul.f32 %v7065_v31, %v7065_v31  ;;  %v3290_v29 = vmul.f32 %v7068_v39, %v7068_v39  ;;  %v3291_v38 = vmul.f32 %v7071_v43, %v7071_v43  ;;  %v3292_v41 = vmul.f32 %v7078_v54, %v7078_v54 }
 0x3e3   : > { %v3293_v21 = vmul.f32 %v7081_v12, %v7081_v12  ;;  %v3294_v1 = vmul.f32 %v7086_v45, %v7086_v45  ;;  %v7101_v7 = vsub.f32 %v6894_v47, %v3272_v49  ;;  %v3295_v53 = vmul.f32 %v7091_v59, %v7091_v59 }
 0x3e4   : > { %v3305_v11 = vadd.f32 %v3290_v29, %v3289_v20  ;;  %v7106_v10 = vsub.f32 %v6956_v25, %v3272_v49  ;;  %v3296_v6 = vmul.f32 %v7096_v9, %v7096_v9  ;;  %v7111_v28 = vsub.f32 %v6899_v33, %v3272_v49 }
 0x3e5   : > { %v3297_v62 = vmul.f32 %v7101_v7, %v7101_v7  ;;  %v7116_v47 = vsub.f32 %v6967_v18, %v3272_v49  ;;  %v7121_v25 = vsub.f32 %v6904_v46, %v3272_v49  ;;  %v7126_v33 = vsub.f32 %v6981_v14, %v3272_v49 }
 0x3e6   : > { %v3306_v56 = vadd.f32 %v3305_v11, %v3291_v38  ;;  %v3298_v36 = vmul.f32 %v7106_v10, %v7106_v10  ;;  %v3299_v3 = vmul.f32 %v7111_v28, %v7111_v28  ;;  %v7131_v18 = vsub.f32 %v6929_v60, %v3272_v49 }
 0x3e7   : > { %v3300_v22 = vmul.f32 %v7116_v47, %v7116_v47  ;;  %v3301_v55 = vmul.f32 %v7121_v25, %v7121_v25  ;;  %v7136_v46 = vsub.f32 %v7005_v40, %v3272_v49  ;;  %v3302_v44 = vmul.f32 %v7126_v33, %v7126_v33 }
 0x3e8   : > { %v3307_v24 = vadd.f32 %v3306_v56, %v3292_v41  ;;  %v3303_v14 = vmul.f32 %v7131_v18, %v7131_v18 }
 0x3e9   : > { %v3304_v60 = vmul.f32 %v7136_v46, %v7136_v46 }
 0x3ea   : > { %v3308_v34 = vadd.f32 %v3307_v24, %v3293_v21 }
 0x3ec   : > { %v3309_v58 = vadd.f32 %v3308_v34, %v3294_v1 }
 0x3ee   : > { %v3310_v17 = vadd.f32 %v3309_v58, %v3295_v53 }
 0x3f0   : > { %v3311_v51 = vadd.f32 %v3310_v17, %v3296_v6 }
 0x3f2   : > { %v3312_v4 = vadd.f32 %v3311_v51, %v3297_v62  ;;  %v3158_v62 = vstv %s7061_s2  ;;  %s3669_s2 = sshll.u32 %s562_s12, 4  ;;  %s3670_s2 = int_to_ptr.vmem [resolvable:$true] %s3669_s2 }
 0x3f3   : > { %v3167_v51 = vmul.f32 %v3158_v62, %v7017_v15  ;;  %v3188_v15 = vld [vmem:[#allocation10 + $0x68] sm:$0xff] }
 0x3f4   : > { %v3313_v42 = vadd.f32 %v3312_v4, %v3298_v36  ;;  %v3168_v36 = vmul.f32 %v3158_v62, %v7022_v13  ;;  %v3169_v4 = vmul.f32 %v3158_v62, %v7027_v2  ;;  %v3190_v13 = vld [vmem:[#allocation10 + $0x78] sm:$0xff]  ;;  %v3159_v2 = vmul.f32 %v3158_v62, %v6971_v23  ;;  %v3221_v23 = vld [vmem:[#allocation11 + $0x70] sm:$0xff] }
 0x3f6   : > { %v3314_v37 = vadd.f32 %v3313_v42, %v3299_v3  ;;  %v3170_v3 = vmul.f32 %v3158_v62, %v7032_v19  ;;  %v3171_v42 = vmul.f32 %v3158_v62, %v7037_v50  ;;  %v3216_v50 = vld [vmem:[#allocation11 + $0x48] sm:$0xff] }
 0x3f8   : > { %v3315_v5 = vadd.f32 %v3314_v37, %v3300_v22  ;;  %v3172_v22 = vmul.f32 %v3158_v62, %v7042_v61  ;;  %v3183_v37 = vld [vmem:[#allocation10 + $0x40] sm:$0xff] }
 0x3fa   : > { %v3316_v27 = vadd.f32 %v3315_v5, %v3301_v55  ;;  %v3184_v55 = vld [vmem:[#allocation10 + $0x48] sm:$0xff]  ;;  %v3185_v5 = vld [vmem:[#allocation10 + $0x50] sm:$0xff] }
 0x3fb   : > { %v3200_v19 = vmul.f32 %v3184_v55, %v3168_v36  ;;  %v3177_v36 = vld [vmem:[#allocation10 + $0x10] sm:$0xff] }
 0x3fc   : > { %v3317_v30 = vadd.f32 %v3316_v27, %v3302_v44  ;;  %v3173_v44 = vmul.f32 %v3158_v62, %v7047_v57  ;;  %v3174_v27 = vmul.f32 %v3158_v62, %v7052_v63  ;;  %v3175_v57 = vld [vmem:[#allocation10] sm:$0xff]  ;;  %v3160_v63 = vmul.f32 %v3158_v62, %v6974_v35  ;;  %v3181_v55 = vld [vmem:[#allocation10 + $0x30] sm:$0xff] }
 0x3fd   : > { %v3166_v35 = vmul.f32 %v3158_v62, %v7012_v48  ;;  %v3207_v48 = vld [vmem:[#allocation11] sm:$0xff] }
 0x3fe   : > { %v3318_v0 = vadd.f32 %v3317_v30, %v3303_v14  ;;  %v3186_v14 = vld [vmem:[#allocation10 + $0x58] sm:$0xff]  ;;  %v3187_v30 = vld [vmem:[#allocation10 + $0x60] sm:$0xff] }
 0x3ff   : > { %v3202_v61 = vmul.f32 %v3186_v14, %v3170_v3  ;;  %v3178_v3 = vld [vmem:[#allocation10 + $0x18] sm:$0xff] }
 0x400   : > { %v3319_v20 = vadd.f32 %v3318_v0, %v3304_v60  ;;  %v3189_v60 = vld [vmem:[#allocation10 + $0x70] sm:$0xff]  ;;  %v3199_v0 = vmul.f32 %v3183_v37, %v3167_v51  ;;  %v3176_v51 = vld [vmem:[#allocation10 + $0x8] sm:$0xff]  ;;  %v3191_v37 = vmul.f32 %v3175_v57, %v3159_v2 }
 0x401   : > { %v3192_v14 = vmul.f32 %v3176_v51, %v3160_v63  ;;  %v3378_v57 = vld [vmem:[#allocation13 + $0x50] sm:$0xff]  ;;  %v3379_v63 = vld [vmem:[#allocation13 + $0x58] sm:$0xff] }
 0x402   : > { %3320 = vadd.xlane.f32.xlu2 %v3319_v20  ;;  %v3215_v20 = vld [vmem:[#allocation11 + $0x40] sm:$0xff] }
 0x475   : > { %v3321_v29 = vpop.xlane.xlu2 %3320 }
 0x476   : > { %v3322_v38 = vrot.slane %v3321_v29, 4 }
 0x478   : > { %v3323_v11 = vadd.f32 %v3322_v38, %v3321_v29  ;;  %v3201_v29 = vmul.f32 %v3185_v5, %v3169_v4  ;;  %v3203_v38 = vmul.f32 %v3187_v30, %v3171_v42  ;;  %v7162_v4 = vadd.f32 %v3215_v20, %v3199_v0  ;;  %v3179_v42 = vld [vmem:[#allocation10 + $0x20] sm:$0xff]  ;;  %v3182_v5 = vld [vmem:[#allocation10 + $0x38] sm:$0xff] }
 0x479   : > { %v3368_v0 = vld [vmem:[#allocation13] sm:$0xff] }
 0x47a   : > { %v3324_v40 = vrot.slane %v3323_v11, 2 }
 0x47c   : > { %v3325_v49 = vadd.f32 %v3324_v40, %v3323_v11  ;;  %v3204_v11 = vmul.f32 %v3188_v15, %v3172_v22  ;;  %v3217_v40 = vld [vmem:[#allocation11 + $0x50] sm:$0xff]  ;;  %v3180_v22 = vld [vmem:[#allocation10 + $0x28] sm:$0xff] }
 0x47e   : > { %v3326_v41 = vrot.slane %v3325_v49, 1 }
 0x480   : > { %v3327_v56 = vadd.f32 %v3326_v41, %v3325_v49  ;;  %v3218_v49 = vld [vmem:[#allocation11 + $0x58] sm:$0xff]  ;;  %v3161_v41 = vmul.f32 %v3158_v62, %v6979_v16  ;;  %v7164_v16 = vadd.f32 %v3216_v50, %v3200_v19  ;;  %v3376_v19 = vld [vmem:[#allocation13 + $0x40] sm:$0xff]  ;;  %v7192_v50 = vmul.f32 %v3182_v5, %v3166_v35 }
 0x482   : > { %5184 = vpush %v3327_v56  ;;  %v3205_v56 = vmul.f32 %v3189_v60, %v3173_v44  ;;  %v7180_v30 = vmul.f32 %v3177_v36, %v3161_v41 }
 0x483   : > { %7628 = vst [vmem:[#allocation28_spill] sm:$0xff] %v7192_v50 }
 0x4b3   : > { %s5185_s7 = spop %5184 }
 0x4b4   : > { %s3337_s8 = smul.f32 %s5185_s7, %s6960_s23  ;;  %s5168_s23 = sshll.u32 %s5795_s24, 6 }
 0x4b5   : > { %s3668_s25 = scalar_lea.hbm %s7660_s16, %s5168_s23 }
 0x4b6   : > { %s3338_s3 = sadd.f32 1e-05, %s3337_s8  ;;  %s3671_s21 = sshll.u32 %s3668_s25, 4  ;;  %s3672_s21 = int_to_ptr.hbm [resolvable:$true] %s3671_s21 }
 0x4b7   : > { %s5621_s7 = sshra.s32 %s3672_s21, 4  ;;  %s5622_s7 = int_to_ptr.hbm [resolvable:$true] %s5621_s7 }
 0x4b8   : > { %v3339_v21 = vstv %s3338_s3  ;;  %s5623_s8 = scalar_lea.hbm %s5622_s7, 64  ;;  %p5628_p9 = scmp.lt.s32.totalorder %s5622_s7, %s7660_s16 }
 0x4b9   : > { %5317 = vrsqrt.f32 %v3339_v21  ;;  %vm3346_vm6 = vweird.f32 %v3339_v21  ;;  %p5624_p3 = scmp.ne.s32.totalorder %s5622_s7, %s5623_s8  ;;  %p5629_p5 = scmp.lt.s32.totalorder %s5627_s28, %s5623_s8 }
 0x4bb   : > { %p5625_p12 = pnand %p5624_p3, %p5864_p4  ;;  %p5630_p8 = por %p5629_p5, %p5628_p9 }
 0x4bd   : > { %p5626_p7 = pneg %p5625_p12 }
 0x4bf   : > { %v5318_v24 = vpop.eup %5317  ;;  %p5631_p10 = pnand %p5630_p8, %p5626_p7 }
 0x4c0   : > { %v3341_v1 = vmul.f32 %v5318_v24, %v3339_v21  ;;  %vm3347_vm5 = vweird.f32 %v5318_v24  ;;  %v3206_v21 = vmul.f32 %v3190_v13, %v3174_v27 }
 0x4c1   : > { %vm3348_vm7 = vmor %vm3346_vm6, %vm3347_vm5 }
 0x4c2   : > { %v3342_v34 = vmul.f32 %v5318_v24, %v3341_v1  ;;  %v3220_v1 = vld [vmem:[#allocation11 + $0x68] sm:$0xff] }
 0x4c4   : > { %v3343_v53 = vmul.f32 0.5, %v3342_v34  ;;  %v3162_v34 = vmul.f32 %v3158_v62, %v6989_v32  ;;  %v7166_v32 = vadd.f32 %v3217_v40, %v3201_v29  ;;  %v3208_v29 = vld [vmem:[#allocation11 + $0x8] sm:$0xff] }
 0x4c6   : > { %v3344_v58 = vsub.f32 1.5, %v3343_v53  ;;  %v3163_v53 = vmul.f32 %v3158_v62, %v6992_v26  ;;  %v7168_v26 = vadd.f32 %v3218_v49, %v3202_v61  ;;  %v7182_v15 = vmul.f32 %v3178_v3, %v3162_v34  ;;  %v3377_v49 = vld [vmem:[#allocation13 + $0x48] sm:$0xff] }
 0x4c7   : > { %v7194_v61 = vadd.f32 %v3207_v48, %v3191_v37  ;;  %v3409_v34 = vld [vmem:[#allocation14 + $0x48] sm:$0xff] }
 0x4c8   : > { %v3345_v6 = vmul.f32 %v5318_v24, %v3344_v58  ;;  %v3164_v58 = vmul.f32 %v3158_v62, %v6998_v8  ;;  %v7184_v60 = vmul.f32 %v3179_v42, %v3163_v53  ;;  %v7218_v53 = vadd.f32 %v3208_v29, %v3192_v14  ;;  %v3413_v3 = vld [vmem:[#allocation14 + $0x68] sm:$0xff]  ;;  %v3414_v42 = vld [vmem:[#allocation14 + $0x70] sm:$0xff] }
 0x4c9   : > { %v3369_v48 = vld [vmem:[#allocation13 + $0x8] sm:$0xff] }
 0x4ca   : > { %v3349_v17 = vsel %vm3348_vm7, %v5318_v24, %v3345_v6  ;;  %v3219_v24 = vld [vmem:[#allocation11 + $0x60] sm:$0xff]  ;;  %v3165_v6 = vmul.f32 %v3158_v62, %v7003_v52  ;;  %v7172_v52 = vadd.f32 %v3220_v1, %v3204_v11  ;;  %v7174_v62 = vadd.f32 %v3221_v23, %v3205_v56  ;;  %v3383_v23 = vld [vmem:[#allocation13 + $0x78] sm:$0xff] }
 0x4cb   : > { %5186 = vpush %v3349_v17  ;;  %v3222_v17 = vld [vmem:[#allocation11 + $0x78] sm:$0xff]  ;;  %v7170_v8 = vadd.f32 %v3219_v24, %v3203_v38  ;;  %v7186_v13 = vmul.f32 %v3180_v22, %v3164_v58  ;;  %v3382_v24 = vld [vmem:[#allocation13 + $0x70] sm:$0xff] }
 0x4cc   : > { %v7176_v44 = vadd.f32 %v3222_v17, %v3206_v21  ;;  %v7190_v20 = vmul.f32 %v3181_v55, %v3165_v6  ;;  %v3380_v21 = vld [vmem:[#allocation13 + $0x60] sm:$0xff]  ;;  %v3410_v6 = vld [vmem:[#allocation14 + $0x50] sm:$0xff]  ;;  %v3415_v22 = vld [vmem:[#allocation14 + $0x78] sm:$0xff] }
 0x4cd   : > { %v3412_v17 = vld [vmem:[#allocation14 + $0x60] sm:$0xff] }
 0x4ce   : > { %7627 = vst [vmem:[#allocation29_spill] sm:$0xff] %v7190_v20 }
 0x4fc   : > { %s5187_s22 = spop %5186 }
 0x4fd   : > { %v7178_v27 = vstv %s5187_s22 }
 0x4fe   : > { %v3352_v2 = vmul.f32 %v7178_v27, %v7065_v31  ;;  %v3360_v38 = vmul.f32 %v7178_v27, %v7101_v7  ;;  %v3361_v11 = vmul.f32 %v7178_v27, %v7106_v10  ;;  %v3362_v40 = vmul.f32 %v7178_v27, %v7111_v28  ;;  %v3381_v28 = vld [vmem:[#allocation13 + $0x68] sm:$0xff] }
 0x4ff   : > { %v3363_v31 = vmul.f32 %v7178_v27, %v7116_v47  ;;  %v3364_v41 = vmul.f32 %v7178_v27, %v7121_v25  ;;  %v3365_v56 = vmul.f32 %v7178_v27, %v7126_v33  ;;  %v3366_v7 = vmul.f32 %v7178_v27, %v7131_v18  ;;  %v3408_v33 = vld [vmem:[#allocation14 + $0x40] sm:$0xff] }
 0x500   : > { %v3367_v10 = vmul.f32 %v7178_v27, %v7136_v46  ;;  %v3353_v47 = vmul.f32 %v7178_v27, %v7068_v39  ;;  %v3354_v1 = vmul.f32 %v7178_v27, %v7071_v43  ;;  %v3355_v25 = vmul.f32 %v7178_v27, %v7078_v54  ;;  %v3411_v43 = vld [vmem:[#allocation14 + $0x58] sm:$0xff] }
 0x501   : > { %v3356_v18 = vmul.f32 %v7178_v27, %v7081_v12  ;;  %v3357_v46 = vmul.f32 %v7178_v27, %v7086_v45  ;;  %v3358_v39 = vmul.f32 %v7178_v27, %v7091_v59  ;;  %v3384_v58 = vmul.f32 %v3368_v0, %v3352_v2  ;;  %v3370_v45 = vld [vmem:[#allocation13 + $0x10] sm:$0xff] }
 0x502   : > { %v3392_v51 = vmul.f32 %v3376_v19, %v3360_v38  ;;  %v3393_v54 = vmul.f32 %v3377_v49, %v3361_v11  ;;  %v3394_v36 = vmul.f32 %v3378_v57, %v3362_v40  ;;  %v3395_v35 = vmul.f32 %v3379_v63, %v3363_v31  ;;  %v3371_v38 = vld [vmem:[#allocation13 + $0x18] sm:$0xff]  ;;  %v3372_v11 = vld [vmem:[#allocation13 + $0x20] sm:$0xff]  ;;  %v3373_v63 = vld [vmem:[#allocation13 + $0x28] sm:$0xff] }
 0x503   : > { %v3396_v37 = vmul.f32 %v3380_v21, %v3364_v41  ;;  %v3397_v55 = vmul.f32 %v3381_v28, %v3365_v56  ;;  %v3398_v12 = vmul.f32 %v3382_v24, %v3366_v7  ;;  %v3399_v5 = vmul.f32 %v3383_v23, %v3367_v10  ;;  %v3400_v21 = vld [vmem:[#allocation14] sm:$0xff]  ;;  %v3401_v28 = vld [vmem:[#allocation14 + $0x8] sm:$0xff] }
 0x504   : > { %v3424_v14 = vadd.f32 %v3408_v33, %v3392_v51  ;;  %v3425_v29 = vadd.f32 %v3409_v34, %v3393_v54  ;;  %v3426_v59 = vadd.f32 %v3410_v6, %v3394_v36  ;;  %v3427_v2 = vadd.f32 %v3411_v43, %v3395_v35  ;;  %v3375_v6 = vld [vmem:[#allocation13 + $0x38] sm:$0xff]  ;;  %v3404_v51 = vld [vmem:[#allocation14 + $0x20] sm:$0xff] }
 0x505   : > { %v3428_v0 = vadd.f32 %v3412_v17, %v3396_v37  ;;  %v3429_v50 = vadd.f32 %v3413_v3, %v3397_v55  ;;  %v3430_v20 = vadd.f32 %v3414_v42, %v3398_v12  ;;  %v3431_v19 = vadd.f32 %v3415_v22, %v3399_v5  ;;  %v3406_v42 = vld [vmem:[#allocation14 + $0x30] sm:$0xff]  ;;  %v3407_v37 = vld [vmem:[#allocation14 + $0x38] sm:$0xff] }
 0x506   : > { %v3440_v40 = vadd.f32 %v3424_v14, %v7162_v4  ;;  %v3441_v31 = vadd.f32 %v3425_v29, %v7164_v16  ;;  %v3442_v49 = vadd.f32 %v3426_v59, %v7166_v32  ;;  %v3443_v57 = vadd.f32 %v3427_v2, %v7168_v26  ;;  %v3374_v32 = vld [vmem:[#allocation13 + $0x30] sm:$0xff]  ;;  %v3214_v29 = vld [vmem:[#allocation11 + $0x38] sm:$0xff] }
 0x507   : > { %v3385_v41 = vmul.f32 %v3369_v48, %v3353_v47  ;;  %v3386_v56 = vmul.f32 %v3370_v45, %v3354_v1  ;;  %v3444_v7 = vadd.f32 %v3428_v0, %v7170_v8  ;;  %v3445_v10 = vadd.f32 %v3429_v50, %v7172_v52  ;;  %v3402_v1 = vld [vmem:[#allocation14 + $0x10] sm:$0xff]  ;;  %v3403_v50 = vld [vmem:[#allocation14 + $0x18] sm:$0xff] }
 0x508   : > { %v3446_v24 = vadd.f32 %v3430_v20, %v7174_v62  ;;  %v4898_v23 = vmul.f32 -1.442695, %v3440_v40  ;;  %v4899_v33 = vmul.f32 -1.442695, %v3441_v31  ;;  %v4900_v4 = vmul.f32 -1.442695, %v3442_v49 }
 0x509   : > { %v3359_v16 = vmul.f32 %v7178_v27, %v7096_v9  ;;  %v3387_v34 = vmul.f32 %v3371_v38, %v3355_v25  ;;  %v3447_v26 = vadd.f32 %v3431_v19, %v7176_v44  ;;  %v4901_v47 = vmul.f32 -1.442695, %v3443_v57  ;;  %v3209_v20 = vld [vmem:[#allocation11 + $0x10] sm:$0xff]  ;;  %v3210_v27 = vld [vmem:[#allocation11 + $0x18] sm:$0xff]  ;;  %v3405_v25 = vld [vmem:[#allocation14 + $0x28] sm:$0xff] }
 0x50a   : > { %v3388_v8 = vmul.f32 %v3372_v11, %v3356_v18  ;;  %5319 = vpow2.f32 %v4898_v23  ;;  %v4902_v52 = vmul.f32 -1.442695, %v3444_v7  ;;  %v3416_v43 = vadd.f32 %v3400_v21, %v3384_v58  ;;  %v3211_v18 = vld [vmem:[#allocation11 + $0x20] sm:$0xff]  ;;  %v3212_v58 = vld [vmem:[#allocation11 + $0x28] sm:$0xff]  ;;  %v7629_v40 = vld [vmem:[#allocation29_spill] sm:$0xff] }
 0x50b   : > { %v3389_v17 = vmul.f32 %v3373_v63, %v3357_v46  ;;  %5321 = vpow2.f32 %v4899_v33  ;;  %v4903_v62 = vmul.f32 -1.442695, %v3445_v10  ;;  %v3417_v54 = vadd.f32 %v3401_v28, %v3385_v41 }
 0x50c   : > { %v3390_v36 = vmul.f32 %v3374_v32, %v3358_v39  ;;  %5323 = vpow2.f32 %v4900_v4  ;;  %v4904_v9 = vmul.f32 -1.442695, %v3446_v24  ;;  %v3418_v44 = vadd.f32 %v3402_v1, %v3386_v56  ;;  %v3213_v39 = vld [vmem:[#allocation11 + $0x30] sm:$0xff] }
 0x50d   : > { %v3391_v35 = vmul.f32 %v3375_v6, %v3359_v16  ;;  %5325 = vpow2.f32 %v4901_v47  ;;  %v4905_v3 = vmul.f32 -1.442695, %v3447_v26  ;;  %v3419_v22 = vadd.f32 %v3403_v50, %v3387_v34 }
 0x50e   : > { %5327 = vpow2.f32 %v4902_v52  ;;  %v3225_v46 = vadd.f32 %v3209_v20, %v7180_v30  ;;  %v3420_v55 = vadd.f32 %v3404_v51, %v3388_v8  ;;  %v3432_v12 = vadd.f32 %v3416_v43, %v7194_v61 }
 0x50f   : > { %5329 = vpow2.f32 %v4903_v62  ;;  %v3226_v5 = vadd.f32 %v3210_v27, %v7182_v15  ;;  %v3421_v48 = vadd.f32 %v3405_v25, %v3389_v17  ;;  %v3433_v45 = vadd.f32 %v3417_v54, %v7218_v53  ;;  %v7630_v53 = vld [vmem:[#allocation28_spill] sm:$0xff] }
 0x510   : > { %v5320_v14 = vpop.eup %5319  ;;  %5331 = vpow2.f32 %v4904_v9  ;;  %v3227_v59 = vadd.f32 %v3211_v18, %v7184_v60  ;;  %v3422_v2 = vadd.f32 %v3406_v42, %v3390_v36  ;;  %v3434_v0 = vadd.f32 %v3418_v44, %v3225_v46 }
 0x511   : > { %v5322_v19 = vpop.eup %5321  ;;  %5333 = vpow2.f32 %v4905_v3  ;;  %v3228_v30 = vadd.f32 %v3212_v58, %v7186_v13  ;;  %v3423_v38 = vadd.f32 %v3407_v37, %v3391_v35  ;;  %v3435_v61 = vadd.f32 %v3419_v22, %v3226_v5 }
 0x512   : > { %v5324_v11 = vpop.eup %5323  ;;  %v3229_v31 = vadd.f32 %v3213_v39, %v7629_v40  ;;  %v3436_v15 = vadd.f32 %v3420_v55, %v3227_v59  ;;  %5335 = vtanh.f32 %v3432_v12  ;;  %v3230_v57 = vadd.f32 %v3214_v29, %v7630_v53  ;;  %v3608_v40 = vld [vmem:[%s7460_s10] sm:$0xff] }
 0x513   : > { %v5326_v49 = vpop.eup %5325  ;;  %v3437_v63 = vadd.f32 %v3421_v48, %v3228_v30  ;;  %5337 = vtanh.f32 %v3433_v45  ;;  %v7244_v10 = vadd.f32 1.0, %v5320_v14  ;;  %v7246_v21 = vadd.f32 1.0, %v5322_v19 }
 0x514   : > { %v5328_v41 = vpop.eup %5327  ;;  %v3438_v60 = vadd.f32 %v3422_v2, %v3229_v31  ;;  %5339 = vtanh.f32 %v3434_v0  ;;  %v3439_v7 = vadd.f32 %v3423_v38, %v3230_v57  ;;  %v7248_v24 = vadd.f32 1.0, %v5324_v11  ;;  %v3610_v57 = vld [vmem:[%s7460_s10 + $0x10] sm:$0xff] }
 0x515   : > { %v5330_v56 = vpop.eup %5329  ;;  %5341 = vtanh.f32 %v3435_v61  ;;  %v7252_v33 = vadd.f32 1.0, %v5326_v49  ;;  %v7256_v16 = vadd.f32 1.0, %v5328_v41  ;;  %v3499_v34 = vand.u32 2147483648, %v7244_v10  ;;  %v3612_v41 = vld [vmem:[%s7460_s10 + $0x20] sm:$0xff] }
 0x516   : > { %v5332_v13 = vpop.eup %5331  ;;  %5343 = vtanh.f32 %v3436_v15  ;;  %v7258_v32 = vadd.f32 1.0, %v5330_v56  ;;  %v3514_v47 = vand.u32 2147483648, %v7246_v21  ;;  %v3529_v8 = vand.u32 2147483648, %v7248_v24 }
 0x517   : > { %v5334_v28 = vpop.eup %5333  ;;  %5345 = vtanh.f32 %v3437_v63  ;;  %v7267_v6 = vadd.f32 1.0, %v5332_v13  ;;  %v3497_v50 = vand.u32 2147483647, %v7244_v10  ;;  %v3512_v43 = vand.u32 2147483647, %v7246_v21 }
 0x518   : > { %v7250_v23 = vpop.eup %5335  ;;  %5347 = vtanh.f32 %v3438_v60  ;;  %v3544_v17 = vand.u32 2147483648, %v7252_v33  ;;  %v7279_v20 = vor.u32 1.1754944e-38, %v3499_v34  ;;  %v3559_v51 = vand.u32 2147483648, %v7256_v16 }
 0x519   : > { %v7254_v4 = vpop.eup %5337  ;;  %5349 = vtanh.f32 %v3439_v7  ;;  %v3574_v54 = vand.u32 2147483648, %v7258_v32  ;;  %v7286_v9 = vadd.f32 1.0, %v5334_v28  ;;  %v7288_v27 = vor.u32 1.1754944e-38, %v3514_v47  ;;  %v3614_v28 = vld [vmem:[%s7460_s10 + $0x30] sm:$0xff] }
 0x51a   : > { %v7261_v26 = vpop.eup %5339  ;;  %5351 = vrcp.f32 %v7244_v10  ;;  %v3527_v25 = vand.u32 2147483647, %v7248_v24  ;;  %vm3493_vm8 = vweird.f32 %v7244_v10  ;;  %v7295_v35 = vor.u32 1.1754944e-38, %v3529_v8 }
 0x51b   : > { %v7265_v1 = vpop.eup %5341  ;;  %5353 = vrcp.f32 %v7246_v21  ;;  %v3542_v3 = vand.u32 2147483647, %v7252_v33  ;;  %v3589_v18 = vand.u32 2147483648, %v7267_v6  ;;  %vm3508_vm9 = vweird.f32 %v7246_v21 }
 0x51c   : > { %v7271_v52 = vpop.eup %5343  ;;  %5355 = vrcp.f32 %v7248_v24  ;;  %v7303_v22 = vor.u32 1.1754944e-38, %v3544_v17  ;;  %v3557_v58 = vand.u32 2147483647, %v7256_v16  ;;  %v3572_v46 = vand.u32 2147483647, %v7258_v32 }
 0x51d   : > { %v7277_v62 = vpop.eup %5345  ;;  %5357 = vrcp.f32 %v7252_v33  ;;  %vm3523_vm10 = vweird.f32 %v7248_v24  ;;  %v7313_v12 = vor.u32 1.1754944e-38, %v3559_v51  ;;  %v7315_v39 = vor.u32 1.1754944e-38, %v3574_v54 }
 0x51e   : > { %v7284_v36 = vpop.eup %5347  ;;  %5359 = vrcp.f32 %v7256_v16  ;;  %v3587_v5 = vand.u32 2147483647, %v7267_v6  ;;  %v3602_v14 = vand.u32 2147483647, %v7286_v9  ;;  %v3604_v29 = vand.u32 2147483648, %v7286_v9 }
 0x51f   : > { %v7292_v44 = vpop.eup %5349  ;;  %5361 = vrcp.f32 %v7258_v32  ;;  %vm7329_vm13 = vcmp.eq.f32.partialorder %v3497_v50, 8.507059e+37  ;;  %v7336_v30 = vor.u32 1.1754944e-38, %v3589_v18  ;;  %vm7342_vm0 = vcmp.eq.f32.partialorder %v3512_v43, 8.507059e+37 }
 0x520   : > { %v7300_v42 = vpop.eup %5351  ;;  %5363 = vrcp.f32 %v7267_v6  ;;  %vm7347_vm2 = vcmp.eq.f32.partialorder %v3527_v25, 8.507059e+37  ;;  %vm7356_vm5 = vcmp.eq.f32.partialorder %v3542_v3, 8.507059e+37  ;;  %vm7362_vm6 = vcmp.eq.f32.partialorder %v3557_v58, 8.507059e+37 }
 0x521   : > { %v7308_v37 = vpop.eup %5353  ;;  %v3489_v55 = vmul.f32 %v7300_v42, %v7244_v10  ;;  %vm3494_vm11 = vweird.f32 %v7300_v42  ;;  %5365 = vrcp.f32 %v7286_v9  ;;  %vm7374_vm3 = vcmp.eq.f32.partialorder %v3572_v46, 8.507059e+37 }
 0x522   : > { %v7318_v48 = vpop.eup %5355  ;;  %v3504_v45 = vmul.f32 %v7308_v37, %v7246_v21  ;;  %vm3509_vm15 = vweird.f32 %v7308_v37  ;;  %v7378_v34 = vor.u32 1.1754944e-38, %v3604_v29  ;;  %vm7383_vm7 = vcmp.eq.f32.partialorder %v3587_v5, 8.507059e+37  ;;  %vm7391_vm14 = vmor %vm3493_vm8, %vm3494_vm11 }
 0x523   : > { %v7327_v59 = vpop.eup %5357  ;;  %v3490_v2 = vsub.f32 1.0, %v3489_v55  ;;  %v3519_v19 = vmul.f32 %v7318_v48, %v7248_v24  ;;  %vm3524_vm1 = vweird.f32 %v7318_v48  ;;  %vm7407_vm8 = vmor %vm3508_vm9, %vm3509_vm15  ;;  %vm7651_vm15 = vweird.f32 %v7252_v33 }
 0x524   : > { %v7339_v38 = vpop.eup %5359  ;;  %v3505_v61 = vsub.f32 1.0, %v3504_v45  ;;  %v3534_v31 = vmul.f32 %v7327_v59, %v7252_v33  ;;  %vm3539_vm4 = vweird.f32 %v7327_v59  ;;  %vm7421_vm11 = vmor %vm3523_vm10, %vm3524_vm1  ;;  %vm7654_vm1 = vweird.f32 %v7256_v16 }
 0x525   : > { %v5362_v15 = vpop.eup %5361  ;;  %v3491_v49 = vmul.f32 %v7300_v42, %v3490_v2  ;;  %v3520_v53 = vsub.f32 1.0, %v3519_v19  ;;  %v3549_v63 = vmul.f32 %v7339_v38, %v7256_v16  ;;  %vm3554_vm12 = vweird.f32 %v7339_v38 }
 0x526   : > { %v5364_v60 = vpop.eup %5363  ;;  %v3506_v56 = vmul.f32 %v7308_v37, %v3505_v61  ;;  %v3535_v7 = vsub.f32 1.0, %v3534_v31  ;;  %v3564_v13 = vmul.f32 %v5362_v15, %v7258_v32  ;;  %vm3569_vm9 = vweird.f32 %v5362_v15 }
 0x527   : > { %v3492_v47 = vadd.f32 %v7300_v42, %v3491_v49  ;;  %v3521_v8 = vmul.f32 %v7318_v48, %v3520_v53  ;;  %v3550_v50 = vsub.f32 1.0, %v3549_v63  ;;  %v3579_v43 = vmul.f32 %v5364_v60, %v7267_v6  ;;  %v7398_v18 = vpop.eup %5365  ;;  %v3611_v63 = vld [vmem:[%s7460_s10 + $0x18] sm:$0xff] }
 0x528   : > { %v3507_v54 = vadd.f32 %v7308_v37, %v3506_v56  ;;  %v3536_v25 = vmul.f32 %v7327_v59, %v3535_v7  ;;  %v3565_v3 = vsub.f32 1.0, %v3564_v13  ;;  %vm3584_vm10 = vweird.f32 %v5364_v60  ;;  %v3613_v13 = vld [vmem:[%s7460_s10 + $0x28] sm:$0xff] }
 0x529   : > { %v3496_v58 = vsel %vm7391_vm14, %v7300_v42, %v3492_v47  ;;  %v3522_v46 = vadd.f32 %v7318_v48, %v3521_v8  ;;  %v3551_v55 = vmul.f32 %v7339_v38, %v3550_v50  ;;  %v3580_v5 = vsub.f32 1.0, %v3579_v43 }
 0x52a   : > { %v3511_v45 = vsel %vm7407_vm8, %v7308_v37, %v3507_v54  ;;  %v3537_v42 = vadd.f32 %v7327_v59, %v3536_v25  ;;  %v3566_v29 = vmul.f32 %v5362_v15, %v3565_v3  ;;  %vm3598_vm14 = vweird.f32 %v7286_v9  ;;  %vm7434_vm8 = vmor %vm7651_vm15, %vm3539_vm4  ;;  %v3615_v3 = vld [vmem:[%s7460_s10 + $0x38] sm:$0xff] }
 0x52b   : > { %v3526_v2 = vsel %vm7421_vm11, %v7318_v48, %v3522_v46  ;;  %v3552_v37 = vadd.f32 %v7339_v38, %v3551_v55  ;;  %v3581_v19 = vmul.f32 %v5364_v60, %v3580_v5  ;;  %v3501_v61 = vsel %vm7329_vm13, %v7279_v20, %v3496_v58  ;;  %vm3555_vm4 = vmor %vm7654_vm1, %vm3554_vm12 }
 0x52c   : > { %v3541_v48 = vsel %vm7434_vm8, %v7327_v59, %v3537_v42  ;;  %v3567_v33 = vadd.f32 %v5362_v15, %v3566_v29  ;;  %v3594_v31 = vmul.f32 %v7398_v18, %v7286_v9  ;;  %vm7453_vm11 = vcmp.eq.f32.partialorder %v3602_v14, 8.507059e+37 }
 0x52d   : > { %v3516_v16 = vsel %vm7342_vm0, %v7288_v27, %v3511_v45  ;;  %v3531_v20 = vsel %vm7347_vm2, %v7295_v35, %v3526_v2  ;;  %v3556_v14 = vsel %vm3555_vm4, %v7339_v38, %v3552_v37  ;;  %vm7658_vm12 = vweird.f32 %v7258_v32 }
 0x52e   : > { %vm3570_vm13 = vmor %vm7658_vm12, %vm3569_vm9  ;;  %v3582_v59 = vadd.f32 %v5364_v60, %v3581_v19  ;;  %v3546_v0 = vsel %vm7356_vm5, %v7303_v22, %v3541_v48  ;;  %v3561_v27 = vsel %vm7362_vm6, %v7313_v12, %v3556_v14  ;;  %vm7659_vm0 = vweird.f32 %v7267_v6 }
 0x52f   : > { %v3571_v35 = vsel %vm3570_vm13, %v5362_v15, %v3567_v33  ;;  %vm3585_vm2 = vmor %vm7659_vm0, %vm3584_vm10  ;;  %v3595_v32 = vsub.f32 1.0, %v3594_v31  ;;  %vm3599_vm5 = vweird.f32 %v7398_v18  ;;  %v3616_v22 = vmul.f32 %v7250_v23, %v3501_v61  ;;  %v3609_v15 = vld [vmem:[%s7460_s10 + $0x8] sm:$0xff] }
 0x530   : > { %v3576_v38 = vsel %vm7374_vm3, %v7315_v39, %v3571_v35  ;;  %v3586_v11 = vsel %vm3585_vm2, %v5364_v60, %v3582_v59  ;;  %v3617_v53 = vmul.f32 %v7254_v4, %v3516_v16  ;;  %v3618_v39 = vmul.f32 %v7261_v26, %v3531_v20  ;;  %vm3600_vm3 = vmor %vm3598_vm14, %vm3599_vm5 }
 0x531   : > { %v3591_v12 = vsel %vm7383_vm7, %v7336_v30, %v3586_v11  ;;  %v3596_v6 = vmul.f32 %v7398_v18, %v3595_v32  ;;  %v3619_v23 = vmul.f32 %v7265_v1, %v3546_v0  ;;  %v3620_v60 = vmul.f32 %v7271_v52, %v3561_v27 }
 0x532   : > { %v3624_v56 = vsub.f32 1.0, %v3501_v61  ;;  %v3625_v30 = vsub.f32 1.0, %v3516_v16  ;;  %v3626_v47 = vsub.f32 1.0, %v3531_v20  ;;  %v3627_v4 = vsub.f32 1.0, %v3546_v0 }
 0x533   : > { %v3597_v7 = vadd.f32 %v7398_v18, %v3596_v6  ;;  %v3628_v8 = vsub.f32 1.0, %v3561_v27  ;;  %v3629_v26 = vsub.f32 1.0, %v3576_v38  ;;  %v3630_v1 = vsub.f32 1.0, %v3591_v12 }
 0x534   : > { %v3632_v50 = vmul.f32 %v3624_v56, %v3608_v40  ;;  %v3633_v52 = vmul.f32 %v3625_v30, %v3609_v15  ;;  %v3634_v17 = vmul.f32 %v3626_v47, %v3610_v57  ;;  %v3635_v51 = vmul.f32 %v3627_v4, %v3611_v63 }
 0x535   : > { %v3601_v43 = vsel %vm3600_vm3, %v7398_v18, %v3597_v7  ;;  %v3636_v54 = vmul.f32 %v3628_v8, %v3612_v41  ;;  %v3637_v58 = vmul.f32 %v3629_v26, %v3613_v13  ;;  %v3638_v10 = vmul.f32 %v3630_v1, %v3614_v28 }
 0x536   : > { %v3606_v25 = vsel %vm7453_vm11, %v7378_v34, %v3601_v43  ;;  %v3640_v46 = vadd.f32 %v3632_v50, %v3616_v22  ;;  %v3621_v9 = vmul.f32 %v7277_v62, %v3576_v38  ;;  %v3641_v18 = vadd.f32 %v3633_v52, %v3617_v53 }
 0x537   : > { %v3631_v55 = vsub.f32 1.0, %v3606_v25  ;;  %v3642_v5 = vadd.f32 %v3634_v17, %v3618_v39  ;;  %v3622_v45 = vmul.f32 %v7284_v36, %v3591_v12  ;;  %v3643_v21 = vadd.f32 %v3635_v51, %v3619_v23 }
 0x538   : > { %v3644_v42 = vadd.f32 %v3636_v54, %v3620_v60  ;;  %3648 = vst [vmem:[%s562_s12] sm:$0xff] %v3640_v46  ;;  %v3623_v34 = vmul.f32 %v7292_v44, %v3606_v25  ;;  %v3645_v2 = vadd.f32 %v3637_v58, %v3621_v9 }
 0x539   : > { %v3639_v29 = vmul.f32 %v3631_v55, %v3615_v3  ;;  %3649 = vst [vmem:[%s562_s12 + $0x8] sm:$0xff] %v3641_v18  ;;  %v3646_v62 = vadd.f32 %v3638_v10, %v3622_v45 }
 0x53a   : > { %3650 = vst [vmem:[%s562_s12 + $0x10] sm:$0xff] %v3642_v5 }
 0x53b   : > { %v3647_v24 = vadd.f32 %v3639_v29, %v3623_v34  ;;  %3651 = vst [vmem:[%s562_s12 + $0x18] sm:$0xff] %v3643_v21 }
 0x53c   : > { %3652 = vst [vmem:[%s562_s12 + $0x20] sm:$0xff] %v3644_v42 }
 0x53d   : > { %3653 = vst [vmem:[%s562_s12 + $0x28] sm:$0xff] %v3645_v2 }
 0x53e   : > { %3654 = vst [vmem:[%s562_s12 + $0x30] sm:$0xff] %v3646_v62 }
 0x53f   : > { %3655 = vst [vmem:[%s562_s12 + $0x38] sm:$0xff] %v3647_v24 }
 0x540   : > { %5634 = shalt.err (!%p5631_p10)
}
 0x541   : > { %s5709_s19 = smov 256   ;;  %s5710_s30 = smov 16  }
 0x542   : > { %5216 = dma.vmem_to_hbm [thread:$0]  (%p5864_p4), %s3670_s2, 1024, %s3672_s21, %s3657_s26, %s5709_s19, %s5709_s19, %s5710_s30  }
 0x543 PF: > { %s3686_s4 = sand.u32 1, %s5681_s17   ;;  %p7661_p11 = scmp.ge.s32.totalorder %s5693_s20, 2 }
 0x544   : > { %s3687_s10 = scalar_lea.sflag [#allocation4], %s3686_s4 }
 0x545   : > { %p5245_p13 = pnand %p7661_p11, %p5868_p6 }
 0x547   : > { %p5246_p0 = pneg %p5245_p13 }
 0x549   : > { %5676 = dma.done.wait (%p5246_p0), %s3687_s10, 1024  }
 0x54a   : > { %5678 = vsyncadd (%p5246_p0), %s3687_s10, 4294966272  ;;  %s7662_s15 = sld [smem:[#allocation24_spill]]  ;;  %p30_p2 = scmp.ge.s32.totalorder %s5842_s13, 4  }
 0x54b   : > { %s7663_s19 = sld [smem:[#allocation25_spill]]  ;;  %s7664_s17 = smov %s5685_s18 }
 0x54c   : > { %s7666_s20 = smov %s5842_s13  ;;  %32 = sbr.rel (!%p30_p2) target bundleno = 19 (0x13), region = 149 }
 0x550   : > { %s7665_s18 = smov %s7662_s15 }
 0x551   :  { %3693 = vsyncpa [#allocation3], 1 }
 0x552   :  { %3695 = vsyncpa [#allocation3 + $0x1], 1 }
 0x553   :  { %3696 = vsyncpa [#allocation6], 1 }
 0x554   :  { %3698 = vsyncpa [#allocation6 + $0x1], 1 }
 0x555   :  { %3699 = vsyncpa [#allocation9], 1 }
 0x556   :  { %3700 = vsyncpa [#allocation12], 1 }
 0x557   :  { %3701 = vsyncpa [#allocation15], 1 }
 0x558   :  { %3702 = vsyncpa [#allocation4], 1 }
 0x559   :  { %3704 = vsyncpa [#allocation4 + $0x1], 1 }

</bundles_post_ra>
